<compile_context>
chip_gen: v6e
topology: v6e:2x2x1
jax: 0.10.0
libtpu: 0.0.40
codegen_flags: <defaults>
</compile_context>

<pallas_src>
import functools

import jax
import jax.numpy as jnp
from jax.experimental import pallas as pl
from jax.experimental.pallas import tpu as pltpu

C_PAD = 128        # lane-padded channel width
NEG_INF = -1e30    # finite "minus infinity" used to mask padded class columns


def _gcn_kernel(a_ref, p0_ref, w_ref, b_ref, out_ref, p_ref, *,
                n_classes, block_m, block_k, n_pad, a_resident):
    l = pl.program_id(0)            # layer
    i = pl.program_id(1)            # output row tile
    k = pl.program_id(2)            # reduction (A_hat column) tile
    num_layers = pl.num_programs(0)
    num_k = pl.num_programs(2)

    cur = l % 2                     # P double-buffer slot read by this layer
    nxt = (l + 1) % 2               # slot written for the next layer

    # Bootstrap: install the precomputed layer-0 projection P0 = X @ W1.
    @pl.when((l == 0) & (i == 0) & (k == 0))
    def _():
        p_ref[pl.ds(0, n_pad), :] = p0_ref[...]

    # New (layer, row-tile): reset the revisit-resident f32 accumulator.
    @pl.when(k == 0)
    def _():
        out_ref[...] = jnp.zeros_like(out_ref)

    # Hot loop: accumulate A_hat[i, k] @ P_l[k] (bf16 MXU, f32 accumulation).
    k_start = k * block_k
    if a_resident:
        a_tile = a_ref[pl.ds(pl.multiple_of(i * block_m, block_m), block_m),
                       pl.ds(pl.multiple_of(k_start, block_k), block_k)]
    else:
        a_tile = a_ref[...]
    p_off = pl.multiple_of(cur * n_pad + k_start, block_k)
    out_ref[...] += jnp.dot(a_tile, p_ref[pl.ds(p_off, block_k), :],
                            preferred_element_type=jnp.float32)

    # Fused epilogue on the last k tile.
    @pl.when(k == num_k - 1)
    def _():
        y = out_ref[...] + b_ref[0]                      # (block_m, C_PAD) f32

        @pl.when(l < num_layers - 1)
        def _():
            act = jnp.maximum(y, 0.0)
            # Fused next-layer projection for this row tile; hidden under the
            # A-tile streaming / MXU work of the surrounding grid steps.
            proj = jnp.dot(act, w_ref[0], preferred_element_type=jnp.float32)
            dst = pl.multiple_of(nxt * n_pad + i * block_m, block_m)
            p_ref[pl.ds(dst, block_m), :] = proj.astype(p_ref.dtype)

        @pl.when(l == num_layers - 1)
        def _():
            col = jax.lax.broadcasted_iota(jnp.int32, y.shape, 1)
            y_m = jnp.where(col < n_classes, y, NEG_INF)  # mask padded classes
            m = jnp.max(y_m, axis=-1, keepdims=True)
            lse = m + jnp.log(jnp.sum(jnp.exp(y_m - m), axis=-1, keepdims=True))
            out_ref[...] = y_m - lse


def build_normalized_adjacency(edge_index, edge_weight, num_nodes):
    """Dense gcn_norm adjacency: A_hat[dst, src] = d(dst)^-1/2 * w * d(src)^-1/2
    with self loops of weight 1 (torch_geometric GCNConv, source->target)."""
    src, dst = edge_index[0], edge_index[1]
    adj = jnp.zeros((num_nodes, num_nodes), jnp.float32)
    adj = adj.at[dst, src].add(edge_weight.astype(jnp.float32))
    adj = adj + jnp.eye(num_nodes, dtype=jnp.float32)
    deg = jnp.sum(adj, axis=1)
    d_inv_sqrt = jnp.where(deg > 0.0, jax.lax.rsqrt(deg), 0.0)
    return adj * d_inv_sqrt[:, None] * d_inv_sqrt[None, :]


def _round_up(x, m):
    return ((x + m - 1) // m) * m


def _pad2d(x, rows, cols):
    return jnp.pad(x, ((0, rows - x.shape[0]), (0, cols - x.shape[1])))


def gcn_forward(features, edge_index, edge_weight, params, *, block=512):
    """Fused 5-layer GCN forward.  Returns log_softmax logits (N, out_channels)."""
    (w1, b1), (w2, b2), (w3, b3), (w4, b4) = params
    layer_ws = (w1, w2, w2, w3, w4)     # conv2 is applied twice in forward()
    layer_bs = (b1, b2, b2, b3, b4)
    num_layers = len(layer_ws)

    n, in_channels = features.shape
    out_channels = layer_ws[-1].shape[1]
    assert in_channels <= C_PAD and out_channels <= C_PAD
    for w in layer_ws:                  # explicit: all hidden widths fit one lane tile
        assert w.shape[0] <= C_PAD and w.shape[1] <= C_PAD
    # TODO(synk): support channel widths > 128 by tiling the projections.

    # Single tile size for rows and the reduction (keeps padding linear in n).
    block = max(128, min(block, _round_up(n, 128)))
    block = _round_up(block, 128)
    n_pad = _round_up(n, block)

    a_hat = build_normalized_adjacency(edge_index, edge_weight, n)
    a_pad = _pad2d(a_hat, n_pad, n_pad).astype(jnp.bfloat16)

    # Layer-0 projection P0 = X @ W1 as a tiny XLA matmul; the raw features
    # never enter the kernel (frees their resident VMEM).
    p0 = jnp.dot(features.astype(jnp.float32), w1.astype(jnp.float32),
                 preferred_element_type=jnp.float32).astype(jnp.bfloat16)
    p0_pad = _pad2d(p0, n_pad, C_PAD)

    # Layer l's epilogue needs W[l+1]; last entry is a dummy (never used).
    w_next = jnp.stack([_pad2d(w.astype(jnp.float32), C_PAD, C_PAD)
                        for w in layer_ws[1:]]
                       + [jnp.zeros((C_PAD, C_PAD), jnp.float32)])
    b_stack = jnp.stack(
        [_pad2d(b.astype(jnp.float32)[None, :], 1, C_PAD) for b in layer_bs])

    # Keep A_hat fully VMEM-resident when it comfortably fits (the factor 2
    # accounts for BlockSpec double-buffering of the constant-index block);
    # this cuts A_hat HBM reads from num_layers passes to one.
    a_bytes = n_pad * n_pad * 2
    a_resident = 2 * a_bytes <= 36 * 1024 * 1024

    if a_resident:
        a_spec = pl.BlockSpec((n_pad, n_pad), lambda l, i, k: (0, 0))
    else:
        # TODO(synk): pl.Buffered(3) pipelining + int8/fp8 A_hat + block-sparse
        # zero-tile skip for graphs that exceed VMEM residency.
        a_spec = pl.BlockSpec((block, block), lambda l, i, k: (i, k))

    grid = (num_layers, n_pad // block, n_pad // block)
    kernel = functools.partial(_gcn_kernel, n_classes=out_channels,
                               block_m=block, block_k=block, n_pad=n_pad,
                               a_resident=a_resident)

    a_hbm_bytes = a_bytes if a_resident else num_layers * a_bytes
    out_padded = pl.pallas_call(
        kernel,
        out_shape=jax.ShapeDtypeStruct((n_pad, C_PAD), jnp.float32),
        grid_spec=pltpu.PrefetchScalarGridSpec(
            num_scalar_prefetch=0,
            grid=grid,
            in_specs=[
                a_spec,
                # precomputed layer-0 projection (read once at bootstrap)
                pl.BlockSpec((n_pad, C_PAD), lambda l, i, k: (0, 0)),
                # next-layer weights / this-layer biases
                pl.BlockSpec((1, C_PAD, C_PAD), lambda l, i, k: (l, 0, 0)),
                pl.BlockSpec((1, 1, C_PAD), lambda l, i, k: (l, 0, 0)),
            ],
            # out block index is constant over k -> revisit-resident f32
            # accumulator; no separate acc scratch needed.
            out_specs=pl.BlockSpec((block, C_PAD), lambda l, i, k: (i, 0)),
            scratch_shapes=[
                # Double-buffered projection P (slot l%2 read, (l+1)%2 written).
                pltpu.VMEM((2 * n_pad, C_PAD), jnp.bfloat16),
            ],
        ),
        compiler_params=pltpu.CompilerParams(
            # layer axis is sequential; every row tile of layer l+1 reads the
            # full P written by all row tiles of layer l, so the row axis
            # cannot be megacore-parallel either.
            dimension_semantics=("arbitrary", "arbitrary", "arbitrary"),
            # Safe on all generations (<= v7x's 64 MiB physical VMEM); raise
            # towards ~100 MiB on v5e/v6e for larger resident graphs.
            vmem_limit_bytes=56 * 1024 * 1024,
        ),
        cost_estimate=pl.CostEstimate(
            flops=(2 * num_layers * n_pad * n_pad * C_PAD
                   + 2 * (num_layers - 1) * n_pad * C_PAD * C_PAD),
            transcendentals=n_pad * C_PAD,
            bytes_accessed=(a_hbm_bytes
                            + n_pad * C_PAD * 2          # P0 in (bf16)
                            + n_pad * C_PAD * 4          # out (f32)
                            + num_layers * C_PAD * (C_PAD + 1) * 4),
        ),
    )(a_pad, p0_pad, w_next, b_stack)

    return out_padded[:n, :out_channels]


def init_gcn_params(key, in_channels, out_channels):
    dims = ((in_channels, 20), (20, 20), (20, 10), (10, out_channels))
    params = []
    for fan_in, fan_out in dims:
        key, wk = jax.random.split(key)
        lim = (6.0 / (fan_in + fan_out)) ** 0.5
        w = jax.random.uniform(wk, (fan_in, fan_out), jnp.float32, -lim, lim)
        b = jnp.zeros((fan_out,), jnp.float32)
        params.append((w, b))
    return tuple(params)


def _reference_forward(a_hat, features, params):
    """Plain-JAX reference mirroring the kernel's bf16 numerics."""
    (w1, b1), (w2, b2), (w3, b3), (w4, b4) = params
    layers = ((w1, b1), (w2, b2), (w2, b2), (w3, b3), (w4, b4))
    a_bf = a_hat.astype(jnp.bfloat16)
    h = features.astype(jnp.float32)
    for idx, (w, b) in enumerate(layers):
        p = jnp.dot(h, w, preferred_element_type=jnp.float32).astype(jnp.bfloat16)
        h = jnp.dot(a_bf, p, preferred_element_type=jnp.float32) + b
        if idx < len(layers) - 1:
            h = jnp.maximum(h, 0.0)
    return jax.nn.log_softmax(h, axis=1)


if __name__ == "__main__":
    key = jax.random.PRNGKey(0)
    num_nodes, num_edges = 500, 2048
    in_channels, out_channels = 16, 7

    k_feat, k_src, k_dst, k_w, k_param = jax.random.split(key, 5)
    features = jax.random.normal(k_feat, (num_nodes, in_channels), jnp.float32)
    edge_index = jnp.stack([
        jax.random.randint(k_src, (num_edges,), 0, num_nodes),
        jax.random.randint(k_dst, (num_edges,), 0, num_nodes),
    ]).astype(jnp.int32)
    edge_weight = jax.random.uniform(k_w, (num_edges,), jnp.float32, 0.5, 1.5)
    params = init_gcn_params(k_param, in_channels, out_channels)

    out = gcn_forward(features, edge_index, edge_weight, params)
    out = jax.block_until_ready(out)

    assert out.shape == (num_nodes, out_channels), out.shape
    # log_softmax rows must exponentiate to probabilities summing to 1.
    prob_sums = jnp.exp(out).sum(axis=1)
    assert bool(jnp.allclose(prob_sums, 1.0, atol=1e-3)), prob_sums

    # Cross-check against a plain-JAX reference with matching bf16 numerics.
    ref = _reference_forward(
        build_normalized_adjacency(edge_index, edge_weight, num_nodes),
        features, params)
    assert bool(jnp.allclose(out, ref, atol=3e-2, rtol=3e-2)), \
        float(jnp.max(jnp.abs(out - ref)))

    print("KERNEL_OK")
</pallas_src>

<mosaic_0001>
module attributes {stable_mosaic.version = 11 : i64} {
  func.func @_gcn_kernel(%arg0: i32, %arg1: i32, %arg2: i32, %arg3: memref<512x512xbf16, #tpu.memory_space<vmem>>, %arg4: memref<512x128xbf16, #tpu.memory_space<vmem>>, %arg5: memref<1x128x128xf32, #tpu.memory_space<vmem>>, %arg6: memref<1x1x128xf32, #tpu.memory_space<vmem>>, %arg7: memref<512x128xf32, #tpu.memory_space<vmem>>, %arg8: memref<1024x128xbf16, #tpu.memory_space<vmem>>) attributes {dimension_semantics = [#tpu.dimension_semantics<arbitrary>, #tpu.dimension_semantics<arbitrary>, #tpu.dimension_semantics<arbitrary>], iteration_bounds = array<i64: 5, 1, 1>, scalar_prefetch = 0 : i64, scratch_operands = 1 : i64, tpu.core_type = #tpu.core_type<tc>, window_params = [{pipeline_mode = #tpu.pipeline_mode<synchronous>, transform_indices = @transform_0, window_bounds = array<i64: 512, 512>}, {pipeline_mode = #tpu.pipeline_mode<synchronous>, transform_indices = @transform_1, window_bounds = array<i64: 512, 128>}, {transform_indices = @transform_2, window_bounds = array<i64: 1, 128, 128>}, {transform_indices = @transform_3, window_bounds = array<i64: 1, 1, 128>}, {transform_indices = @transform_4, window_bounds = array<i64: 512, 128>}]} {
    %c2_i32 = arith.constant 2 : i32
    %c0_i32 = arith.constant 0 : i32
    %0 = arith.cmpi eq, %c2_i32, %c0_i32 : i32
    %c1_i32 = arith.constant 1 : i32
    %1 = arith.select %0, %c1_i32, %c2_i32 : i32
    %2 = arith.remsi %arg0, %1 : i32
    %c0_i32_0 = arith.constant 0 : i32
    %3 = arith.cmpi ne, %2, %c0_i32_0 : i32
    %c0_i32_1 = arith.constant 0 : i32
    %4 = arith.cmpi slt, %2, %c0_i32_1 : i32
    %c0_i32_2 = arith.constant 0 : i32
    %5 = arith.cmpi slt, %1, %c0_i32_2 : i32
    %6 = arith.xori %4, %5 : i1
    %7 = arith.andi %6, %3 : i1
    %8 = arith.addi %2, %1 : i32
    %9 = arith.select %7, %8, %2 : i32
    %c1_i32_3 = arith.constant 1 : i32
    %10 = arith.addi %arg0, %c1_i32_3 : i32
    %c2_i32_4 = arith.constant 2 : i32
    %c0_i32_5 = arith.constant 0 : i32
    %11 = arith.cmpi eq, %c2_i32_4, %c0_i32_5 : i32
    %c1_i32_6 = arith.constant 1 : i32
    %12 = arith.select %11, %c1_i32_6, %c2_i32_4 : i32
    %13 = arith.remsi %10, %12 : i32
    %c0_i32_7 = arith.constant 0 : i32
    %14 = arith.cmpi ne, %13, %c0_i32_7 : i32
    %c0_i32_8 = arith.constant 0 : i32
    %15 = arith.cmpi slt, %13, %c0_i32_8 : i32
    %c0_i32_9 = arith.constant 0 : i32
    %16 = arith.cmpi slt, %12, %c0_i32_9 : i32
    %17 = arith.xori %15, %16 : i1
    %18 = arith.andi %17, %14 : i1
    %19 = arith.addi %13, %12 : i32
    %20 = arith.select %18, %19, %13 : i32
    %c0_i32_10 = arith.constant 0 : i32
    %21 = arith.cmpi eq, %arg0, %c0_i32_10 : i32
    %c0_i32_11 = arith.constant 0 : i32
    %22 = arith.cmpi eq, %arg1, %c0_i32_11 : i32
    %23 = arith.andi %21, %22 : i1
    %c0_i32_12 = arith.constant 0 : i32
    %24 = arith.cmpi eq, %arg2, %c0_i32_12 : i32
    %25 = arith.andi %23, %24 : i1
    %26 = arith.extui %25 : i1 to i32
    %c0_i32_13 = arith.constant 0 : i32
    %27 = arith.cmpi ne, %26, %c0_i32_13 : i32
    scf.if %27 {
      %c0_24 = arith.constant 0 : index
      %c0_25 = arith.constant 0 : index
      %50 = vector.load %arg4[%c0_24, %c0_25] : memref<512x128xbf16, #tpu.memory_space<vmem>>, vector<512x128xbf16>
      %c0_26 = arith.constant 0 : index
      %c0_27 = arith.constant 0 : index
      %51 = vector.load %arg8[%c0_26, %c0_27] : memref<1024x128xbf16, #tpu.memory_space<vmem>>, vector<512x128xbf16>
      tpu.vector_store %arg8[%c0_26, %c0_27], %50 {strides = array<i32>} : memref<1024x128xbf16, #tpu.memory_space<vmem>>, vector<512x128xbf16>,
    } else {
    }
    %c0_i32_14 = arith.constant 0 : i32
    %28 = arith.cmpi eq, %arg2, %c0_i32_14 : i32
    %29 = arith.extui %28 : i1 to i32
    %c0_i32_15 = arith.constant 0 : i32
    %30 = arith.cmpi ne, %29, %c0_i32_15 : i32
    scf.if %30 {
      %cst_24 = arith.constant 0.000000e+00 : f32
      %50 = vector.broadcast %cst_24 : f32 to vector<512x128xf32>
      %c0_25 = arith.constant 0 : index
      %c0_26 = arith.constant 0 : index
      %51 = vector.load %arg7[%c0_25, %c0_26] : memref<512x128xf32, #tpu.memory_space<vmem>>, vector<512x128xf32>
      tpu.vector_store %arg7[%c0_25, %c0_26], %50 {strides = array<i32>} : memref<512x128xf32, #tpu.memory_space<vmem>>, vector<512x128xf32>,
    } else {
    }
    %c512_i32 = arith.constant 512 : i32
    %31 = arith.muli %arg2, %c512_i32 : i32
    %c512_i32_16 = arith.constant 512 : i32
    %32 = arith.muli %arg1, %c512_i32_16 : i32
    %33 = tpu.assume_multiple %32, 512 : i32
    %34 = tpu.assume_multiple %31, 512 : i32
    %35 = arith.index_cast %33 : i32 to index
    %36 = arith.index_cast %34 : i32 to index
    %37 = vector.load %arg3[%35, %36] : memref<512x512xbf16, #tpu.memory_space<vmem>>, vector<512x512xbf16>
    %c512_i32_17 = arith.constant 512 : i32
    %38 = arith.muli %9, %c512_i32_17 : i32
    %39 = arith.addi %38, %31 : i32
    %40 = tpu.assume_multiple %39, 512 : i32
    %c0 = arith.constant 0 : index
    %c0_18 = arith.constant 0 : index
    %41 = vector.load %arg7[%c0, %c0_18] : memref<512x128xf32, #tpu.memory_space<vmem>>, vector<512x128xf32>
    %42 = arith.index_cast %40 : i32 to index
    %c0_19 = arith.constant 0 : index
    %43 = vector.load %arg8[%42, %c0_19] : memref<1024x128xbf16, #tpu.memory_space<vmem>>, vector<512x128xbf16>
    %cst = arith.constant dense<0.000000e+00> : vector<512x128xf32>
    %44 = tpu.matmul %37, %43, %cst {dimension_numbers = #tpu.dot_dimension_numbers<[1], [0], [0], [1], [0, 0, 1, 1], [], []>} : vector<512x512xbf16>, vector<512x128xbf16>, vector<512x128xf32> -> vector<512x128xf32>
    %45 = arith.addf %41, %44 : vector<512x128xf32>
    %c0_20 = arith.constant 0 : index
    %c0_21 = arith.constant 0 : index
    %46 = vector.load %arg7[%c0_20, %c0_21] : memref<512x128xf32, #tpu.memory_space<vmem>>, vector<512x128xf32>
    tpu.vector_store %arg7[%c0_20, %c0_21], %45 {strides = array<i32>} : memref<512x128xf32, #tpu.memory_space<vmem>>, vector<512x128xf32>,
    %c0_i32_22 = arith.constant 0 : i32
    %47 = arith.cmpi eq, %arg2, %c0_i32_22 : i32
    %48 = arith.extui %47 : i1 to i32
    %c0_i32_23 = arith.constant 0 : i32
    %49 = arith.cmpi ne, %48, %c0_i32_23 : i32
    scf.if %49 {
      %c0_24 = arith.constant 0 : index
      %c0_25 = arith.constant 0 : index
      %50 = vector.load %arg7[%c0_24, %c0_25] : memref<512x128xf32, #tpu.memory_space<vmem>>, vector<512x128xf32>
      %c0_26 = arith.constant 0 : index
      %c0_27 = arith.constant 0 : index
      %c0_28 = arith.constant 0 : index
      %51 = vector.load %arg6[%c0_26, %c0_27, %c0_28] : memref<1x1x128xf32, #tpu.memory_space<vmem>>, vector<1x1x128xf32>
      %52 = vector.shape_cast %51 : vector<1x1x128xf32> to vector<1x128xf32>
      %53 = vector.broadcast %52 : vector<1x128xf32> to vector<512x128xf32>
      %54 = arith.addf %50, %53 : vector<512x128xf32>
      %c4_i32 = arith.constant 4 : i32
      %55 = arith.cmpi slt, %arg0, %c4_i32 : i32
      %56 = arith.extui %55 : i1 to i32
      %c0_i32_29 = arith.constant 0 : i32
      %57 = arith.cmpi ne, %56, %c0_i32_29 : i32
      scf.if %57 {
        %cst_32 = arith.constant 0.000000e+00 : f32
        %61 = vector.broadcast %cst_32 : f32 to vector<512x128xf32>
        %62 = arith.maximumf %54, %61 : vector<512x128xf32>
        %c0_33 = arith.constant 0 : index
        %c0_34 = arith.constant 0 : index
        %c0_35 = arith.constant 0 : index
        %63 = vector.load %arg5[%c0_33, %c0_34, %c0_35] : memref<1x128x128xf32, #tpu.memory_space<vmem>>, vector<1x128x128xf32>
        %64 = vector.shape_cast %63 : vector<1x128x128xf32> to vector<128x128xf32>
        %cst_36 = arith.constant dense<0.000000e+00> : vector<512x128xf32>
        %65 = tpu.matmul %62, %64, %cst_36 {dimension_numbers = #tpu.dot_dimension_numbers<[1], [0], [0], [1], [0, 0, 1, 1], [], []>} : vector<512x128xf32>, vector<128x128xf32>, vector<512x128xf32> -> vector<512x128xf32>
        %c512_i32_37 = arith.constant 512 : i32
        %66 = arith.muli %20, %c512_i32_37 : i32
        %c512_i32_38 = arith.constant 512 : i32
        %67 = arith.muli %arg1, %c512_i32_38 : i32
        %68 = arith.addi %66, %67 : i32
        %69 = tpu.assume_multiple %68, 512 : i32
        %70 = arith.truncf %65 : vector<512x128xf32> to vector<512x128xbf16>
        %71 = arith.index_cast %69 : i32 to index
        %c0_39 = arith.constant 0 : index
        %72 = vector.load %arg8[%71, %c0_39] : memref<1024x128xbf16, #tpu.memory_space<vmem>>, vector<512x128xbf16>
        tpu.vector_store %arg8[%71, %c0_39], %70 {strides = array<i32>} : memref<1024x128xbf16, #tpu.memory_space<vmem>>, vector<512x128xbf16>,
      } else {
      }
      %c4_i32_30 = arith.constant 4 : i32
      %58 = arith.cmpi eq, %arg0, %c4_i32_30 : i32
      %59 = arith.extui %58 : i1 to i32
      %c0_i32_31 = arith.constant 0 : i32
      %60 = arith.cmpi ne, %59, %c0_i32_31 : i32
      scf.if %60 {
        %61 = tpu.iota {dimensions = array<i32: 1>} : vector<512x128xi32>
        %c7_i32 = arith.constant 7 : i32
        %62 = vector.broadcast %c7_i32 : i32 to vector<512x128xi32>
        %63 = arith.cmpi slt, %61, %62 : vector<512x128xi32>
        %cst_32 = arith.constant -1.000000e+30 : f32
        %64 = vector.broadcast %cst_32 : f32 to vector<512x128xf32>
        %65 = arith.select %63, %54, %64 : vector<512x128xi1>, vector<512x128xf32>
        %cst_33 = arith.constant dense<0xFF800000> : vector<512xf32>
        %66 = vector.multi_reduction <maximumf>, %65, %cst_33 [1] : vector<512x128xf32> to vector<512xf32>
        %67 = vector.shape_cast %66 : vector<512xf32> to vector<512x1xf32>
        %68 = vector.broadcast %67 : vector<512x1xf32> to vector<512x128xf32>
        %69 = arith.subf %65, %68 : vector<512x128xf32>
        %70 = math.exp %69 : vector<512x128xf32>
        %cst_34 = arith.constant dense<0.000000e+00> : vector<512xf32>
        %71 = vector.multi_reduction <add>, %70, %cst_34 [1] : vector<512x128xf32> to vector<512xf32>
        %72 = vector.shape_cast %71 : vector<512xf32> to vector<512x1xf32>
        %73 = math.log %72 : vector<512x1xf32>
        %74 = arith.addf %67, %73 : vector<512x1xf32>
        %75 = vector.broadcast %74 : vector<512x1xf32> to vector<512x128xf32>
        %76 = arith.subf %65, %75 : vector<512x128xf32>
        %c0_35 = arith.constant 0 : index
        %c0_36 = arith.constant 0 : index
        %77 = vector.load %arg7[%c0_35, %c0_36] : memref<512x128xf32, #tpu.memory_space<vmem>>, vector<512x128xf32>
        tpu.vector_store %arg7[%c0_35, %c0_36], %76 {strides = array<i32>} : memref<512x128xf32, #tpu.memory_space<vmem>>, vector<512x128xf32>,
      } else {
      }
    } else {
    }
    return
  }
  func.func @transform_0(%arg0: i32, %arg1: i32, %arg2: i32) -> (i32, i32) {
    %c0_i32 = arith.constant 0 : i32
    %c0_i32_0 = arith.constant 0 : i32
    %c0_i32_1 = arith.constant 0 : i32
    return %c0_i32, %c0_i32_0 : i32, i32
  }
  func.func @transform_1(%arg0: i32, %arg1: i32, %arg2: i32) -> (i32, i32) {
    %c0_i32 = arith.constant 0 : i32
    %c0_i32_0 = arith.constant 0 : i32
    %c0_i32_1 = arith.constant 0 : i32
    return %c0_i32, %c0_i32_0 : i32, i32
  }
  func.func @transform_2(%arg0: i32, %arg1: i32, %arg2: i32) -> (i32, i32, i32) {
    %c0_i32 = arith.constant 0 : i32
    %c0_i32_0 = arith.constant 0 : i32
    %c0_i32_1 = arith.constant 0 : i32
    return %arg0, %c0_i32, %c0_i32_0 : i32, i32, i32
  }
  func.func @transform_3(%arg0: i32, %arg1: i32, %arg2: i32) -> (i32, i32, i32) {
    %c0_i32 = arith.constant 0 : i32
    %c0_i32_0 = arith.constant 0 : i32
    %c0_i32_1 = arith.constant 0 : i32
    return %arg0, %c0_i32, %c0_i32_0 : i32, i32, i32
  }
  func.func @transform_4(%arg0: i32, %arg1: i32, %arg2: i32) -> (i32, i32) {
    %c0_i32 = arith.constant 0 : i32
    %c0_i32_0 = arith.constant 0 : i32
    return %arg1, %c0_i32 : i32, i32
  }
}

</mosaic_0001>

<bundles_post_ra>
// kernel: tpu_custom_call.1
= control target key start
LH: loop header
LB: loop body
LE: loop exit
PB: predicated region body
PF: predicated region fallthrough
CT: control target
= control target key end

     0   :  { %9 = vsyncpa [#allocation4], 0  ;;  %s7033_s0 = inlined_call_operand.hbm [shape: bf16[512,512], index: 0, kind: input, shape index: {}]   ;;  %s7034_s1 = inlined_call_operand.hbm [shape: bf16[512,128], index: 1, kind: input, shape index: {}]   ;;  %s7035_s2 = inlined_call_operand.hbm [shape: f32[5,128,128], index: 2, kind: input, shape index: {}]   ;;  %s7036_s3 = inlined_call_operand.vmem [shape: f32[5,1,128], index: 3, kind: input, shape index: {}]   ;;  %s7037_s4 = inlined_call_operand.hbm [shape: f32[512,128], index: 4, kind: output, shape index: {}]  }
   0x1   :  { %10 = vsyncpa [#allocation7], 0 }
   0x2   :  { %11 = vsyncpa [#allocation5], 0  ;;  %s5727_s15 = smov 0   ;;  %s5729_s16 = smov 0  }
   0x3   :  { %s5731_s17 = smov 0   ;;  %s5733_s18 = smov 0  }
   0x4   :  { %s5735_s19 = smov 0   ;;  %s5737_s20 = smov 0  }
   0x5 LB: > { %s5756_s21 = sadd.s32 4294967295, %s5687_s20   ;;  %p92_p0 = scmp.ne.s32.totalorder %s5675_s17, %s5671_s16  ;;  %s5687_s20 = sphi %s5737_s20, %s17_s20   ;;  %s5683_s19 = sphi %s5735_s19, %s7378_s19   ;;  %s5679_s18 = sphi %s5733_s18, %s7377_s18   ;;  %s5675_s17 = sphi %s5731_s17, %s7376_s17   ;;  %s5671_s16 = sphi %s5729_s16, %s7375_s16   ;;  %s5667_s15 = sphi %s5727_s15, %s7374_s15  }
   0x6   : > { %p93_p1 = scmp.eq.s32.totalorder %s5687_s20, 0  ;;  %p98_p2 = scmp.ne.s32.totalorder %s5671_s16, %s5667_s15 }
   0x7   : > { %p7038_p3 = scmp.eq.s32.totalorder %s5756_s21, 0  ;;  %p4195_p4 = scmp.ge.s32.totalorder %s5687_s20, 1 }
   0x8   : > { %p94_p5 = por %p93_p1, %p92_p0  ;;  %p161_p6 = scmp.lt.s32.totalorder %s5687_s20, 6 }
   0x9   : > { %p5767_p7 = por %p7038_p3, %p98_p2  ;;  %s5689_s24 = smov [#allocation3]  }
   0xa   : > { %p5771_p8 = pnand %p4195_p4, %p161_p6  ;;  %s173_s25 = sshll.u32 %s5689_s24, 4  ;;  %s174_s25 = int_to_ptr.vmem [resolvable:$true] %s173_s25 }
   0xb   : > { %p4974_p11 = scmp.lt.s32.totalorder %s5687_s20, 5  ;;  %s5532_s28 = scalar_lea.vmem %s174_s25, 16384 }
   0xc   : > { %p4961_p9 = pneg %p5771_p8  ;;  %p5533_p0 = scmp.ne.s32.totalorder %s174_s25, %s5532_s28 }
   0xd   : > { %p5784_p12 = pnand %p4974_p11, %p94_p5  ;;  %p5540_p4 = scmp.lt.s32.totalorder %s174_s25, %s174_s25 }
   0xe   : > { %p5779_p10 = pnand %p4961_p9, %p7038_p3  ;;  %p5541_p6 = scmp.lt.s32.totalorder %s5532_s28, %s5532_s28 }
  0x10   : > { %p5523_p13 = pneg %p5779_p10  ;;  %p5542_p9 = por %p5541_p6, %p5540_p4 }
  0x12   : > { %p5535_p1 = pnand %p5533_p0, %p5523_p13 }
  0x14   : > { %p5536_p2 = pneg %p5535_p1 }
  0x16   : > { %p5543_p3 = pnand %p5542_p9, %p5536_p2 }
  0x18   : > { %5546 = shalt.err (!%p5543_p3)
}
  0x19   : > { %s5690_s29 = smov 256   ;;  %s5691_s30 = smov 16  }
  0x1a   : > { %4964 = dma.hbm_to_vmem [thread:$0]  (!%p5779_p10), %s7033_s0, 16384, %s174_s25, [#allocation4], %s5690_s29, %s5690_s29, %s5691_s30  }
  0x1b   : > { %s5692_s7 = smov [#allocation6]  }
  0x1c   : > { %s186_s8 = sshll.u32 %s5692_s7, 4  ;;  %s187_s8 = int_to_ptr.vmem [resolvable:$true] %s186_s8 }
  0x1d   : > { %s5558_s9 = scalar_lea.vmem %s187_s8, 4096  ;;  %p5566_p1 = scmp.lt.s32.totalorder %s187_s8, %s187_s8 }
  0x1e   : > { %p5559_p5 = scmp.ne.s32.totalorder %s187_s8, %s5558_s9  ;;  %p5567_p3 = scmp.lt.s32.totalorder %s5558_s9, %s5558_s9 }
  0x20   : > { %p5561_p11 = pnand %p5559_p5, %p5523_p13  ;;  %p5568_p2 = por %p5567_p3, %p5566_p1 }
  0x22   : > { %p5562_p0 = pneg %p5561_p11 }
  0x24   : > { %p5569_p4 = pnand %p5568_p2, %p5562_p0 }
  0x26   : > { %5572 = shalt.err (!%p5569_p4)
}
  0x27   : > { %s5693_s10 = smov 64   ;;  %s5694_s11 = smov 4  }
  0x28   : > { %4967 = dma.hbm_to_vmem [thread:$0]  (!%p5779_p10), %s7034_s1, 4096, %s187_s8, [#allocation7], %s5693_s10, %s5693_s10, %s5694_s11  }
  0x29   : > { %s85_s14 = sadd.s32 1, %s5675_s17  ;;  %s200_s15 = sand.u32 1, %s5687_s20  }
  0x2a   : > { %s36_s24 = sadd.s32 1, %s5683_s19  ;;  %s202_s25 = sand.u32 1, %s5675_s17  }
  0x2b   : > { %p38_p13 = scmp.ge.s32.totalorder %s36_s24, 5  ;;  %s4199_s28 = sshll.u32 %s202_s25, 7 }
  0x2c   : > { %s4449_s29 = sshll.u32 %s5683_s19, 11  ;;  %s204_s7 = scalar_lea.vmem [#allocation8], %s4199_s28 }
  0x2d   : > { %s7380_s24 = smov (%p38_p13, %s36_s24), 0  ;;  %s210_s26 = scalar_lea.hbm %s7035_s2, %s4449_s29 }
  0x2e   : > { %s82_s6 = ssub.s32 %s5683_s19, %s7380_s24  ;;  %s211_s9 = sshll.u32 %s204_s7, 4  ;;  %s212_s9 = int_to_ptr.vmem [resolvable:$true] %s211_s9 }
  0x2f   : > { %p83_p6 = scmp.eq.s32.totalorder %s82_s6, 0  ;;  %s201_s10 = scalar_lea.sflag [#allocation4], %s200_s15 }
  0x30   : > { %p5575_p10 = pneg %p5784_p12  ;;  %s5586_s11 = scalar_lea.vmem %s212_s9, 2048 }
  0x31   : > { %s5819_s8 = scalar_select %p83_p6, %s5675_s17, %s85_s14  }
  0x32   : > { %p5587_p9 = scmp.ne.s32.totalorder %s212_s9, %s5586_s11  ;;  %s5695_s12 = smov [#allocation8]  }
  0x33   : > { %s5591_s13 = sshll.u32 %s5695_s12, 4  ;;  %s5592_s13 = int_to_ptr.vmem [resolvable:$false] %s5591_s13 }
  0x34   : > { %p5589_p5 = pnand %p5587_p9, %p5575_p10  ;;  %s5593_s25 = scalar_lea.vmem %s5592_s13, 4096 }
  0x35   : > { %p5594_p0 = scmp.lt.s32.totalorder %s212_s9, %s5592_s13  ;;  %p5595_p1 = scmp.lt.s32.totalorder %s5593_s25, %s5586_s11 }
  0x36   : > { %p5590_p11 = pneg %p5589_p5 }
  0x37   : > { %p5596_p3 = por %p5595_p1, %p5594_p0 }
  0x39   : > { %p5597_p2 = pnand %p5596_p3, %p5590_p11 }
  0x3b   : > { %5600 = shalt.err (!%p5597_p2)
}
  0x3c   : > { %s5696_s28 = smov 128   ;;  %s5697_s14 = smov 8  }
  0x3d   : > { %4971 = dma.hbm_to_vmem [thread:$0]  (!%p5784_p12), %s210_s26, 2048, %s212_s9, %s201_s10, %s5696_s28, %s5696_s28, %s5697_s14  }
  0x3e   : > { %229 = sbr.rel (%p5771_p8) target bundleno = 1387 (0x56b), region = 36 }
  0x43   : > { %p7141_p4 = scmp.eq.s32.totalorder %s5756_s21, 0 }
  0x45   : > { %5650 = dma.done.wait (%p7141_p4), [#allocation4], 16384   ;;  %p7142_p13 = pmov %p7141_p4 }
  0x46   : > { %p7143_p6 = pmov %p7141_p4 }
  0x47   : > { %5652 = vsyncadd (%p7142_p13), [#allocation4], 4294950912 }
  0x48   : > { %5654 = dma.done.wait (%p7143_p6), [#allocation7], 4096   ;;  %p7144_p10 = pmov %p7141_p4 }
  0x49   : > { %s239_s27 = sand.u32 1, %s5756_s21   ;;  %s241_s15 = sand.u32 1, %s5671_s16  }
  0x4a   : > { %5656 = vsyncadd (%p7144_p10), [#allocation7], 4294963200  ;;  %s4205_s29 = sshll.u32 %s241_s15, 7  ;;  %s240_s23 = scalar_lea.sflag [#allocation4], %s239_s27 }
  0x4b   : > { %s5837_s30 = scalar_lea.vmem [#allocation8], %s4205_s29 }
  0x4c   : > { %5658 = dma.done.wait (%p5767_p7), %s240_s23, 2048  }
  0x4d   : > { %5660 = vsyncadd (%p5767_p7), %s240_s23, 4294965248  ;;  %p266_p8 = scmp.lt.s32.totalorder %s5679_s18, 4  ;;  %p271_p12 = scmp.lt.s32.totalorder %s5679_s18, 0 }
  0x4e   : > { %s272_s5 = ssub.s32 0, %s5679_s18  ;;  %s283_s26 = sadd.s32 1, %s5679_s18 }
  0x4f   : > { %s267_s6 = scalar_select %p266_p8, %s5679_s18, 4 }
  0x50   : > { %s4206_s7 = smin.u32 %s5679_s18, %s272_s5  ;;  %p284_p9 = scmp.lt.s32.totalorder %s283_s26, 0 }
  0x51   : > { %s5852_s11 = scalar_lea.vmem %s7036_s3, %s267_s6  ;;  %s274_s22 = sand.u32 1, %s4206_s7  }
  0x52   : > { %s275_s12 = ssub.s32 0, %s274_s22  ;;  %s285_s13 = ssub.s32 0, %s283_s26 }
  0x53   : > { %s7382_s12 = smov (!%p271_p12, %s275_s12), %s274_s22  ;;  %s4209_s25 = smin.u32 %s285_s13, %s283_s26 }
  0x54   : > { %p296_p7 = scmp.eq.s32.totalorder %s5679_s18, 0  ;;  %p4208_p5 = scmp.lt.s32.totalorder %s7382_s12, 0 }
  0x55   : > { %s281_s28 = sadd.s32 2, %s7382_s12  ;;  %s287_s14 = sand.u32 1, %s4209_s25   ;;  %v305_v0 = vld [vmem:[#allocation6] sm:$0xff] (%p296_p7)   ;;  %v307_v1 = vld [vmem:[#allocation6 + $0x8] sm:$0xff] (%p296_p7)   ;;  %v309_v2 = vld [vmem:[#allocation6 + $0x10] sm:$0xff] (%p296_p7)  }
  0x56   : > { %s7384_s28 = smov (!%p4208_p5, %s281_s28), %s7382_s12  ;;  %s288_s27 = ssub.s32 0, %s287_s14  ;;  %369 = vst [vmem:[#allocation2] sm:$0xff] (%p296_p7), %v305_v0   ;;  %371 = vst [vmem:[#allocation2 + $0x8] sm:$0xff] (%p296_p7), %v307_v1   ;;  %v311_v3 = vld [vmem:[#allocation6 + $0x18] sm:$0xff] (%p296_p7)   ;;  %v313_v4 = vld [vmem:[#allocation6 + $0x20] sm:$0xff] (%p296_p7)  }
  0x57   : > { %s7386_s27 = smov (!%p284_p9, %s288_s27), %s287_s14  ;;  %304 = sbr.rel (!%p296_p7) target bundleno = 102 (0x66), region = 52  ;;  %373 = vst [vmem:[#allocation2 + $0x10] sm:$0xff] (%p296_p7), %v309_v2   ;;  %v315_v5 = vld [vmem:[#allocation6 + $0x28] sm:$0xff] (%p296_p7)   ;;  %375 = vst [vmem:[#allocation2 + $0x18] sm:$0xff] (%p296_p7), %v311_v3   ;;  %v317_v6 = vld [vmem:[#allocation6 + $0x30] sm:$0xff] (%p296_p7)  }
  0x58   : > { %p4211_p11 = scmp.lt.s32.totalorder %s7386_s27, 0  ;;  %s294_s15 = sadd.s32 2, %s7386_s27  ;;  %377 = vst [vmem:[#allocation2 + $0x20] sm:$0xff] (%p296_p7), %v313_v4   ;;  %379 = vst [vmem:[#allocation2 + $0x28] sm:$0xff] (%p296_p7), %v315_v5   ;;  %v319_v7 = vld [vmem:[#allocation6 + $0x38] sm:$0xff] (%p296_p7)   ;;  %v321_v8 = vld [vmem:[#allocation6 + $0x40] sm:$0xff] (%p296_p7)  }
  0x59   : > { %381 = vst [vmem:[#allocation2 + $0x30] sm:$0xff] (%p296_p7), %v317_v6   ;;  %383 = vst [vmem:[#allocation2 + $0x38] sm:$0xff] (%p296_p7), %v319_v7   ;;  %v323_v9 = vld [vmem:[#allocation6 + $0x48] sm:$0xff] (%p296_p7)   ;;  %v325_v10 = vld [vmem:[#allocation6 + $0x50] sm:$0xff] (%p296_p7)  }
  0x5a   : > { %s7388_s15 = smov (!%p4211_p11, %s294_s15), %s7386_s27  ;;  %385 = vst [vmem:[#allocation2 + $0x40] sm:$0xff] (%p296_p7), %v321_v8   ;;  %v327_v11 = vld [vmem:[#allocation6 + $0x58] sm:$0xff] (%p296_p7)   ;;  %387 = vst [vmem:[#allocation2 + $0x48] sm:$0xff] (%p296_p7), %v323_v9   ;;  %v329_v12 = vld [vmem:[#allocation6 + $0x60] sm:$0xff] (%p296_p7)  }
  0x5b   : > { %389 = vst [vmem:[#allocation2 + $0x50] sm:$0xff] (%p296_p7), %v325_v10   ;;  %391 = vst [vmem:[#allocation2 + $0x58] sm:$0xff] (%p296_p7), %v327_v11   ;;  %v331_v13 = vld [vmem:[#allocation6 + $0x68] sm:$0xff] (%p296_p7)   ;;  %v333_v14 = vld [vmem:[#allocation6 + $0x70] sm:$0xff] (%p296_p7)  }
  0x5c   : > { %393 = vst [vmem:[#allocation2 + $0x60] sm:$0xff] %v329_v12   ;;  %395 = vst [vmem:[#allocation2 + $0x68] sm:$0xff] %v331_v13   ;;  %v335_v15 = vld [vmem:[#allocation6 + $0x78] sm:$0xff]   ;;  %v337_v16 = vld [vmem:[#allocation6 + $0x80] sm:$0xff]  }
  0x5d   : > { %397 = vst [vmem:[#allocation2 + $0x70] sm:$0xff] %v333_v14   ;;  %v339_v17 = vld [vmem:[#allocation6 + $0x88] sm:$0xff]   ;;  %399 = vst [vmem:[#allocation2 + $0x78] sm:$0xff] %v335_v15   ;;  %v341_v18 = vld [vmem:[#allocation6 + $0x90] sm:$0xff]  }
  0x5e   : > { %401 = vst [vmem:[#allocation2 + $0x80] sm:$0xff] %v337_v16   ;;  %403 = vst [vmem:[#allocation2 + $0x88] sm:$0xff] %v339_v17   ;;  %v343_v19 = vld [vmem:[#allocation6 + $0x98] sm:$0xff]   ;;  %v345_v20 = vld [vmem:[#allocation6 + $0xa0] sm:$0xff]  }
  0x5f   : > { %405 = vst [vmem:[#allocation2 + $0x90] sm:$0xff] %v341_v18   ;;  %407 = vst [vmem:[#allocation2 + $0x98] sm:$0xff] %v343_v19   ;;  %v347_v21 = vld [vmem:[#allocation6 + $0xa8] sm:$0xff]   ;;  %v349_v22 = vld [vmem:[#allocation6 + $0xb0] sm:$0xff]  }
  0x60   : > { %409 = vst [vmem:[#allocation2 + $0xa0] sm:$0xff] %v345_v20   ;;  %v351_v23 = vld [vmem:[#allocation6 + $0xb8] sm:$0xff]   ;;  %411 = vst [vmem:[#allocation2 + $0xa8] sm:$0xff] %v347_v21   ;;  %v353_v24 = vld [vmem:[#allocation6 + $0xc0] sm:$0xff]  }
  0x61   : > { %413 = vst [vmem:[#allocation2 + $0xb0] sm:$0xff] %v349_v22   ;;  %415 = vst [vmem:[#allocation2 + $0xb8] sm:$0xff] %v351_v23   ;;  %v355_v25 = vld [vmem:[#allocation6 + $0xc8] sm:$0xff]   ;;  %v357_v26 = vld [vmem:[#allocation6 + $0xd0] sm:$0xff]  }
  0x62   : > { %417 = vst [vmem:[#allocation2 + $0xc0] sm:$0xff] %v353_v24   ;;  %419 = vst [vmem:[#allocation2 + $0xc8] sm:$0xff] %v355_v25   ;;  %v359_v27 = vld [vmem:[#allocation6 + $0xd8] sm:$0xff]   ;;  %v361_v28 = vld [vmem:[#allocation6 + $0xe0] sm:$0xff]  }
  0x63   : > { %421 = vst [vmem:[#allocation2 + $0xd0] sm:$0xff] %v357_v26   ;;  %v363_v29 = vld [vmem:[#allocation6 + $0xe8] sm:$0xff]   ;;  %423 = vst [vmem:[#allocation2 + $0xd8] sm:$0xff] %v359_v27   ;;  %v365_v30 = vld [vmem:[#allocation6 + $0xf0] sm:$0xff]  }
  0x64   : > { %425 = vst [vmem:[#allocation2 + $0xe0] sm:$0xff] %v361_v28   ;;  %427 = vst [vmem:[#allocation2 + $0xe8] sm:$0xff] %v363_v29   ;;  %v367_v31 = vld [vmem:[#allocation6 + $0xf8] sm:$0xff]  }
  0x65   : > { %429 = vst [vmem:[#allocation2 + $0xf0] sm:$0xff] %v365_v30   ;;  %431 = vst [vmem:[#allocation2 + $0xf8] sm:$0xff] %v367_v31  }
  0x66 PF: > { %s4214_s29 = sshll.u32 %s7384_s28, 9  ;;  %v5698_v32 = vmov 0   ;;  %v5074_v33 = vld [vmem:[#allocation3 + $0x4] ss:$16 sps:$4 sm:$0xff]   ;;  %v5077_v34 = vld [vmem:[#allocation3 + $0xc] ss:$16 sps:$4 sm:$0xff]  }
  0x67   : > { %1604 = vmatprep.subr.bf16.mxu0 %v5698_v32  ;;  %1893 = vmatprep.subr.bf16.mxu1 %v5698_v32  ;;  %s704_s23 = sshra.s32 %s4214_s29, 3  ;;  %v5072_v3 = vld [vmem:[#allocation3] ss:$16 sps:$4 sm:$0xff]   ;;  %v5075_v4 = vld [vmem:[#allocation3 + $0x8] ss:$16 sps:$4 sm:$0xff]   ;;  %p4377_p0 = scmp.ge.s32.totalorder %s5679_s18, 4 }
  0x68   : > { %s4215_s5 = sshll.u32 %s704_s23, 2  ;;  %1636 = vmatprep.mubr.bf16.mxu0 %v5074_v33  ;;  %1925 = vmatprep.mubr.bf16.mxu1 %v5077_v34  ;;  %v5078_v5 = vld [vmem:[#allocation3 + $0x24] ss:$16 sps:$4 sm:$0xff]   ;;  %v5080_v6 = vld [vmem:[#allocation3 + $0x2c] ss:$16 sps:$4 sm:$0xff]  }
  0x69   : > { %s5862_s26 = scalar_lea.vmem [#allocation2], %s4215_s5  ;;  %v5082_v7 = vld [vmem:[#allocation3 + $0x20] ss:$16 sps:$4 sm:$0xff]   ;;  %v5083_v8 = vld [vmem:[#allocation3 + $0x28] ss:$16 sps:$4 sm:$0xff]  }
  0x6a   : > { %v5084_v9 = vld [vmem:[#allocation3 + $0x44] ss:$16 sps:$4 sm:$0xff]   ;;  %v5086_v10 = vld [vmem:[#allocation3 + $0x4c] ss:$16 sps:$4 sm:$0xff]   ;;  %v5088_v11 = vld [vmem:[#allocation3 + $0x40] ss:$16 sps:$4 sm:$0xff]  }
  0x6b   : > { %v5089_v12 = vld [vmem:[#allocation3 + $0x48] ss:$16 sps:$4 sm:$0xff]   ;;  %v5090_v13 = vld [vmem:[#allocation3 + $0x64] ss:$16 sps:$4 sm:$0xff]   ;;  %v5092_v14 = vld [vmem:[#allocation3 + $0x6c] ss:$16 sps:$4 sm:$0xff]  }
  0x6c   : > { %v5040_v35 = vld [vmem:[%s5862_s26 + $0x38] sm:$0xff]   ;;  %v5042_v37 = vld [vmem:[%s5862_s26 + $0x30] sm:$0xff]   ;;  %v5044_v39 = vld [vmem:[%s5862_s26 + $0x28] sm:$0xff]  }
  0x6d   : > { %v5041_v36 = vld [vmem:[%s5862_s26 + $0xb8] sm:$0xff]   ;;  %1605 = vmatpush1.bf16.msra.mxu0 %v5040_v35  ;;  %v5043_v38 = vld [vmem:[%s5862_s26 + $0xb0] sm:$0xff]   ;;  %v5045_v40 = vld [vmem:[%s5862_s26 + $0xa8] sm:$0xff]  }
  0x6e   : > { %1894 = vmatpush1.bf16.msra.mxu1 %v5041_v36  ;;  %1606 = vmatprep.subr.bf16.mxu0 %v5698_v32  ;;  %v5046_v41 = vld [vmem:[%s5862_s26 + $0x20] sm:$0xff]   ;;  %v5048_v43 = vld [vmem:[%s5862_s26 + $0x18] sm:$0xff]   ;;  %v5050_v45 = vld [vmem:[%s5862_s26 + $0x10] sm:$0xff]  }
  0x6f   : > { %1895 = vmatprep.subr.bf16.mxu1 %v5698_v32  ;;  %v5047_v42 = vld [vmem:[%s5862_s26 + $0xa0] sm:$0xff]   ;;  %v5049_v44 = vld [vmem:[%s5862_s26 + $0x98] sm:$0xff]   ;;  %v5051_v46 = vld [vmem:[%s5862_s26 + $0x90] sm:$0xff]  }
  0x70   : > { %v5052_v47 = vld [vmem:[%s5862_s26 + $0x8] sm:$0xff]   ;;  %v5054_v49 = vld [vmem:[%s5862_s26] sm:$0xff]   ;;  %v5056_v51 = vld [vmem:[%s5862_s26 + $0x78] sm:$0xff]  }
  0x71   : > { %1607 = vmatpush1.bf16.msra.mxu0 %v5042_v37  ;;  %v5053_v48 = vld [vmem:[%s5862_s26 + $0x88] sm:$0xff]   ;;  %v5055_v50 = vld [vmem:[%s5862_s26 + $0x80] sm:$0xff]   ;;  %v5057_v52 = vld [vmem:[%s5862_s26 + $0xf8] sm:$0xff]  }
  0x72   : > { %1896 = vmatpush1.bf16.msra.mxu1 %v5043_v38  ;;  %1608 = vmatprep.subr.bf16.mxu0 %v5698_v32  ;;  %v5058_v53 = vld [vmem:[%s5862_s26 + $0x70] sm:$0xff]   ;;  %v5060_v55 = vld [vmem:[%s5862_s26 + $0x68] sm:$0xff]   ;;  %v5062_v57 = vld [vmem:[%s5862_s26 + $0x60] sm:$0xff]  }
  0x73   : > { %1897 = vmatprep.subr.bf16.mxu1 %v5698_v32  ;;  %v5059_v54 = vld [vmem:[%s5862_s26 + $0xf0] sm:$0xff]   ;;  %v5061_v56 = vld [vmem:[%s5862_s26 + $0xe8] sm:$0xff]   ;;  %v5063_v58 = vld [vmem:[%s5862_s26 + $0xe0] sm:$0xff]  }
  0x74   : > { %v5064_v59 = vld [vmem:[%s5862_s26 + $0x58] sm:$0xff]   ;;  %v5066_v61 = vld [vmem:[%s5862_s26 + $0x50] sm:$0xff]   ;;  %v5068_v63 = vld [vmem:[%s5862_s26 + $0x48] sm:$0xff]  }
  0x75   : > { %1609 = vmatpush1.bf16.msra.mxu0 %v5044_v39  ;;  %v5065_v60 = vld [vmem:[%s5862_s26 + $0xd8] sm:$0xff]   ;;  %v5067_v62 = vld [vmem:[%s5862_s26 + $0xd0] sm:$0xff]   ;;  %v5069_v0 = vld [vmem:[%s5862_s26 + $0xc8] sm:$0xff]  }
  0x76   : > { %1898 = vmatpush1.bf16.msra.mxu1 %v5045_v40  ;;  %1610 = vmatprep.subr.bf16.mxu0 %v5698_v32  ;;  %v5070_v1 = vld [vmem:[%s5862_s26 + $0x40] sm:$0xff]   ;;  %v5095_v16 = vld [vmem:[#allocation3 + $0x68] ss:$16 sps:$4 sm:$0xff]   ;;  %v5098_v18 = vld [vmem:[#allocation3 + $0x8c] ss:$16 sps:$4 sm:$0xff]  }
  0x77   : > { %1899 = vmatprep.subr.bf16.mxu1 %v5698_v32  ;;  %v5071_v2 = vld [vmem:[%s5862_s26 + $0xc0] sm:$0xff]   ;;  %v5101_v20 = vld [vmem:[#allocation3 + $0x88] ss:$16 sps:$4 sm:$0xff]   ;;  %v5104_v22 = vld [vmem:[#allocation3 + $0xac] ss:$16 sps:$4 sm:$0xff]  }
  0x78   : > { %v5094_v15 = vld [vmem:[#allocation3 + $0x60] ss:$16 sps:$4 sm:$0xff]   ;;  %v5096_v17 = vld [vmem:[#allocation3 + $0x84] ss:$16 sps:$4 sm:$0xff]   ;;  %v5107_v24 = vld [vmem:[#allocation3 + $0xa8] ss:$16 sps:$4 sm:$0xff]  }
  0x79   : > { %1611 = vmatpush1.bf16.msra.mxu0 %v5046_v41  ;;  %v5100_v19 = vld [vmem:[#allocation3 + $0x80] ss:$16 sps:$4 sm:$0xff]   ;;  %v5102_v21 = vld [vmem:[#allocation3 + $0xa4] ss:$16 sps:$4 sm:$0xff]   ;;  %v5110_v26 = vld [vmem:[#allocation3 + $0xcc] ss:$16 sps:$4 sm:$0xff]  }
  0x7a   : > { %1900 = vmatpush1.bf16.msra.mxu1 %v5047_v42  ;;  %1612 = vmatprep.subr.bf16.mxu0 %v5698_v32  ;;  %v5106_v23 = vld [vmem:[#allocation3 + $0xa0] ss:$16 sps:$4 sm:$0xff]   ;;  %v5108_v25 = vld [vmem:[#allocation3 + $0xc4] ss:$16 sps:$4 sm:$0xff]   ;;  %v5113_v28 = vld [vmem:[#allocation3 + $0xc8] ss:$16 sps:$4 sm:$0xff]  }
  0x7b   : > { %1901 = vmatprep.subr.bf16.mxu1 %v5698_v32  ;;  %v5112_v27 = vld [vmem:[#allocation3 + $0xc0] ss:$16 sps:$4 sm:$0xff]   ;;  %v5114_v29 = vld [vmem:[#allocation3 + $0xe4] ss:$16 sps:$4 sm:$0xff]   ;;  %v5116_v30 = vld [vmem:[#allocation3 + $0xec] ss:$16 sps:$4 sm:$0xff]  }
  0x7c   : > { %v5118_v31 = vld [vmem:[#allocation3 + $0xe0] ss:$16 sps:$4 sm:$0xff]   ;;  %v5120_v33 = vld [vmem:[#allocation3 + $0x104] ss:$16 sps:$4 sm:$0xff]   ;;  %v5122_v34 = vld [vmem:[#allocation3 + $0x10c] ss:$16 sps:$4 sm:$0xff]  }
  0x7d   : > { %1613 = vmatpush1.bf16.msra.mxu0 %v5048_v43  ;;  %v5124_v35 = vld [vmem:[#allocation3 + $0x100] ss:$16 sps:$4 sm:$0xff]   ;;  %v5125_v36 = vld [vmem:[#allocation3 + $0x108] ss:$16 sps:$4 sm:$0xff]   ;;  %v5126_v37 = vld [vmem:[#allocation3 + $0x124] ss:$16 sps:$4 sm:$0xff]  }
  0x7e   : > { %1902 = vmatpush1.bf16.msra.mxu1 %v5049_v44  ;;  %1614 = vmatprep.subr.bf16.mxu0 %v5698_v32  ;;  %v5128_v38 = vld [vmem:[#allocation3 + $0x12c] ss:$16 sps:$4 sm:$0xff]   ;;  %v5130_v39 = vld [vmem:[#allocation3 + $0x120] ss:$16 sps:$4 sm:$0xff]   ;;  %v5131_v40 = vld [vmem:[#allocation3 + $0x128] ss:$16 sps:$4 sm:$0xff]  }
  0x7f   : > { %1903 = vmatprep.subr.bf16.mxu1 %v5698_v32  ;;  %v5132_v41 = vld [vmem:[#allocation3 + $0x144] ss:$16 sps:$4 sm:$0xff]   ;;  %v5134_v42 = vld [vmem:[#allocation3 + $0x14c] ss:$16 sps:$4 sm:$0xff]   ;;  %v5136_v43 = vld [vmem:[#allocation3 + $0x140] ss:$16 sps:$4 sm:$0xff]  }
  0x80   : > { %v5137_v44 = vld [vmem:[#allocation3 + $0x148] ss:$16 sps:$4 sm:$0xff]  }
  0x81   : > { %1615 = vmatpush1.bf16.msra.mxu0 %v5050_v45  ;;  %v5138_v45 = vld [vmem:[#allocation3 + $0x164] ss:$16 sps:$4 sm:$0xff]  }
  0x82   : > { %1904 = vmatpush1.bf16.msra.mxu1 %v5051_v46  ;;  %1616 = vmatprep.subr.bf16.mxu0 %v5698_v32  ;;  %v5140_v46 = vld [vmem:[#allocation3 + $0x16c] ss:$16 sps:$4 sm:$0xff]  }
  0x83   : > { %1905 = vmatprep.subr.bf16.mxu1 %v5698_v32 }
  0x85   : > { %1617 = vmatpush1.bf16.msra.mxu0 %v5052_v47  ;;  %v5142_v47 = vld [vmem:[#allocation3 + $0x160] ss:$16 sps:$4 sm:$0xff]  }
  0x86   : > { %1906 = vmatpush1.bf16.msra.mxu1 %v5053_v48  ;;  %1618 = vmatprep.subr.bf16.mxu0 %v5698_v32  ;;  %v5143_v48 = vld [vmem:[#allocation3 + $0x168] ss:$16 sps:$4 sm:$0xff]  }
  0x87   : > { %1907 = vmatprep.subr.bf16.mxu1 %v5698_v32 }
  0x89   : > { %1619 = vmatpush1.bf16.msra.mxu0 %v5054_v49  ;;  %v5144_v49 = vld [vmem:[#allocation3 + $0x184] ss:$16 sps:$4 sm:$0xff]  }
  0x8a   : > { %1908 = vmatpush1.bf16.msra.mxu1 %v5055_v50  ;;  %1620 = vmatprep.subr.bf16.mxu0 %v5698_v32  ;;  %v5146_v50 = vld [vmem:[#allocation3 + $0x18c] ss:$16 sps:$4 sm:$0xff]  }
  0x8b   : > { %1909 = vmatprep.subr.bf16.mxu1 %v5698_v32 }
  0x8d   : > { %1621 = vmatpush2.bf16.msra.mxu0 %v5056_v51  ;;  %v5148_v51 = vld [vmem:[#allocation3 + $0x180] ss:$16 sps:$4 sm:$0xff]  }
  0x8e   : > { %1910 = vmatpush2.bf16.msra.mxu1 %v5057_v52  ;;  %1622 = vmatprep.subr.bf16.mxu0 %v5698_v32  ;;  %v5149_v52 = vld [vmem:[#allocation3 + $0x188] ss:$16 sps:$4 sm:$0xff]  }
  0x8f   : > { %1911 = vmatprep.subr.bf16.mxu1 %v5698_v32 }
  0x91   : > { %1623 = vmatpush2.bf16.msra.mxu0 %v5058_v53  ;;  %v5150_v53 = vld [vmem:[#allocation3 + $0x1a4] ss:$16 sps:$4 sm:$0xff]  }
  0x92   : > { %1912 = vmatpush2.bf16.msra.mxu1 %v5059_v54  ;;  %1624 = vmatprep.subr.bf16.mxu0 %v5698_v32  ;;  %v5152_v54 = vld [vmem:[#allocation3 + $0x1ac] ss:$16 sps:$4 sm:$0xff]  }
  0x93   : > { %1913 = vmatprep.subr.bf16.mxu1 %v5698_v32 }
  0x95   : > { %1625 = vmatpush2.bf16.msra.mxu0 %v5060_v55  ;;  %v5154_v55 = vld [vmem:[#allocation3 + $0x1a0] ss:$16 sps:$4 sm:$0xff]  }
  0x96   : > { %1914 = vmatpush2.bf16.msra.mxu1 %v5061_v56  ;;  %1626 = vmatprep.subr.bf16.mxu0 %v5698_v32  ;;  %v5155_v56 = vld [vmem:[#allocation3 + $0x1a8] ss:$16 sps:$4 sm:$0xff]  }
  0x97   : > { %1915 = vmatprep.subr.bf16.mxu1 %v5698_v32 }
  0x99   : > { %1627 = vmatpush2.bf16.msra.mxu0 %v5062_v57  ;;  %v5156_v57 = vld [vmem:[#allocation3 + $0x1c4] ss:$16 sps:$4 sm:$0xff]  }
  0x9a   : > { %1916 = vmatpush2.bf16.msra.mxu1 %v5063_v58  ;;  %1628 = vmatprep.subr.bf16.mxu0 %v5698_v32  ;;  %v5158_v58 = vld [vmem:[#allocation3 + $0x1cc] ss:$16 sps:$4 sm:$0xff]  }
  0x9b   : > { %1917 = vmatprep.subr.bf16.mxu1 %v5698_v32 }
  0x9d   : > { %1629 = vmatpush2.bf16.msra.mxu0 %v5064_v59  ;;  %v5160_v59 = vld [vmem:[#allocation3 + $0x1c0] ss:$16 sps:$4 sm:$0xff]  }
  0x9e   : > { %1918 = vmatpush2.bf16.msra.mxu1 %v5065_v60  ;;  %1630 = vmatprep.subr.bf16.mxu0 %v5698_v32  ;;  %v5161_v60 = vld [vmem:[#allocation3 + $0x1c8] ss:$16 sps:$4 sm:$0xff]  }
  0x9f   : > { %1919 = vmatprep.subr.bf16.mxu1 %v5698_v32 }
  0xa1   : > { %1631 = vmatpush2.bf16.msra.mxu0 %v5066_v61  ;;  %v5162_v61 = vld [vmem:[#allocation3 + $0x1e4] ss:$16 sps:$4 sm:$0xff]  }
  0xa2   : > { %1920 = vmatpush2.bf16.msra.mxu1 %v5067_v62  ;;  %1632 = vmatprep.subr.bf16.mxu0 %v5698_v32  ;;  %v5164_v62 = vld [vmem:[#allocation3 + $0x1ec] ss:$16 sps:$4 sm:$0xff]  }
  0xa3   : > { %1921 = vmatprep.subr.bf16.mxu1 %v5698_v32 }
  0xa5   : > { %1633 = vmatpush2.bf16.msra.mxu0 %v5068_v63  ;;  %v5166_v63 = vld [vmem:[#allocation3 + $0x1e0] ss:$16 sps:$4 sm:$0xff]  }
  0xa6   : > { %1922 = vmatpush2.bf16.msra.mxu1 %v5069_v0  ;;  %1634 = vmatprep.subr.bf16.mxu0 %v5698_v32  ;;  %v5167_v0 = vld [vmem:[#allocation3 + $0x1e8] ss:$16 sps:$4 sm:$0xff]  }
  0xa7   : > { %1923 = vmatprep.subr.bf16.mxu1 %v5698_v32  ;;  %v5119_v32 = vld [vmem:[#allocation3 + $0xe8] ss:$16 sps:$4 sm:$0xff]  }
  0xa9   : > { %1635 = vmatpush2.bf16.msra.mxu0 %v5070_v1  ;;  %v5168_v1 = vld [vmem:[#allocation3 + $0x204] ss:$16 sps:$4 sm:$0xff]  }
  0xaa   : > { %1924 = vmatpush2.bf16.msra.mxu1 %v5071_v2  ;;  %v5170_v2 = vld [vmem:[#allocation3 + $0x20c] ss:$16 sps:$4 sm:$0xff]  }
  0xac   : > { %1637 = vmatmul.mubr.bf16.vlgmr.msra.gmra.mxu0 %v5072_v3  ;;  %v5172_v3 = vld [vmem:[#allocation3 + $0x200] ss:$16 sps:$4 sm:$0xff]  }
  0xad   : > { %1926 = vmatmul.mubr.bf16.vlgmr.msra.gmra.mxu1 %v5075_v4  ;;  %1644 = vmatprep.mubr.bf16.mxu0 %v5078_v5  ;;  %v5173_v4 = vld [vmem:[#allocation3 + $0x208] ss:$16 sps:$4 sm:$0xff]   ;;  %v5174_v5 = vld [vmem:[#allocation3 + $0x224] ss:$16 sps:$4 sm:$0xff]  }
  0xae   : > { %1933 = vmatprep.mubr.bf16.mxu1 %v5080_v6  ;;  %v5176_v6 = vld [vmem:[#allocation3 + $0x22c] ss:$16 sps:$4 sm:$0xff]  }
  0xb4   : > { %1645 = vmatmul.mubr.bf16.gmra.mxu0 %v5082_v7  ;;  %v5178_v7 = vld [vmem:[#allocation3 + $0x220] ss:$16 sps:$4 sm:$0xff]  }
  0xb5   : > { %1934 = vmatmul.mubr.bf16.gmra.mxu1 %v5083_v8  ;;  %1652 = vmatprep.mubr.bf16.mxu0 %v5084_v9  ;;  %v5179_v8 = vld [vmem:[#allocation3 + $0x228] ss:$16 sps:$4 sm:$0xff]   ;;  %v5180_v9 = vld [vmem:[#allocation3 + $0x244] ss:$16 sps:$4 sm:$0xff]  }
  0xb6   : > { %1941 = vmatprep.mubr.bf16.mxu1 %v5086_v10  ;;  %v5182_v10 = vld [vmem:[#allocation3 + $0x24c] ss:$16 sps:$4 sm:$0xff]  }
  0xbc   : > { %1653 = vmatmul.mubr.bf16.gmra.mxu0 %v5088_v11  ;;  %v5184_v11 = vld [vmem:[#allocation3 + $0x240] ss:$16 sps:$4 sm:$0xff]  }
  0xbd   : > { %1942 = vmatmul.mubr.bf16.gmra.mxu1 %v5089_v12  ;;  %1660 = vmatprep.mubr.bf16.mxu0 %v5090_v13  ;;  %v5185_v12 = vld [vmem:[#allocation3 + $0x248] ss:$16 sps:$4 sm:$0xff]   ;;  %v5186_v13 = vld [vmem:[#allocation3 + $0x264] ss:$16 sps:$4 sm:$0xff]  }
  0xbe   : > { %1949 = vmatprep.mubr.bf16.mxu1 %v5092_v14  ;;  %v5188_v14 = vld [vmem:[#allocation3 + $0x26c] ss:$16 sps:$4 sm:$0xff]  }
  0xc4   : > { %1661 = vmatmul.mubr.bf16.gmra.mxu0 %v5094_v15  ;;  %v5190_v15 = vld [vmem:[#allocation3 + $0x260] ss:$16 sps:$4 sm:$0xff]  }
  0xc5   : > { %1950 = vmatmul.mubr.bf16.gmra.mxu1 %v5095_v16  ;;  %1668 = vmatprep.mubr.bf16.mxu0 %v5096_v17  ;;  %v5191_v16 = vld [vmem:[#allocation3 + $0x268] ss:$16 sps:$4 sm:$0xff]   ;;  %v5192_v17 = vld [vmem:[#allocation3 + $0x284] ss:$16 sps:$4 sm:$0xff]  }
  0xc6   : > { %1957 = vmatprep.mubr.bf16.mxu1 %v5098_v18  ;;  %v5194_v18 = vld [vmem:[#allocation3 + $0x28c] ss:$16 sps:$4 sm:$0xff]  }
  0xcc   : > { %1669 = vmatmul.mubr.bf16.gmra.mxu0 %v5100_v19  ;;  %v5196_v19 = vld [vmem:[#allocation3 + $0x280] ss:$16 sps:$4 sm:$0xff]  }
  0xcd   : > { %1958 = vmatmul.mubr.bf16.gmra.mxu1 %v5101_v20  ;;  %1676 = vmatprep.mubr.bf16.mxu0 %v5102_v21  ;;  %v5197_v20 = vld [vmem:[#allocation3 + $0x288] ss:$16 sps:$4 sm:$0xff]   ;;  %v5198_v21 = vld [vmem:[#allocation3 + $0x2a4] ss:$16 sps:$4 sm:$0xff]  }
  0xce   : > { %1965 = vmatprep.mubr.bf16.mxu1 %v5104_v22  ;;  %v5200_v22 = vld [vmem:[#allocation3 + $0x2ac] ss:$16 sps:$4 sm:$0xff]  }
  0xd4   : > { %1677 = vmatmul.mubr.bf16.gmra.mxu0 %v5106_v23  ;;  %v5202_v23 = vld [vmem:[#allocation3 + $0x2a0] ss:$16 sps:$4 sm:$0xff]  }
  0xd5   : > { %1966 = vmatmul.mubr.bf16.gmra.mxu1 %v5107_v24  ;;  %1684 = vmatprep.mubr.bf16.mxu0 %v5108_v25  ;;  %v5203_v24 = vld [vmem:[#allocation3 + $0x2a8] ss:$16 sps:$4 sm:$0xff]   ;;  %v5204_v25 = vld [vmem:[#allocation3 + $0x2c4] ss:$16 sps:$4 sm:$0xff]  }
  0xd6   : > { %1973 = vmatprep.mubr.bf16.mxu1 %v5110_v26  ;;  %v5206_v26 = vld [vmem:[#allocation3 + $0x2cc] ss:$16 sps:$4 sm:$0xff]  }
  0xdc   : > { %1685 = vmatmul.mubr.bf16.gmra.mxu0 %v5112_v27  ;;  %v5208_v27 = vld [vmem:[#allocation3 + $0x2c0] ss:$16 sps:$4 sm:$0xff]  }
  0xdd   : > { %1974 = vmatmul.mubr.bf16.gmra.mxu1 %v5113_v28  ;;  %1692 = vmatprep.mubr.bf16.mxu0 %v5114_v29  ;;  %v5209_v28 = vld [vmem:[#allocation3 + $0x2c8] ss:$16 sps:$4 sm:$0xff]   ;;  %v5210_v29 = vld [vmem:[#allocation3 + $0x2e4] ss:$16 sps:$4 sm:$0xff]  }
  0xde   : > { %1981 = vmatprep.mubr.bf16.mxu1 %v5116_v30  ;;  %v5212_v30 = vld [vmem:[#allocation3 + $0x2ec] ss:$16 sps:$4 sm:$0xff]  }
  0xe4   : > { %1693 = vmatmul.mubr.bf16.gmra.mxu0 %v5118_v31  ;;  %v5214_v31 = vld [vmem:[#allocation3 + $0x2e0] ss:$16 sps:$4 sm:$0xff]  }
  0xe5   : > { %1982 = vmatmul.mubr.bf16.gmra.mxu1 %v5119_v32  ;;  %1700 = vmatprep.mubr.bf16.mxu0 %v5120_v33  ;;  %v5215_v32 = vld [vmem:[#allocation3 + $0x2e8] ss:$16 sps:$4 sm:$0xff]   ;;  %v5216_v33 = vld [vmem:[#allocation3 + $0x304] ss:$16 sps:$4 sm:$0xff]  }
  0xe6   : > { %1989 = vmatprep.mubr.bf16.mxu1 %v5122_v34  ;;  %v5218_v34 = vld [vmem:[#allocation3 + $0x30c] ss:$16 sps:$4 sm:$0xff]  }
  0xec   : > { %1701 = vmatmul.mubr.bf16.gmra.mxu0 %v5124_v35  ;;  %v5220_v35 = vld [vmem:[#allocation3 + $0x300] ss:$16 sps:$4 sm:$0xff]  }
  0xed   : > { %1990 = vmatmul.mubr.bf16.gmra.mxu1 %v5125_v36  ;;  %1708 = vmatprep.mubr.bf16.mxu0 %v5126_v37  ;;  %v5221_v36 = vld [vmem:[#allocation3 + $0x308] ss:$16 sps:$4 sm:$0xff]   ;;  %v5222_v37 = vld [vmem:[#allocation3 + $0x324] ss:$16 sps:$4 sm:$0xff]  }
  0xee   : > { %1997 = vmatprep.mubr.bf16.mxu1 %v5128_v38  ;;  %v5224_v38 = vld [vmem:[#allocation3 + $0x32c] ss:$16 sps:$4 sm:$0xff]  }
  0xf4   : > { %1709 = vmatmul.mubr.bf16.gmra.mxu0 %v5130_v39 }
  0xf5   : > { %1998 = vmatmul.mubr.bf16.gmra.mxu1 %v5131_v40  ;;  %1716 = vmatprep.mubr.bf16.mxu0 %v5132_v41 }
  0xf6   : > { %2005 = vmatprep.mubr.bf16.mxu1 %v5134_v42 }
  0xfc   : > { %1717 = vmatmul.mubr.bf16.gmra.mxu0 %v5136_v43  ;;  %v5927_v43 = vld [vmem:[%s5852_s11] ss:$0 sm:$0xff] }
  0xfd   : > { %2006 = vmatmul.mubr.bf16.gmra.mxu1 %v5137_v44  ;;  %1724 = vmatprep.mubr.bf16.mxu0 %v5138_v45 }
  0xfe   : > { %2013 = vmatprep.mubr.bf16.mxu1 %v5140_v46  ;;  %v5226_v46 = vld [vmem:[#allocation3 + $0x320] ss:$16 sps:$4 sm:$0xff]  }
 0x104   : > { %1725 = vmatmul.mubr.bf16.gmra.mxu0 %v5142_v47 }
 0x105   : > { %2014 = vmatmul.mubr.bf16.gmra.mxu1 %v5143_v48  ;;  %1732 = vmatprep.mubr.bf16.mxu0 %v5144_v49  ;;  %v5227_v48 = vld [vmem:[#allocation3 + $0x328] ss:$16 sps:$4 sm:$0xff]   ;;  %v5228_v49 = vld [vmem:[#allocation3 + $0x344] ss:$16 sps:$4 sm:$0xff]  }
 0x106   : > { %2021 = vmatprep.mubr.bf16.mxu1 %v5146_v50 }
 0x10c   : > { %1733 = vmatmul.mubr.bf16.gmra.mxu0 %v5148_v51 }
 0x10d   : > { %2022 = vmatmul.mubr.bf16.gmra.mxu1 %v5149_v52  ;;  %1740 = vmatprep.mubr.bf16.mxu0 %v5150_v53  ;;  %v5230_v53 = vld [vmem:[#allocation3 + $0x34c] ss:$16 sps:$4 sm:$0xff]  }
 0x10e   : > { %2029 = vmatprep.mubr.bf16.mxu1 %v5152_v54 }
 0x114   : > { %1741 = vmatmul.mubr.bf16.gmra.mxu0 %v5154_v55 }
 0x115   : > { %2030 = vmatmul.mubr.bf16.gmra.mxu1 %v5155_v56  ;;  %1748 = vmatprep.mubr.bf16.mxu0 %v5156_v57 }
 0x116   : > { %2037 = vmatprep.mubr.bf16.mxu1 %v5158_v58 }
 0x11c   : > { %1749 = vmatmul.mubr.bf16.gmra.mxu0 %v5160_v59 }
 0x11d   : > { %2038 = vmatmul.mubr.bf16.gmra.mxu1 %v5161_v60  ;;  %1756 = vmatprep.mubr.bf16.mxu0 %v5162_v61 }
 0x11e   : > { %2045 = vmatprep.mubr.bf16.mxu1 %v5164_v62  ;;  %v5232_v62 = vld [vmem:[#allocation3 + $0x340] ss:$16 sps:$4 sm:$0xff]  }
 0x124   : > { %1757 = vmatmul.mubr.bf16.gmra.mxu0 %v5166_v63 }
 0x125   : > { %2046 = vmatmul.mubr.bf16.gmra.mxu1 %v5167_v0  ;;  %1764 = vmatprep.mubr.bf16.mxu0 %v5168_v1  ;;  %v5233_v0 = vld [vmem:[#allocation3 + $0x348] ss:$16 sps:$4 sm:$0xff]   ;;  %v5234_v1 = vld [vmem:[#allocation3 + $0x364] ss:$16 sps:$4 sm:$0xff]  }
 0x126   : > { %2053 = vmatprep.mubr.bf16.mxu1 %v5170_v2 }
 0x12c   : > { %1765 = vmatmul.mubr.bf16.gmra.mxu0 %v5172_v3 }
 0x12d   : > { %2054 = vmatmul.mubr.bf16.gmra.mxu1 %v5173_v4  ;;  %1772 = vmatprep.mubr.bf16.mxu0 %v5174_v5  ;;  %v5236_v5 = vld [vmem:[#allocation3 + $0x36c] ss:$16 sps:$4 sm:$0xff]  }
 0x12e   : > { %2061 = vmatprep.mubr.bf16.mxu1 %v5176_v6 }
 0x134   : > { %1773 = vmatmul.mubr.bf16.gmra.mxu0 %v5178_v7 }
 0x135   : > { %2062 = vmatmul.mubr.bf16.gmra.mxu1 %v5179_v8  ;;  %1780 = vmatprep.mubr.bf16.mxu0 %v5180_v9 }
 0x136   : > { %2069 = vmatprep.mubr.bf16.mxu1 %v5182_v10 }
 0x13c   : > { %1781 = vmatmul.mubr.bf16.gmra.mxu0 %v5184_v11 }
 0x13d   : > { %2070 = vmatmul.mubr.bf16.gmra.mxu1 %v5185_v12  ;;  %1788 = vmatprep.mubr.bf16.mxu0 %v5186_v13 }
 0x13e   : > { %2077 = vmatprep.mubr.bf16.mxu1 %v5188_v14  ;;  %v5238_v14 = vld [vmem:[#allocation3 + $0x360] ss:$16 sps:$4 sm:$0xff]  }
 0x144   : > { %1789 = vmatmul.mubr.bf16.gmra.mxu0 %v5190_v15 }
 0x145   : > { %2078 = vmatmul.mubr.bf16.gmra.mxu1 %v5191_v16  ;;  %1796 = vmatprep.mubr.bf16.mxu0 %v5192_v17  ;;  %v5239_v16 = vld [vmem:[#allocation3 + $0x368] ss:$16 sps:$4 sm:$0xff]   ;;  %v5242_v17 = vld [vmem:[#allocation3 + $0x384] ss:$16 sps:$4 sm:$0xff]  }
 0x146   : > { %2085 = vmatprep.mubr.bf16.mxu1 %v5194_v18 }
 0x14c   : > { %1797 = vmatmul.mubr.bf16.gmra.mxu0 %v5196_v19 }
 0x14d   : > { %2086 = vmatmul.mubr.bf16.gmra.mxu1 %v5197_v20  ;;  %1804 = vmatprep.mubr.bf16.mxu0 %v5198_v21  ;;  %v5245_v21 = vld [vmem:[#allocation3 + $0x38c] ss:$16 sps:$4 sm:$0xff]  }
 0x14e   : > { %2093 = vmatprep.mubr.bf16.mxu1 %v5200_v22 }
 0x154   : > { %1805 = vmatmul.mubr.bf16.gmra.mxu0 %v5202_v23 }
 0x155   : > { %2094 = vmatmul.mubr.bf16.gmra.mxu1 %v5203_v24  ;;  %1812 = vmatprep.mubr.bf16.mxu0 %v5204_v25 }
 0x156   : > { %2101 = vmatprep.mubr.bf16.mxu1 %v5206_v26 }
 0x15c   : > { %1813 = vmatmul.mubr.bf16.gmra.mxu0 %v5208_v27 }
 0x15d   : > { %2102 = vmatmul.mubr.bf16.gmra.mxu1 %v5209_v28  ;;  %1820 = vmatprep.mubr.bf16.mxu0 %v5210_v29 }
 0x15e   : > { %2109 = vmatprep.mubr.bf16.mxu1 %v5212_v30  ;;  %v5240_v30 = vld [vmem:[#allocation3 + $0x380] ss:$16 sps:$4 sm:$0xff]  }
 0x164   : > { %1821 = vmatmul.mubr.bf16.gmra.mxu0 %v5214_v31 }
 0x165   : > { %2110 = vmatmul.mubr.bf16.gmra.mxu1 %v5215_v32  ;;  %1828 = vmatprep.mubr.bf16.mxu0 %v5216_v33  ;;  %v5243_v32 = vld [vmem:[#allocation3 + $0x388] ss:$16 sps:$4 sm:$0xff]   ;;  %v5248_v33 = vld [vmem:[#allocation3 + $0x3a4] ss:$16 sps:$4 sm:$0xff]  }
 0x166   : > { %2117 = vmatprep.mubr.bf16.mxu1 %v5218_v34 }
 0x16c   : > { %v1638_v39 = vpop.f32.mrf.mxu0  ;;  %1829 = vmatmul.mubr.bf16.gmra.mxu0 %v5220_v35 }
 0x16d   : > { %v1927_v40 = vpop.f32.mrf.mxu1  ;;  %2118 = vmatmul.mubr.bf16.gmra.mxu1 %v5221_v36  ;;  %1836 = vmatprep.mubr.bf16.mxu0 %v5222_v37  ;;  %v5251_v37 = vld [vmem:[#allocation3 + $0x3ac] ss:$16 sps:$4 sm:$0xff]  }
 0x16e   : > { %v1928_v41 = vadd.f32 %v1927_v40, %v1638_v39  ;;  %v1640_v42 = vpop.f32.mrf.mxu0  ;;  %2125 = vmatprep.mubr.bf16.mxu1 %v5224_v38 }
 0x16f   : > { %v1929_v44 = vpop.f32.mrf.mxu1 }
 0x170   : > { %v1641_v45 = vpop.f32.mrf.mxu0  ;;  %2246 = vst [vmem:[#allocation9] sm:$0xff] %v1928_v41  ;;  %v5930_v50 = vadd.f32 %v5927_v43, %v1928_v41 }
 0x171   : > { %v1930_v47 = vpop.f32.mrf.mxu1 }
 0x172   : > { %v1931_v51 = vadd.f32 %v1930_v47, %v1641_v45  ;;  %v1643_v52 = vpop.f32.mrf.mxu0  ;;  %v5246_v47 = vld [vmem:[#allocation3 + $0x3a0] ss:$16 sps:$4 sm:$0xff]  }
 0x173   : > { %v1932_v54 = vpop.f32.mrf.mxu1 }
 0x174   : > { %v1646_v55 = vpop.f32.mrf.mxu0  ;;  %1837 = vmatmul.mubr.bf16.gmra.mxu0 %v5226_v46  ;;  %2247 = vst [vmem:[#allocation9 + $0x8] sm:$0xff] %v1931_v51  ;;  %v5933_v57 = vadd.f32 %v5927_v43, %v1931_v51  ;;  %v5254_v51 = vld [vmem:[#allocation3 + $0x3c4] ss:$16 sps:$4 sm:$0xff]  }
 0x175   : > { %v1935_v56 = vpop.f32.mrf.mxu1  ;;  %2126 = vmatmul.mubr.bf16.gmra.mxu1 %v5227_v48  ;;  %1844 = vmatprep.mubr.bf16.mxu0 %v5228_v49  ;;  %v5249_v49 = vld [vmem:[#allocation3 + $0x3a8] ss:$16 sps:$4 sm:$0xff]  }
 0x176   : > { %v1936_v58 = vadd.f32 %v1935_v56, %v1646_v55  ;;  %v1648_v59 = vpop.f32.mrf.mxu0  ;;  %2133 = vmatprep.mubr.bf16.mxu1 %v5230_v53  ;;  %v5257_v55 = vld [vmem:[#allocation3 + $0x3cc] ss:$16 sps:$4 sm:$0xff]  }
 0x177   : > { %v1937_v60 = vpop.f32.mrf.mxu1 }
 0x178   : > { %v1649_v61 = vpop.f32.mrf.mxu0  ;;  %2248 = vst [vmem:[#allocation9 + $0x10] sm:$0xff] %v1936_v58  ;;  %v5936_v2 = vadd.f32 %v5927_v43, %v1936_v58 }
 0x179   : > { %v1938_v63 = vpop.f32.mrf.mxu1 }
 0x17a   : > { %v1939_v3 = vadd.f32 %v1938_v63, %v1649_v61  ;;  %v1651_v4 = vpop.f32.mrf.mxu0 }
 0x17b   : > { %v1940_v6 = vpop.f32.mrf.mxu1  ;;  %v5255_v4 = vld [vmem:[#allocation3 + $0x3c8] ss:$16 sps:$4 sm:$0xff]  }
 0x17c   : > { %v1654_v7 = vpop.f32.mrf.mxu0  ;;  %1845 = vmatmul.mubr.bf16.gmra.mxu0 %v5232_v62  ;;  %2249 = vst [vmem:[#allocation9 + $0x18] sm:$0xff] %v1939_v3  ;;  %v5939_v9 = vadd.f32 %v5927_v43, %v1939_v3 }
 0x17d   : > { %v1943_v8 = vpop.f32.mrf.mxu1  ;;  %2134 = vmatmul.mubr.bf16.gmra.mxu1 %v5233_v0  ;;  %1852 = vmatprep.mubr.bf16.mxu0 %v5234_v1  ;;  %v5252_v1 = vld [vmem:[#allocation3 + $0x3c0] ss:$16 sps:$4 sm:$0xff]  }
 0x17e   : > { %v1944_v10 = vadd.f32 %v1943_v8, %v1654_v7  ;;  %v1656_v11 = vpop.f32.mrf.mxu0  ;;  %2141 = vmatprep.mubr.bf16.mxu1 %v5236_v5  ;;  %v5260_v5 = vld [vmem:[#allocation3 + $0x3e4] ss:$16 sps:$4 sm:$0xff]  }
 0x17f   : > { %v1945_v12 = vpop.f32.mrf.mxu1 }
 0x180   : > { %v1657_v13 = vpop.f32.mrf.mxu0  ;;  %2250 = vst [vmem:[#allocation9 + $0x20] sm:$0xff] %v1944_v10  ;;  %v5942_v18 = vadd.f32 %v5927_v43, %v1944_v10  ;;  %v5263_v10 = vld [vmem:[#allocation3 + $0x3ec] ss:$16 sps:$4 sm:$0xff]  }
 0x181   : > { %v1946_v15 = vpop.f32.mrf.mxu1 }
 0x182   : > { %v1947_v19 = vadd.f32 %v1946_v15, %v1657_v13  ;;  %v1659_v20 = vpop.f32.mrf.mxu0 }
 0x183   : > { %v1948_v22 = vpop.f32.mrf.mxu1  ;;  %v5258_v20 = vld [vmem:[#allocation3 + $0x3e0] ss:$16 sps:$4 sm:$0xff]  }
 0x184   : > { %v1662_v23 = vpop.f32.mrf.mxu0  ;;  %1853 = vmatmul.mubr.bf16.gmra.mxu0 %v5238_v14  ;;  %2251 = vst [vmem:[#allocation9 + $0x28] sm:$0xff] %v1947_v19  ;;  %v5945_v25 = vadd.f32 %v5927_v43, %v1947_v19  ;;  %v5261_v22 = vld [vmem:[#allocation3 + $0x3e8] ss:$16 sps:$4 sm:$0xff]  }
 0x185   : > { %v1951_v24 = vpop.f32.mrf.mxu1  ;;  %2142 = vmatmul.mubr.bf16.gmra.mxu1 %v5239_v16  ;;  %1860 = vmatprep.mubr.bf16.mxu0 %v5242_v17 }
 0x186   : > { %v1952_v26 = vadd.f32 %v1951_v24, %v1662_v23  ;;  %v1664_v27 = vpop.f32.mrf.mxu0  ;;  %2149 = vmatprep.mubr.bf16.mxu1 %v5245_v21 }
 0x187   : > { %v1953_v28 = vpop.f32.mrf.mxu1 }
 0x188   : > { %v1665_v29 = vpop.f32.mrf.mxu0  ;;  %2252 = vst [vmem:[#allocation9 + $0x30] sm:$0xff] %v1952_v26  ;;  %v5948_v34 = vadd.f32 %v5927_v43, %v1952_v26 }
 0x189   : > { %v1954_v31 = vpop.f32.mrf.mxu1 }
 0x18a   : > { %v1955_v35 = vadd.f32 %v1954_v31, %v1665_v29  ;;  %v1667_v36 = vpop.f32.mrf.mxu0 }
 0x18b   : > { %v1956_v38 = vpop.f32.mrf.mxu1 }
 0x18c   : > { %v1670_v39 = vpop.f32.mrf.mxu0  ;;  %1861 = vmatmul.mubr.bf16.gmra.mxu0 %v5240_v30  ;;  %2253 = vst [vmem:[#allocation9 + $0x38] sm:$0xff] %v1955_v35  ;;  %v5951_v41 = vadd.f32 %v5927_v43, %v1955_v35 }
 0x18d   : > { %v1959_v40 = vpop.f32.mrf.mxu1  ;;  %2150 = vmatmul.mubr.bf16.gmra.mxu1 %v5243_v32  ;;  %1868 = vmatprep.mubr.bf16.mxu0 %v5248_v33 }
 0x18e   : > { %v1960_v42 = vadd.f32 %v1959_v40, %v1670_v39  ;;  %v1672_v44 = vpop.f32.mrf.mxu0  ;;  %2157 = vmatprep.mubr.bf16.mxu1 %v5251_v37 }
 0x18f   : > { %v1961_v45 = vpop.f32.mrf.mxu1 }
 0x190   : > { %v1673_v46 = vpop.f32.mrf.mxu0  ;;  %2254 = vst [vmem:[#allocation9 + $0x40] sm:$0xff] %v1960_v42  ;;  %v5954_v52 = vadd.f32 %v5927_v43, %v1960_v42 }
 0x191   : > { %v1962_v48 = vpop.f32.mrf.mxu1 }
 0x192   : > { %v1963_v53 = vadd.f32 %v1962_v48, %v1673_v46  ;;  %v1675_v54 = vpop.f32.mrf.mxu0 }
 0x193   : > { %v1964_v56 = vpop.f32.mrf.mxu1 }
 0x194   : > { %v1678_v58 = vpop.f32.mrf.mxu0  ;;  %1869 = vmatmul.mubr.bf16.gmra.mxu0 %v5246_v47  ;;  %2255 = vst [vmem:[#allocation9 + $0x48] sm:$0xff] %v1963_v53  ;;  %v5957_v60 = vadd.f32 %v5927_v43, %v1963_v53 }
 0x195   : > { %v1967_v59 = vpop.f32.mrf.mxu1  ;;  %2158 = vmatmul.mubr.bf16.gmra.mxu1 %v5249_v49  ;;  %1876 = vmatprep.mubr.bf16.mxu0 %v5254_v51 }
 0x196   : > { %v1968_v61 = vadd.f32 %v1967_v59, %v1678_v58  ;;  %v1680_v62 = vpop.f32.mrf.mxu0  ;;  %2165 = vmatprep.mubr.bf16.mxu1 %v5257_v55 }
 0x197   : > { %v1969_v63 = vpop.f32.mrf.mxu1 }
 0x198   : > { %v1681_v0 = vpop.f32.mrf.mxu0  ;;  %2256 = vst [vmem:[#allocation9 + $0x50] sm:$0xff] %v1968_v61  ;;  %v5960_v6 = vadd.f32 %v5927_v43, %v1968_v61 }
 0x199   : > { %v1970_v3 = vpop.f32.mrf.mxu1 }
 0x19a   : > { %v1971_v7 = vadd.f32 %v1970_v3, %v1681_v0  ;;  %v1683_v8 = vpop.f32.mrf.mxu0 }
 0x19b   : > { %v1972_v11 = vpop.f32.mrf.mxu1 }
 0x19c   : > { %v1686_v12 = vpop.f32.mrf.mxu0  ;;  %1877 = vmatmul.mubr.bf16.gmra.mxu0 %v5252_v1  ;;  %2257 = vst [vmem:[#allocation9 + $0x58] sm:$0xff] %v1971_v7  ;;  %v5963_v14 = vadd.f32 %v5927_v43, %v1971_v7 }
 0x19d   : > { %v1975_v13 = vpop.f32.mrf.mxu1  ;;  %2166 = vmatmul.mubr.bf16.gmra.mxu1 %v5255_v4  ;;  %1884 = vmatprep.mubr.bf16.mxu0 %v5260_v5 }
 0x19e   : > { %v1976_v15 = vadd.f32 %v1975_v13, %v1686_v12  ;;  %v1688_v16 = vpop.f32.mrf.mxu0  ;;  %2173 = vmatprep.mubr.bf16.mxu1 %v5263_v10 }
 0x19f   : > { %v1977_v17 = vpop.f32.mrf.mxu1 }
 0x1a0   : > { %v1689_v19 = vpop.f32.mrf.mxu0  ;;  %2258 = vst [vmem:[#allocation9 + $0x60] sm:$0xff] %v1976_v15  ;;  %v5966_v23 = vadd.f32 %v5927_v43, %v1976_v15 }
 0x1a1   : > { %v1978_v21 = vpop.f32.mrf.mxu1 }
 0x1a2   : > { %v1979_v24 = vadd.f32 %v1978_v21, %v1689_v19  ;;  %v1691_v26 = vpop.f32.mrf.mxu0 }
 0x1a3   : > { %v1980_v27 = vpop.f32.mrf.mxu1 }
 0x1a4   : > { %v1694_v28 = vpop.f32.mrf.mxu0  ;;  %1885 = vmatmul.mubr.bf16.gmra.mxu0 %v5258_v20  ;;  %2259 = vst [vmem:[#allocation9 + $0x68] sm:$0xff] %v1979_v24  ;;  %v5969_v30 = vadd.f32 %v5927_v43, %v1979_v24 }
 0x1a5   : > { %v1983_v29 = vpop.f32.mrf.mxu1  ;;  %2174 = vmatmul.mubr.bf16.gmra.mxu1 %v5261_v22 }
 0x1a6   : > { %v1984_v31 = vadd.f32 %v1983_v29, %v1694_v28  ;;  %v1696_v32 = vpop.f32.mrf.mxu0 }
 0x1a7   : > { %v1985_v33 = vpop.f32.mrf.mxu1 }
 0x1a8   : > { %v1697_v35 = vpop.f32.mrf.mxu0  ;;  %2260 = vst [vmem:[#allocation9 + $0x70] sm:$0xff] %v1984_v31  ;;  %v5972_v37 = vadd.f32 %v5927_v43, %v1984_v31 }
 0x1a9   : > { %v1986_v36 = vpop.f32.mrf.mxu1 }
 0x1aa   : > { %v1987_v38 = vadd.f32 %v1986_v36, %v1697_v35  ;;  %v1699_v39 = vpop.f32.mrf.mxu0 }
 0x1ab   : > { %v1988_v40 = vpop.f32.mrf.mxu1 }
 0x1ac   : > { %v1702_v42 = vpop.f32.mrf.mxu0  ;;  %2261 = vst [vmem:[#allocation9 + $0x78] sm:$0xff] %v1987_v38  ;;  %v5975_v45 = vadd.f32 %v5927_v43, %v1987_v38 }
 0x1ad   : > { %v1991_v44 = vpop.f32.mrf.mxu1 }
 0x1ae   : > { %v1992_v46 = vadd.f32 %v1991_v44, %v1702_v42  ;;  %v1704_v47 = vpop.f32.mrf.mxu0 }
 0x1af   : > { %v1993_v48 = vpop.f32.mrf.mxu1 }
 0x1b0   : > { %v1705_v49 = vpop.f32.mrf.mxu0  ;;  %2262 = vst [vmem:[#allocation9 + $0x80] sm:$0xff] %v1992_v46  ;;  %v5978_v53 = vadd.f32 %v5927_v43, %v1992_v46 }
 0x1b1   : > { %v1994_v51 = vpop.f32.mrf.mxu1 }
 0x1b2   : > { %v1995_v54 = vadd.f32 %v1994_v51, %v1705_v49  ;;  %v1707_v55 = vpop.f32.mrf.mxu0 }
 0x1b3   : > { %v1996_v56 = vpop.f32.mrf.mxu1 }
 0x1b4   : > { %v1710_v58 = vpop.f32.mrf.mxu0  ;;  %2263 = vst [vmem:[#allocation9 + $0x88] sm:$0xff] %v1995_v54  ;;  %v5981_v61 = vadd.f32 %v5927_v43, %v1995_v54 }
 0x1b5   : > { %v1999_v59 = vpop.f32.mrf.mxu1 }
 0x1b6   : > { %v2000_v62 = vadd.f32 %v1999_v59, %v1710_v58  ;;  %v1712_v63 = vpop.f32.mrf.mxu0 }
 0x1b7   : > { %v2001_v0 = vpop.f32.mrf.mxu1 }
 0x1b8   : > { %v1713_v1 = vpop.f32.mrf.mxu0  ;;  %2264 = vst [vmem:[#allocation9 + $0x90] sm:$0xff] %v2000_v62  ;;  %v5984_v4 = vadd.f32 %v5927_v43, %v2000_v62 }
 0x1b9   : > { %v2002_v3 = vpop.f32.mrf.mxu1 }
 0x1ba   : > { %v2003_v5 = vadd.f32 %v2002_v3, %v1713_v1  ;;  %v1715_v7 = vpop.f32.mrf.mxu0 }
 0x1bb   : > { %v2004_v8 = vpop.f32.mrf.mxu1 }
 0x1bc   : > { %v1718_v10 = vpop.f32.mrf.mxu0  ;;  %2265 = vst [vmem:[#allocation9 + $0x98] sm:$0xff] %v2003_v5  ;;  %v5987_v12 = vadd.f32 %v5927_v43, %v2003_v5 }
 0x1bd   : > { %v2007_v11 = vpop.f32.mrf.mxu1 }
 0x1be   : > { %v2008_v13 = vadd.f32 %v2007_v11, %v1718_v10  ;;  %v1720_v15 = vpop.f32.mrf.mxu0 }
 0x1bf   : > { %v2009_v16 = vpop.f32.mrf.mxu1 }
 0x1c0   : > { %v1721_v17 = vpop.f32.mrf.mxu0  ;;  %2266 = vst [vmem:[#allocation9 + $0xa0] sm:$0xff] %v2008_v13  ;;  %v5990_v20 = vadd.f32 %v5927_v43, %v2008_v13 }
 0x1c1   : > { %v2010_v19 = vpop.f32.mrf.mxu1 }
 0x1c2   : > { %v2011_v21 = vadd.f32 %v2010_v19, %v1721_v17  ;;  %v1723_v22 = vpop.f32.mrf.mxu0 }
 0x1c3   : > { %v2012_v24 = vpop.f32.mrf.mxu1 }
 0x1c4   : > { %v1726_v26 = vpop.f32.mrf.mxu0  ;;  %2267 = vst [vmem:[#allocation9 + $0xa8] sm:$0xff] %v2011_v21  ;;  %v5993_v28 = vadd.f32 %v5927_v43, %v2011_v21 }
 0x1c5   : > { %v2015_v27 = vpop.f32.mrf.mxu1 }
 0x1c6   : > { %v2016_v29 = vadd.f32 %v2015_v27, %v1726_v26  ;;  %v1728_v31 = vpop.f32.mrf.mxu0 }
 0x1c7   : > { %v2017_v32 = vpop.f32.mrf.mxu1 }
 0x1c8   : > { %v1729_v33 = vpop.f32.mrf.mxu0  ;;  %2268 = vst [vmem:[#allocation9 + $0xb0] sm:$0xff] %v2016_v29  ;;  %v5996_v36 = vadd.f32 %v5927_v43, %v2016_v29 }
 0x1c9   : > { %v2018_v35 = vpop.f32.mrf.mxu1 }
 0x1ca   : > { %v2019_v38 = vadd.f32 %v2018_v35, %v1729_v33  ;;  %v1731_v39 = vpop.f32.mrf.mxu0 }
 0x1cb   : > { %v2020_v40 = vpop.f32.mrf.mxu1 }
 0x1cc   : > { %v1734_v42 = vpop.f32.mrf.mxu0  ;;  %2269 = vst [vmem:[#allocation9 + $0xb8] sm:$0xff] %v2019_v38  ;;  %v5999_v46 = vadd.f32 %v5927_v43, %v2019_v38 }
 0x1cd   : > { %v2023_v44 = vpop.f32.mrf.mxu1 }
 0x1ce   : > { %7145 = vst [vmem:[#allocation14_spill] sm:$0xff] %v5999_v46  ;;  %v2024_v47 = vadd.f32 %v2023_v44, %v1734_v42  ;;  %v1736_v48 = vpop.f32.mrf.mxu0 }
 0x1cf   : > { %v2025_v49 = vpop.f32.mrf.mxu1 }
 0x1d0   : > { %v1737_v51 = vpop.f32.mrf.mxu0  ;;  %2270 = vst [vmem:[#allocation9 + $0xc0] sm:$0xff] %v2024_v47  ;;  %v6002_v55 = vadd.f32 %v5927_v43, %v2024_v47 }
 0x1d1   : > { %v2026_v54 = vpop.f32.mrf.mxu1 }
 0x1d2   : > { %7146 = vst [vmem:[#allocation15_spill] sm:$0xff] %v6002_v55  ;;  %v2027_v56 = vadd.f32 %v2026_v54, %v1737_v51  ;;  %v1739_v58 = vpop.f32.mrf.mxu0  ;;  %v5264_v55 = vld [vmem:[%s5852_s11] ss:$0 sm:$0xff] }
 0x1d3   : > { %v2028_v59 = vpop.f32.mrf.mxu1 }
 0x1d4   : > { %v1742_v62 = vpop.f32.mrf.mxu0  ;;  %2271 = vst [vmem:[#allocation9 + $0xc8] sm:$0xff] %v2027_v56  ;;  %v6005_v0 = vadd.f32 %v5927_v43, %v2027_v56 }
 0x1d5   : > { %v2031_v63 = vpop.f32.mrf.mxu1 }
 0x1d6   : > { %7147 = vst [vmem:[#allocation16_spill] sm:$0xff] %v6005_v0  ;;  %v2032_v1 = vadd.f32 %v2031_v63, %v1742_v62  ;;  %v1744_v3 = vpop.f32.mrf.mxu0 }
 0x1d7   : > { %v2033_v5 = vpop.f32.mrf.mxu1 }
 0x1d8   : > { %v1745_v7 = vpop.f32.mrf.mxu0  ;;  %2272 = vst [vmem:[#allocation9 + $0xd0] sm:$0xff] %v2032_v1  ;;  %v6008_v10 = vadd.f32 %v5927_v43, %v2032_v1 }
 0x1d9   : > { %v2034_v8 = vpop.f32.mrf.mxu1 }
 0x1da   : > { %7148 = vst [vmem:[#allocation17_spill] sm:$0xff] %v6008_v10  ;;  %v2035_v11 = vadd.f32 %v2034_v8, %v1745_v7  ;;  %v1747_v13 = vpop.f32.mrf.mxu0 }
 0x1db   : > { %v2036_v15 = vpop.f32.mrf.mxu1 }
 0x1dc   : > { %v1750_v16 = vpop.f32.mrf.mxu0  ;;  %2273 = vst [vmem:[#allocation9 + $0xd8] sm:$0xff] %v2035_v11  ;;  %v6011_v19 = vadd.f32 %v5927_v43, %v2035_v11 }
 0x1dd   : > { %v2039_v17 = vpop.f32.mrf.mxu1 }
 0x1de   : > { %7149 = vst [vmem:[#allocation18_spill] sm:$0xff] %v6011_v19  ;;  %v2040_v21 = vadd.f32 %v2039_v17, %v1750_v16  ;;  %v1752_v22 = vpop.f32.mrf.mxu0 }
 0x1df   : > { %v2041_v24 = vpop.f32.mrf.mxu1 }
 0x1e0   : > { %v1753_v26 = vpop.f32.mrf.mxu0  ;;  %2274 = vst [vmem:[#allocation9 + $0xe0] sm:$0xff] %v2040_v21  ;;  %v6014_v29 = vadd.f32 %v5927_v43, %v2040_v21 }
 0x1e1   : > { %v2042_v27 = vpop.f32.mrf.mxu1 }
 0x1e2   : > { %7150 = vst [vmem:[#allocation19_spill] sm:$0xff] %v6014_v29  ;;  %v2043_v31 = vadd.f32 %v2042_v27, %v1753_v26  ;;  %v1755_v32 = vpop.f32.mrf.mxu0 }
 0x1e3   : > { %v2044_v33 = vpop.f32.mrf.mxu1 }
 0x1e4   : > { %v1758_v35 = vpop.f32.mrf.mxu0  ;;  %2275 = vst [vmem:[#allocation9 + $0xe8] sm:$0xff] %v2043_v31  ;;  %v6017_v39 = vadd.f32 %v5927_v43, %v2043_v31 }
 0x1e5   : > { %v2047_v38 = vpop.f32.mrf.mxu1 }
 0x1e6   : > { %7151 = vst [vmem:[#allocation20_spill] sm:$0xff] %v6017_v39  ;;  %v2048_v40 = vadd.f32 %v2047_v38, %v1758_v35  ;;  %v1760_v42 = vpop.f32.mrf.mxu0 }
 0x1e7   : > { %v2049_v44 = vpop.f32.mrf.mxu1 }
 0x1e8   : > { %v1761_v47 = vpop.f32.mrf.mxu0  ;;  %2276 = vst [vmem:[#allocation9 + $0xf0] sm:$0xff] %v2048_v40  ;;  %v6020_v49 = vadd.f32 %v5927_v43, %v2048_v40 }
 0x1e9   : > { %v2050_v48 = vpop.f32.mrf.mxu1 }
 0x1ea   : > { %7152 = vst [vmem:[#allocation21_spill] sm:$0xff] %v6020_v49  ;;  %v2051_v51 = vadd.f32 %v2050_v48, %v1761_v47  ;;  %v1763_v54 = vpop.f32.mrf.mxu0 }
 0x1eb   : > { %v2052_v56 = vpop.f32.mrf.mxu1 }
 0x1ec   : > { %v1766_v58 = vpop.f32.mrf.mxu0  ;;  %2277 = vst [vmem:[#allocation9 + $0xf8] sm:$0xff] %v2051_v51  ;;  %v6023_v62 = vadd.f32 %v5927_v43, %v2051_v51 }
 0x1ed   : > { %v2055_v59 = vpop.f32.mrf.mxu1 }
 0x1ee   : > { %7153 = vst [vmem:[#allocation22_spill] sm:$0xff] %v6023_v62  ;;  %v2056_v63 = vadd.f32 %v2055_v59, %v1766_v58  ;;  %v1768_v1 = vpop.f32.mrf.mxu0 }
 0x1ef   : > { %v2057_v3 = vpop.f32.mrf.mxu1 }
 0x1f0   : > { %v1769_v5 = vpop.f32.mrf.mxu0  ;;  %2278 = vst [vmem:[#allocation9 + $0x100] sm:$0xff] %v2056_v63  ;;  %v6026_v8 = vadd.f32 %v5927_v43, %v2056_v63 }
 0x1f1   : > { %v2058_v7 = vpop.f32.mrf.mxu1 }
 0x1f2   : > { %v2059_v11 = vadd.f32 %v2058_v7, %v1769_v5  ;;  %v1771_v13 = vpop.f32.mrf.mxu0 }
 0x1f3   : > { %v2060_v15 = vpop.f32.mrf.mxu1 }
 0x1f4   : > { %v1774_v16 = vpop.f32.mrf.mxu0  ;;  %2279 = vst [vmem:[#allocation9 + $0x108] sm:$0xff] %v2059_v11  ;;  %v6029_v21 = vadd.f32 %v5927_v43, %v2059_v11 }
 0x1f5   : > { %v2063_v17 = vpop.f32.mrf.mxu1 }
 0x1f6   : > { %v2064_v22 = vadd.f32 %v2063_v17, %v1774_v16  ;;  %v1776_v24 = vpop.f32.mrf.mxu0 }
 0x1f7   : > { %v2065_v26 = vpop.f32.mrf.mxu1 }
 0x1f8   : > { %v1777_v27 = vpop.f32.mrf.mxu0  ;;  %2280 = vst [vmem:[#allocation9 + $0x110] sm:$0xff] %v2064_v22  ;;  %v6032_v32 = vadd.f32 %v5927_v43, %v2064_v22 }
 0x1f9   : > { %v2066_v31 = vpop.f32.mrf.mxu1 }
 0x1fa   : > { %v2067_v33 = vadd.f32 %v2066_v31, %v1777_v27  ;;  %v1779_v35 = vpop.f32.mrf.mxu0 }
 0x1fb   : > { %v2068_v38 = vpop.f32.mrf.mxu1 }
 0x1fc   : > { %v1782_v40 = vpop.f32.mrf.mxu0  ;;  %2281 = vst [vmem:[#allocation9 + $0x118] sm:$0xff] %v2067_v33  ;;  %v6035_v44 = vadd.f32 %v5927_v43, %v2067_v33 }
 0x1fd   : > { %v2071_v42 = vpop.f32.mrf.mxu1 }
 0x1fe   : > { %v2072_v47 = vadd.f32 %v2071_v42, %v1782_v40  ;;  %v1784_v48 = vpop.f32.mrf.mxu0 }
 0x1ff   : > { %v2073_v51 = vpop.f32.mrf.mxu1 }
 0x200   : > { %v1785_v54 = vpop.f32.mrf.mxu0  ;;  %2282 = vst [vmem:[#allocation9 + $0x120] sm:$0xff] %v2072_v47  ;;  %v6038_v58 = vadd.f32 %v5927_v43, %v2072_v47 }
 0x201   : > { %v2074_v56 = vpop.f32.mrf.mxu1 }
 0x202   : > { %v2075_v59 = vadd.f32 %v2074_v56, %v1785_v54  ;;  %v1787_v63 = vpop.f32.mrf.mxu0 }
 0x203   : > { %v2076_v1 = vpop.f32.mrf.mxu1 }
 0x204   : > { %v1790_v3 = vpop.f32.mrf.mxu0  ;;  %2283 = vst [vmem:[#allocation9 + $0x128] sm:$0xff] %v2075_v59  ;;  %v6041_v7 = vadd.f32 %v5927_v43, %v2075_v59 }
 0x205   : > { %v2079_v5 = vpop.f32.mrf.mxu1 }
 0x206   : > { %v2080_v11 = vadd.f32 %v2079_v5, %v1790_v3  ;;  %v1792_v13 = vpop.f32.mrf.mxu0 }
 0x207   : > { %v2081_v15 = vpop.f32.mrf.mxu1 }
 0x208   : > { %v1793_v16 = vpop.f32.mrf.mxu0  ;;  %2284 = vst [vmem:[#allocation9 + $0x130] sm:$0xff] %v2080_v11  ;;  %v6044_v22 = vadd.f32 %v5927_v43, %v2080_v11 }
 0x209   : > { %v2082_v17 = vpop.f32.mrf.mxu1 }
 0x20a   : > { %v2083_v24 = vadd.f32 %v2082_v17, %v1793_v16  ;;  %v1795_v26 = vpop.f32.mrf.mxu0 }
 0x20b   : > { %v2084_v27 = vpop.f32.mrf.mxu1 }
 0x20c   : > { %v1798_v31 = vpop.f32.mrf.mxu0  ;;  %2285 = vst [vmem:[#allocation9 + $0x138] sm:$0xff] %v2083_v24  ;;  %v6047_v35 = vadd.f32 %v5927_v43, %v2083_v24 }
 0x20d   : > { %v2087_v33 = vpop.f32.mrf.mxu1 }
 0x20e   : > { %v2088_v38 = vadd.f32 %v2087_v33, %v1798_v31  ;;  %v1800_v40 = vpop.f32.mrf.mxu0 }
 0x20f   : > { %v2089_v42 = vpop.f32.mrf.mxu1 }
 0x210   : > { %v1801_v47 = vpop.f32.mrf.mxu0  ;;  %2286 = vst [vmem:[#allocation9 + $0x140] sm:$0xff] %v2088_v38  ;;  %v6050_v51 = vadd.f32 %v5927_v43, %v2088_v38 }
 0x211   : > { %v2090_v48 = vpop.f32.mrf.mxu1 }
 0x212   : > { %v2091_v54 = vadd.f32 %v2090_v48, %v1801_v47  ;;  %v1803_v56 = vpop.f32.mrf.mxu0 }
 0x213   : > { %v2092_v59 = vpop.f32.mrf.mxu1 }
 0x214   : > { %v1806_v63 = vpop.f32.mrf.mxu0  ;;  %2287 = vst [vmem:[#allocation9 + $0x148] sm:$0xff] %v2091_v54  ;;  %v6053_v3 = vadd.f32 %v5927_v43, %v2091_v54 }
 0x215   : > { %v2095_v1 = vpop.f32.mrf.mxu1 }
 0x216   : > { %v2096_v5 = vadd.f32 %v2095_v1, %v1806_v63  ;;  %v1808_v11 = vpop.f32.mrf.mxu0 }
 0x217   : > { %v2097_v13 = vpop.f32.mrf.mxu1 }
 0x218   : > { %v1809_v15 = vpop.f32.mrf.mxu0  ;;  %2288 = vst [vmem:[#allocation9 + $0x150] sm:$0xff] %v2096_v5  ;;  %v6056_v17 = vadd.f32 %v5927_v43, %v2096_v5 }
 0x219   : > { %v2098_v16 = vpop.f32.mrf.mxu1 }
 0x21a   : > { %v2099_v24 = vadd.f32 %v2098_v16, %v1809_v15  ;;  %v1811_v26 = vpop.f32.mrf.mxu0 }
 0x21b   : > { %v2100_v27 = vpop.f32.mrf.mxu1 }
 0x21c   : > { %v1814_v31 = vpop.f32.mrf.mxu0  ;;  %2289 = vst [vmem:[#allocation9 + $0x158] sm:$0xff] %v2099_v24  ;;  %v6059_v38 = vadd.f32 %v5927_v43, %v2099_v24 }
 0x21d   : > { %v2103_v33 = vpop.f32.mrf.mxu1 }
 0x21e   : > { %v2104_v40 = vadd.f32 %v2103_v33, %v1814_v31  ;;  %v1816_v42 = vpop.f32.mrf.mxu0 }
 0x21f   : > { %v2105_v47 = vpop.f32.mrf.mxu1 }
 0x220   : > { %v1817_v48 = vpop.f32.mrf.mxu0  ;;  %2290 = vst [vmem:[#allocation9 + $0x160] sm:$0xff] %v2104_v40  ;;  %v6062_v56 = vadd.f32 %v5927_v43, %v2104_v40 }
 0x221   : > { %v2106_v54 = vpop.f32.mrf.mxu1 }
 0x222   : > { %v2107_v59 = vadd.f32 %v2106_v54, %v1817_v48  ;;  %v1819_v63 = vpop.f32.mrf.mxu0 }
 0x223   : > { %v2108_v1 = vpop.f32.mrf.mxu1 }
 0x224   : > { %v1822_v5 = vpop.f32.mrf.mxu0  ;;  %2291 = vst [vmem:[#allocation9 + $0x168] sm:$0xff] %v2107_v59  ;;  %v6065_v13 = vadd.f32 %v5927_v43, %v2107_v59 }
 0x225   : > { %v2111_v11 = vpop.f32.mrf.mxu1 }
 0x226   : > { %v2112_v15 = vadd.f32 %v2111_v11, %v1822_v5  ;;  %v1824_v16 = vpop.f32.mrf.mxu0 }
 0x227   : > { %v2113_v24 = vpop.f32.mrf.mxu1 }
 0x228   : > { %v1825_v26 = vpop.f32.mrf.mxu0  ;;  %2292 = vst [vmem:[#allocation9 + $0x170] sm:$0xff] %v2112_v15  ;;  %v6068_v31 = vadd.f32 %v5927_v43, %v2112_v15 }
 0x229   : > { %v2114_v27 = vpop.f32.mrf.mxu1 }
 0x22a   : > { %v2115_v33 = vadd.f32 %v2114_v27, %v1825_v26  ;;  %v1827_v40 = vpop.f32.mrf.mxu0 }
 0x22b   : > { %v2116_v42 = vpop.f32.mrf.mxu1 }
 0x22c   : > { %v1830_v47 = vpop.f32.mrf.mxu0  ;;  %2293 = vst [vmem:[#allocation9 + $0x178] sm:$0xff] %v2115_v33  ;;  %v6071_v54 = vadd.f32 %v5927_v43, %v2115_v33 }
 0x22d   : > { %v2119_v48 = vpop.f32.mrf.mxu1 }
 0x22e   : > { %v2120_v59 = vadd.f32 %v2119_v48, %v1830_v47  ;;  %v1832_v63 = vpop.f32.mrf.mxu0 }
 0x22f   : > { %v2121_v1 = vpop.f32.mrf.mxu1 }
 0x230   : > { %v1833_v5 = vpop.f32.mrf.mxu0  ;;  %2294 = vst [vmem:[#allocation9 + $0x180] sm:$0xff] %v2120_v59  ;;  %v6074_v16 = vadd.f32 %v5927_v43, %v2120_v59 }
 0x231   : > { %v2122_v11 = vpop.f32.mrf.mxu1 }
 0x232   : > { %v2123_v15 = vadd.f32 %v2122_v11, %v1833_v5  ;;  %v1835_v24 = vpop.f32.mrf.mxu0 }
 0x233   : > { %v2124_v26 = vpop.f32.mrf.mxu1 }
 0x234   : > { %v1838_v27 = vpop.f32.mrf.mxu0  ;;  %2295 = vst [vmem:[#allocation9 + $0x188] sm:$0xff] %v2123_v15  ;;  %v6077_v42 = vadd.f32 %v5927_v43, %v2123_v15 }
 0x235   : > { %v2127_v40 = vpop.f32.mrf.mxu1 }
 0x236   : > { %v2128_v33 = vadd.f32 %v2127_v40, %v1838_v27  ;;  %v1840_v62 = vpop.f32.mrf.mxu0 }
 0x237   : > { %v2129_v47 = vpop.f32.mrf.mxu1 }
 0x238   : > { %v1841_v48 = vpop.f32.mrf.mxu0  ;;  %2296 = vst [vmem:[#allocation9 + $0x190] sm:$0xff] %v2128_v33  ;;  %v6080_v1 = vadd.f32 %v5927_v43, %v2128_v33 }
 0x239   : > { %v2130_v63 = vpop.f32.mrf.mxu1 }
 0x23a   : > { %v2131_v59 = vadd.f32 %v2130_v63, %v1841_v48  ;;  %v1843_v49 = vpop.f32.mrf.mxu0 }
 0x23b   : > { %v2132_v5 = vpop.f32.mrf.mxu1 }
 0x23c   : > { %v1846_v11 = vpop.f32.mrf.mxu0  ;;  %2297 = vst [vmem:[#allocation9 + $0x198] sm:$0xff] %v2131_v59  ;;  %v6083_v26 = vadd.f32 %v5927_v43, %v2131_v59 }
 0x23d   : > { %v2135_v24 = vpop.f32.mrf.mxu1 }
 0x23e   : > { %v2136_v15 = vadd.f32 %v2135_v24, %v1846_v11  ;;  %v1848_v39 = vpop.f32.mrf.mxu0 }
 0x23f   : > { %v2137_v27 = vpop.f32.mrf.mxu1 }
 0x240   : > { %v1849_v62 = vpop.f32.mrf.mxu0  ;;  %2298 = vst [vmem:[#allocation9 + $0x1a0] sm:$0xff] %v2136_v15  ;;  %v6086_v47 = vadd.f32 %v5927_v43, %v2136_v15 }
 0x241   : > { %v2138_v40 = vpop.f32.mrf.mxu1 }
 0x242   : > { %7154 = vst [vmem:[#allocation23_spill] sm:$0xff] %v6086_v47  ;;  %v2139_v33 = vadd.f32 %v2138_v40, %v1849_v62  ;;  %v1851_v29 = vpop.f32.mrf.mxu0 }
 0x243   : > { %v2140_v48 = vpop.f32.mrf.mxu1 }
 0x244   : > { %v1854_v49 = vpop.f32.mrf.mxu0  ;;  %2299 = vst [vmem:[#allocation9 + $0x1a8] sm:$0xff] %v2139_v33  ;;  %v6089_v5 = vadd.f32 %v5927_v43, %v2139_v33 }
 0x245   : > { %v2143_v63 = vpop.f32.mrf.mxu1 }
 0x246   : > { %7155 = vst [vmem:[#allocation24_spill] sm:$0xff] %v6089_v5  ;;  %v2144_v59 = vadd.f32 %v2143_v63, %v1854_v49  ;;  %v1856_v19 = vpop.f32.mrf.mxu0 }
 0x247   : > { %v2145_v11 = vpop.f32.mrf.mxu1 }
 0x248   : > { %v1857_v39 = vpop.f32.mrf.mxu0  ;;  %2300 = vst [vmem:[#allocation9 + $0x1b0] sm:$0xff] %v2144_v59  ;;  %v6092_v27 = vadd.f32 %v5927_v43, %v2144_v59 }
 0x249   : > { %v2146_v24 = vpop.f32.mrf.mxu1 }
 0x24a   : > { %7156 = vst [vmem:[#allocation25_spill] sm:$0xff] %v6092_v27  ;;  %v2147_v15 = vadd.f32 %v2146_v24, %v1857_v39  ;;  %v1859_v10 = vpop.f32.mrf.mxu0 }
 0x24b   : > { %v2148_v62 = vpop.f32.mrf.mxu1 }
 0x24c   : > { %v1862_v29 = vpop.f32.mrf.mxu0  ;;  %2301 = vst [vmem:[#allocation9 + $0x1b8] sm:$0xff] %v2147_v15  ;;  %v6095_v48 = vadd.f32 %v5927_v43, %v2147_v15 }
 0x24d   : > { %v2151_v40 = vpop.f32.mrf.mxu1 }
 0x24e   : > { %7157 = vst [vmem:[#allocation26_spill] sm:$0xff] %v6095_v48  ;;  %v2152_v33 = vadd.f32 %v2151_v40, %v1862_v29  ;;  %v1864_v49 = vpop.f32.mrf.mxu0 }
 0x24f   : > { %v2153_v19 = vpop.f32.mrf.mxu1 }
 0x250   : > { %v1865_v63 = vpop.f32.mrf.mxu0  ;;  %2302 = vst [vmem:[#allocation9 + $0x1c0] sm:$0xff] %v2152_v33  ;;  %v6098_v0 = vadd.f32 %v5927_v43, %v2152_v33 }
 0x251   : > { %v2154_v11 = vpop.f32.mrf.mxu1 }
 0x252   : > { %7158 = vst [vmem:[#allocation27_spill] sm:$0xff] %v6098_v0  ;;  %v2155_v59 = vadd.f32 %v2154_v11, %v1865_v63  ;;  %v1867_v39 = vpop.f32.mrf.mxu0 }
 0x253   : > { %v2156_v10 = vpop.f32.mrf.mxu1 }
 0x254   : > { %v1870_v24 = vpop.f32.mrf.mxu0  ;;  %2303 = vst [vmem:[#allocation9 + $0x1c8] sm:$0xff] %v2155_v59  ;;  %v6101_v46 = vadd.f32 %v5264_v55, %v2155_v59 }
 0x255   : > { %v2159_v62 = vpop.f32.mrf.mxu1 }
 0x256   : > { %7159 = vst [vmem:[#allocation28_spill] sm:$0xff] %v6101_v46  ;;  %v2160_v15 = vadd.f32 %v2159_v62, %v1870_v24  ;;  %v1872_v48 = vpop.f32.mrf.mxu0 }
 0x257   : > { %v2161_v29 = vpop.f32.mrf.mxu1 }
 0x258   : > { %v1873_v40 = vpop.f32.mrf.mxu0  ;;  %2304 = vst [vmem:[#allocation9 + $0x1d0] sm:$0xff] %v2160_v15  ;;  %v6103_v19 = vadd.f32 %v5264_v55, %v2160_v15 }
 0x259   : > { %v2162_v49 = vpop.f32.mrf.mxu1 }
 0x25a   : > { %7160 = vst [vmem:[#allocation29_spill] sm:$0xff] %v6103_v19  ;;  %v2163_v27 = vadd.f32 %v2162_v49, %v1873_v40  ;;  %v1875_v43 = vpop.f32.mrf.mxu0 }
 0x25b   : > { %v2164_v33 = vpop.f32.mrf.mxu1 }
 0x25c   : > { %v1878_v63 = vpop.f32.mrf.mxu0  ;;  %2305 = vst [vmem:[#allocation9 + $0x1d8] sm:$0xff] %v2163_v27  ;;  %v6105_v39 = vadd.f32 %v5264_v55, %v2163_v27 }
 0x25d   : > { %v2167_v11 = vpop.f32.mrf.mxu1 }
 0x25e   : > { %7161 = vst [vmem:[#allocation30_spill] sm:$0xff] %v6105_v39  ;;  %v2168_v10 = vadd.f32 %v2167_v11, %v1878_v63  ;;  %v1880_v0 = vpop.f32.mrf.mxu0 }
 0x25f   : > { %v2169_v59 = vpop.f32.mrf.mxu1 }
 0x260   : > { %v1881_v46 = vpop.f32.mrf.mxu0  ;;  %2306 = vst [vmem:[#allocation9 + $0x1e0] sm:$0xff] %v2168_v10  ;;  %v6107_v48 = vadd.f32 %v5264_v55, %v2168_v10 }
 0x261   : > { %v2170_v24 = vpop.f32.mrf.mxu1 }
 0x262   : > { %v2171_v62 = vadd.f32 %v2170_v24, %v1881_v46  ;;  %v1883_v29 = vpop.f32.mrf.mxu0 }
 0x263   : > { %v2172_v15 = vpop.f32.mrf.mxu1 }
 0x264   : > { %v1886_v19 = vpop.f32.mrf.mxu0  ;;  %2307 = vst [vmem:[#allocation9 + $0x1e8] sm:$0xff] %v2171_v62  ;;  %v6109_v49 = vadd.f32 %v5264_v55, %v2171_v62 }
 0x265   : > { %v2175_v40 = vpop.f32.mrf.mxu1 }
 0x266   : > { %v2176_v43 = vadd.f32 %v2175_v40, %v1886_v19  ;;  %v1888_v33 = vpop.f32.mrf.mxu0 }
 0x267   : > { %v2177_v27 = vpop.f32.mrf.mxu1 }
 0x268   : > { %v1889_v39 = vpop.f32.mrf.mxu0  ;;  %2308 = vst [vmem:[#allocation9 + $0x1f0] sm:$0xff] %v2176_v43  ;;  %v6111_v0 = vadd.f32 %v5264_v55, %v2176_v43 }
 0x269   : > { %v2178_v63 = vpop.f32.mrf.mxu1 }
 0x26a   : > { %v2179_v11 = vadd.f32 %v2178_v63, %v1889_v39  ;;  %v1891_v59 = vpop.f32.mrf.mxu0  ;;  %2451 = sbr.rel (%p4377_p0) target bundleno = 915 (0x393), region = 64 }
 0x26b   : > { %v2180_v10 = vpop.f32.mrf.mxu1 }
 0x26c   : > { %2309 = vst [vmem:[#allocation9 + $0x1f8] sm:$0xff] %v2179_v11  ;;  %v6113_v46 = vadd.f32 %v5264_v55, %v2179_v11 }
 0x26e   : > { %7162 = vst [vmem:[#allocation31_spill] sm:$0xff] %v6113_v46 }
 0x26f   : > { %v2531_v19 = vld [vmem:[%s5837_s30 + $0x78] sm:$0xff]  ;;  %v2530_v24 = vld [vmem:[%s5837_s30 + $0x70] sm:$0xff]  ;;  %v2529_v39 = vld [vmem:[%s5837_s30 + $0x68] sm:$0xff] }
 0x270   : > { %4787 = vmatprep.subr.mxu0 %v2531_v19  ;;  %4915 = vmatprep.subr.mxu1 %v2531_v19  ;;  %v2528_v55 = vld [vmem:[%s5837_s30 + $0x60] sm:$0xff]  ;;  %v2527_v62 = vld [vmem:[%s5837_s30 + $0x58] sm:$0xff]  ;;  %v2526_v29 = vld [vmem:[%s5837_s30 + $0x50] sm:$0xff] }
 0x271   : > { %4788 = vmatpush3.msra.mxu0 %v2531_v19  ;;  %4931 = vmatpush3.msra.mxu1 %v2531_v19  ;;  %v2525_v15 = vld [vmem:[%s5837_s30 + $0x48] sm:$0xff]  ;;  %v2524_v40 = vld [vmem:[%s5837_s30 + $0x40] sm:$0xff]  ;;  %v2523_v43 = vld [vmem:[%s5837_s30 + $0x38] sm:$0xff] }
 0x272   : > { %4789 = vmatprep.subr.mxu0 %v2530_v24  ;;  %4916 = vmatprep.subr.mxu1 %v2530_v24  ;;  %v2522_v33 = vld [vmem:[%s5837_s30 + $0x30] sm:$0xff]  ;;  %v2521_v27 = vld [vmem:[%s5837_s30 + $0x28] sm:$0xff]  ;;  %v2520_v63 = vld [vmem:[%s5837_s30 + $0x20] sm:$0xff] }
 0x273   : > { %4790 = vmatpush3.msra.mxu0 %v2530_v24  ;;  %4932 = vmatpush3.msra.mxu1 %v2530_v24  ;;  %v2519_v11 = vld [vmem:[%s5837_s30 + $0x18] sm:$0xff]  ;;  %v2518_v59 = vld [vmem:[%s5837_s30 + $0x10] sm:$0xff]  ;;  %v2517_v10 = vld [vmem:[%s5837_s30 + $0x8] sm:$0xff]  ;;  %v2452_v24 = vmax.f32 %v5930_v50, 0.0 }
 0x274   : > { %4791 = vmatprep.subr.mxu0 %v2529_v39  ;;  %4917 = vmatprep.subr.mxu1 %v2529_v39  ;;  %v2516_v19 = vld [vmem:[%s5837_s30] sm:$0xff]  ;;  %s4378_s30 = sshll.u32 %s7388_s15, 9 }
 0x275   : > { %4792 = vmatpush3.msra.mxu0 %v2529_v39  ;;  %4933 = vmatpush3.msra.mxu1 %v2529_v39  ;;  %v2484_v39 = vmax.f32 %v6026_v8, 0.0  ;;  %s3175_s6 = sshra.s32 %s4378_s30, 3 }
 0x276   : > { %4793 = vmatprep.subr.mxu0 %v2528_v55  ;;  %4918 = vmatprep.subr.mxu1 %v2528_v55  ;;  %s4443_s7 = sshll.u32 %s3175_s6, 2 }
 0x277   : > { %4794 = vmatpush3.msra.mxu0 %v2528_v55  ;;  %4934 = vmatpush3.msra.mxu1 %v2528_v55  ;;  %v2453_v55 = vmax.f32 %v5933_v57, 0.0  ;;  %s6197_s9 = scalar_lea.vmem [#allocation2], %s4443_s7 }
 0x278   : > { %4795 = vmatprep.subr.mxu0 %v2527_v62  ;;  %4919 = vmatprep.subr.mxu1 %v2527_v62 }
 0x279   : > { %4796 = vmatpush3.msra.mxu0 %v2527_v62  ;;  %4935 = vmatpush3.msra.mxu1 %v2527_v62  ;;  %v2485_v62 = vmax.f32 %v6029_v21, 0.0 }
 0x27a   : > { %4797 = vmatprep.subr.mxu0 %v2526_v29  ;;  %4920 = vmatprep.subr.mxu1 %v2526_v29 }
 0x27b   : > { %4798 = vmatpush3.msra.mxu0 %v2526_v29  ;;  %4936 = vmatpush3.msra.mxu1 %v2526_v29  ;;  %v2454_v29 = vmax.f32 %v5936_v2, 0.0 }
 0x27c   : > { %4799 = vmatprep.subr.mxu0 %v2525_v15  ;;  %4921 = vmatprep.subr.mxu1 %v2525_v15 }
 0x27d   : > { %4800 = vmatpush3.msra.mxu0 %v2525_v15  ;;  %4937 = vmatpush3.msra.mxu1 %v2525_v15  ;;  %v2486_v15 = vmax.f32 %v6032_v32, 0.0 }
 0x27e   : > { %4801 = vmatprep.subr.mxu0 %v2524_v40  ;;  %4922 = vmatprep.subr.mxu1 %v2524_v40 }
 0x27f   : > { %4802 = vmatpush3.msra.mxu0 %v2524_v40  ;;  %4938 = vmatpush3.msra.mxu1 %v2524_v40  ;;  %v2455_v40 = vmax.f32 %v5939_v9, 0.0 }
 0x280   : > { %4803 = vmatprep.subr.mxu0 %v2523_v43  ;;  %4923 = vmatprep.subr.mxu1 %v2523_v43 }
 0x281   : > { %4804 = vmatpush3.msra.mxu0 %v2523_v43  ;;  %4939 = vmatpush3.msra.mxu1 %v2523_v43  ;;  %v2487_v43 = vmax.f32 %v6035_v44, 0.0 }
 0x282   : > { %4805 = vmatprep.subr.mxu0 %v2522_v33  ;;  %4924 = vmatprep.subr.mxu1 %v2522_v33 }
 0x283   : > { %4806 = vmatpush3.msra.mxu0 %v2522_v33  ;;  %4940 = vmatpush3.msra.mxu1 %v2522_v33  ;;  %v2456_v33 = vmax.f32 %v5942_v18, 0.0 }
 0x284   : > { %4807 = vmatprep.subr.mxu0 %v2521_v27  ;;  %4925 = vmatprep.subr.mxu1 %v2521_v27 }
 0x285   : > { %4808 = vmatpush3.msra.mxu0 %v2521_v27  ;;  %4941 = vmatpush3.msra.mxu1 %v2521_v27  ;;  %v2488_v27 = vmax.f32 %v6038_v58, 0.0 }
 0x286   : > { %4809 = vmatprep.subr.mxu0 %v2520_v63  ;;  %4926 = vmatprep.subr.mxu1 %v2520_v63 }
 0x287   : > { %4810 = vmatpush3.msra.mxu0 %v2520_v63  ;;  %4942 = vmatpush3.msra.mxu1 %v2520_v63  ;;  %v2457_v63 = vmax.f32 %v5945_v25, 0.0 }
 0x288   : > { %4811 = vmatprep.subr.mxu0 %v2519_v11  ;;  %4927 = vmatprep.subr.mxu1 %v2519_v11 }
 0x289   : > { %4812 = vmatpush3.msra.mxu0 %v2519_v11  ;;  %4943 = vmatpush3.msra.mxu1 %v2519_v11  ;;  %v2489_v11 = vmax.f32 %v6041_v7, 0.0 }
 0x28a   : > { %4813 = vmatprep.subr.mxu0 %v2518_v59  ;;  %4928 = vmatprep.subr.mxu1 %v2518_v59 }
 0x28b   : > { %4814 = vmatpush3.msra.mxu0 %v2518_v59  ;;  %4944 = vmatpush3.msra.mxu1 %v2518_v59  ;;  %v2458_v59 = vmax.f32 %v5948_v34, 0.0 }
 0x28c   : > { %4815 = vmatprep.subr.mxu0 %v2517_v10  ;;  %4929 = vmatprep.subr.mxu1 %v2517_v10 }
 0x28d   : > { %4816 = vmatpush3.msra.mxu0 %v2517_v10  ;;  %4945 = vmatpush3.msra.mxu1 %v2517_v10  ;;  %v2490_v10 = vmax.f32 %v6044_v22, 0.0 }
 0x28e   : > { %4817 = vmatprep.subr.mxu0 %v2516_v19  ;;  %4930 = vmatprep.subr.mxu1 %v2516_v19 }
 0x28f   : > { %4818 = vmatpush3.msra.mxu0 %v2516_v19  ;;  %4946 = vmatpush3.msra.mxu1 %v2516_v19  ;;  %v2459_v19 = vmax.f32 %v5951_v41, 0.0 }
 0x290   : > { %4819 = vmatprep.mubr.f32.mxu0 %v2452_v24  ;;  %4867 = vmatprep.mubr.f32.mxu1 %v2484_v39  ;;  %v2491_v24 = vmax.f32 %v6047_v35, 0.0  ;;  %v2460_v39 = vmax.f32 %v5954_v52, 0.0 }
 0x291   : > { %4820 = vmatmul.mubr.f32.vlgmr.msra.gmra.mxu0 %v2453_v55  ;;  %4868 = vmatmul.mubr.f32.vlgmr.msra.gmra.mxu1 %v2485_v62  ;;  %v2492_v55 = vmax.f32 %v6050_v51, 0.0  ;;  %v2461_v62 = vmax.f32 %v5957_v60, 0.0 }
 0x292   : > { %4822 = vmatprep.mubr.f32.mxu0 %v2454_v29  ;;  %4870 = vmatprep.mubr.f32.mxu1 %v2486_v15  ;;  %v2493_v29 = vmax.f32 %v6053_v3, 0.0  ;;  %v2462_v15 = vmax.f32 %v5960_v6, 0.0 }
 0x295   : > { %4823 = vmatmul.mubr.f32.gmra.mxu0 %v2455_v40  ;;  %4871 = vmatmul.mubr.f32.gmra.mxu1 %v2487_v43  ;;  %v2494_v40 = vmax.f32 %v6056_v17, 0.0  ;;  %v2463_v43 = vmax.f32 %v5963_v14, 0.0 }
 0x296   : > { %4825 = vmatprep.mubr.f32.mxu0 %v2456_v33  ;;  %4873 = vmatprep.mubr.f32.mxu1 %v2488_v27  ;;  %v2495_v33 = vmax.f32 %v6059_v38, 0.0  ;;  %v2464_v27 = vmax.f32 %v5966_v23, 0.0 }
 0x299   : > { %4826 = vmatmul.mubr.f32.gmra.mxu0 %v2457_v63  ;;  %4874 = vmatmul.mubr.f32.gmra.mxu1 %v2489_v11  ;;  %v2496_v63 = vmax.f32 %v6062_v56, 0.0  ;;  %v2465_v11 = vmax.f32 %v5969_v30, 0.0 }
 0x29a   : > { %4828 = vmatprep.mubr.f32.mxu0 %v2458_v59  ;;  %4876 = vmatprep.mubr.f32.mxu1 %v2490_v10  ;;  %v2497_v59 = vmax.f32 %v6065_v13, 0.0  ;;  %v2466_v10 = vmax.f32 %v5972_v37, 0.0 }
 0x29d   : > { %4829 = vmatmul.mubr.f32.gmra.mxu0 %v2459_v19  ;;  %4877 = vmatmul.mubr.f32.gmra.mxu1 %v2491_v24  ;;  %v2498_v19 = vmax.f32 %v6068_v31, 0.0  ;;  %v2467_v24 = vmax.f32 %v5975_v45, 0.0 }
 0x29e   : > { %4831 = vmatprep.mubr.f32.mxu0 %v2460_v39  ;;  %4879 = vmatprep.mubr.f32.mxu1 %v2492_v55  ;;  %v2499_v39 = vmax.f32 %v6071_v54, 0.0  ;;  %v2468_v55 = vmax.f32 %v5978_v53, 0.0 }
 0x2a1   : > { %4832 = vmatmul.mubr.f32.gmra.mxu0 %v2461_v62  ;;  %4880 = vmatmul.mubr.f32.gmra.mxu1 %v2493_v29  ;;  %v2500_v62 = vmax.f32 %v6074_v16, 0.0  ;;  %v2469_v29 = vmax.f32 %v5981_v61, 0.0 }
 0x2a2   : > { %4834 = vmatprep.mubr.f32.mxu0 %v2462_v15  ;;  %4882 = vmatprep.mubr.f32.mxu1 %v2494_v40  ;;  %v2501_v15 = vmax.f32 %v6077_v42, 0.0  ;;  %v2470_v40 = vmax.f32 %v5984_v4, 0.0 }
 0x2a5   : > { %4835 = vmatmul.mubr.f32.gmra.mxu0 %v2463_v43  ;;  %4883 = vmatmul.mubr.f32.gmra.mxu1 %v2495_v33  ;;  %v2502_v43 = vmax.f32 %v6080_v1, 0.0  ;;  %v2471_v33 = vmax.f32 %v5987_v12, 0.0 }
 0x2a6   : > { %4837 = vmatprep.mubr.f32.mxu0 %v2464_v27  ;;  %4885 = vmatprep.mubr.f32.mxu1 %v2496_v63  ;;  %v2503_v27 = vmax.f32 %v6083_v26, 0.0  ;;  %v2472_v63 = vmax.f32 %v5990_v20, 0.0 }
 0x2a9   : > { %4838 = vmatmul.mubr.f32.gmra.mxu0 %v2465_v11  ;;  %4886 = vmatmul.mubr.f32.gmra.mxu1 %v2497_v59  ;;  %v2504_v11 = vmax.f32 %v6086_v47, 0.0  ;;  %v2473_v59 = vmax.f32 %v5993_v28, 0.0 }
 0x2aa   : > { %4840 = vmatprep.mubr.f32.mxu0 %v2466_v10  ;;  %4888 = vmatprep.mubr.f32.mxu1 %v2498_v19  ;;  %v2505_v10 = vmax.f32 %v6089_v5, 0.0  ;;  %v2474_v19 = vmax.f32 %v5996_v36, 0.0  ;;  %v7169_v5 = vld [vmem:[#allocation28_spill] sm:$0xff] }
 0x2ab   : > { %v2509_v47 = vmax.f32 %v7169_v5, 0.0  ;;  %v7175_v5 = vld [vmem:[#allocation20_spill] sm:$0xff] }
 0x2ad   : > { %4841 = vmatmul.mubr.f32.gmra.mxu0 %v2467_v24  ;;  %4889 = vmatmul.mubr.f32.gmra.mxu1 %v2499_v39  ;;  %v7163_v24 = vld [vmem:[#allocation25_spill] sm:$0xff] }
 0x2ae   : > { %4843 = vmatprep.mubr.f32.mxu0 %v2468_v55  ;;  %4891 = vmatprep.mubr.f32.mxu1 %v2500_v62  ;;  %v2506_v39 = vmax.f32 %v7163_v24, 0.0  ;;  %v7164_v55 = vld [vmem:[#allocation14_spill] sm:$0xff]  ;;  %v7171_v24 = vld [vmem:[#allocation29_spill] sm:$0xff] }
 0x2af   : > { %v2475_v62 = vmax.f32 %v7164_v55, 0.0  ;;  %v2510_v55 = vmax.f32 %v7171_v24, 0.0  ;;  %v2515_v24 = vmax.f32 %v6113_v46, 0.0 }
 0x2b1   : > { %4844 = vmatmul.mubr.f32.gmra.mxu0 %v2469_v29  ;;  %4892 = vmatmul.mubr.f32.gmra.mxu1 %v2501_v15  ;;  %v7165_v29 = vld [vmem:[#allocation26_spill] sm:$0xff] }
 0x2b2   : > { %4846 = vmatprep.mubr.f32.mxu0 %v2470_v40  ;;  %4894 = vmatprep.mubr.f32.mxu1 %v2502_v43  ;;  %v2507_v15 = vmax.f32 %v7165_v29, 0.0  ;;  %v7166_v40 = vld [vmem:[#allocation15_spill] sm:$0xff]  ;;  %v7173_v29 = vld [vmem:[#allocation30_spill] sm:$0xff] }
 0x2b3   : > { %v2476_v43 = vmax.f32 %v7166_v40, 0.0  ;;  %v2511_v40 = vmax.f32 %v7173_v29, 0.0 }
 0x2b5   : > { %4847 = vmatmul.mubr.f32.gmra.mxu0 %v2471_v33  ;;  %4895 = vmatmul.mubr.f32.gmra.mxu1 %v2503_v27  ;;  %v7167_v33 = vld [vmem:[#allocation27_spill] sm:$0xff] }
 0x2b6   : > { %4849 = vmatprep.mubr.f32.mxu0 %v2472_v63  ;;  %4897 = vmatprep.mubr.f32.mxu1 %v2504_v11  ;;  %v2508_v27 = vmax.f32 %v7167_v33, 0.0  ;;  %v7168_v63 = vld [vmem:[#allocation16_spill] sm:$0xff]  ;;  %v2512_v33 = vmax.f32 %v6107_v48, 0.0 }
 0x2b7   : > { %v2477_v11 = vmax.f32 %v7168_v63, 0.0 }
 0x2b9   : > { %4850 = vmatmul.mubr.f32.gmra.mxu0 %v2473_v59  ;;  %4898 = vmatmul.mubr.f32.gmra.mxu1 %v2505_v10  ;;  %v7170_v59 = vld [vmem:[#allocation17_spill] sm:$0xff] }
 0x2ba   : > { %4852 = vmatprep.mubr.f32.mxu0 %v2474_v19  ;;  %4900 = vmatprep.mubr.f32.mxu1 %v2506_v39  ;;  %v2478_v10 = vmax.f32 %v7170_v59, 0.0  ;;  %v7172_v19 = vld [vmem:[#allocation18_spill] sm:$0xff] }
 0x2bb   : > { %v2479_v39 = vmax.f32 %v7172_v19, 0.0  ;;  %v7177_v59 = vld [vmem:[#allocation22_spill] sm:$0xff] }
 0x2bd   : > { %4853 = vmatmul.mubr.f32.gmra.mxu0 %v2475_v62  ;;  %4901 = vmatmul.mubr.f32.gmra.mxu1 %v2507_v15  ;;  %v7174_v62 = vld [vmem:[#allocation19_spill] sm:$0xff] }
 0x2be   : > { %4855 = vmatprep.mubr.f32.mxu0 %v2476_v43  ;;  %4903 = vmatprep.mubr.f32.mxu1 %v2508_v27  ;;  %v2480_v15 = vmax.f32 %v7174_v62, 0.0  ;;  %v2481_v43 = vmax.f32 %v7175_v5, 0.0  ;;  %v2513_v27 = vmax.f32 %v6109_v49, 0.0 }
 0x2c1   : > { %4856 = vmatmul.mubr.f32.gmra.mxu0 %v2477_v11  ;;  %4904 = vmatmul.mubr.f32.gmra.mxu1 %v2509_v47  ;;  %v7176_v47 = vld [vmem:[#allocation21_spill] sm:$0xff]  ;;  %v2514_v11 = vmax.f32 %v6111_v0, 0.0 }
 0x2c2   : > { %4858 = vmatprep.mubr.f32.mxu0 %v2478_v10  ;;  %4906 = vmatprep.mubr.f32.mxu1 %v2510_v55  ;;  %v2482_v63 = vmax.f32 %v7176_v47, 0.0  ;;  %v2483_v10 = vmax.f32 %v7177_v59, 0.0 }
 0x2c5   : > { %4859 = vmatmul.mubr.f32.gmra.mxu0 %v2479_v39  ;;  %4907 = vmatmul.mubr.f32.gmra.mxu1 %v2511_v40 }
 0x2c6   : > { %4861 = vmatprep.mubr.f32.mxu0 %v2480_v15  ;;  %4909 = vmatprep.mubr.f32.mxu1 %v2512_v33 }
 0x2c9   : > { %4862 = vmatmul.mubr.f32.gmra.mxu0 %v2481_v43  ;;  %4910 = vmatmul.mubr.f32.gmra.mxu1 %v2513_v27 }
 0x2ca   : > { %4864 = vmatprep.mubr.f32.mxu0 %v2482_v63  ;;  %4912 = vmatprep.mubr.f32.mxu1 %v2514_v11 }
 0x2cd   : > { %4865 = vmatmul.mubr.f32.gmra.mxu0 %v2483_v10  ;;  %4913 = vmatmul.mubr.f32.gmra.mxu1 %v2515_v24 }
 0x351   : > { %v4821_v55 = vpop.f32.mrf.mxu0  ;;  %v4869_v19 = vpop.f32.mrf.mxu1 }
 0x353   : > { %v2598_v39 = vpop.f32.mrf.mxu0  ;;  %v2758_v29 = vpop.f32.mrf.mxu1 }
 0x354   : > { %v4519_v40 = vpack.c.bf16 %v4821_v55, %v2598_v39  ;;  %v4599_v62 = vpack.c.bf16 %v4869_v19, %v2758_v29 }
 0x355   : > { %v4824_v15 = vpop.f32.mrf.mxu0  ;;  %v4872_v33 = vpop.f32.mrf.mxu1 }
 0x356   : > { %4520 = vst [vmem:[%s6197_s9] sm:$0xff] %v4519_v40   ;;  %4691 = vst [vmem:[%s6197_s9 + $0x80] sm:$0xff] %v4599_v62  }
 0x357   : > { %v2608_v5 = vpop.f32.mrf.mxu0  ;;  %v2768_v43 = vpop.f32.mrf.mxu1 }
 0x358   : > { %v4524_v27 = vpack.c.bf16 %v4824_v15, %v2608_v5  ;;  %v4604_v47 = vpack.c.bf16 %v4872_v33, %v2768_v43 }
 0x359   : > { %v4827_v63 = vpop.f32.mrf.mxu0  ;;  %v4875_v11 = vpop.f32.mrf.mxu1 }
 0x35a   : > { %4676 = vst [vmem:[%s6197_s9 + $0x8] sm:$0xff] %v4524_v27   ;;  %4692 = vst [vmem:[%s6197_s9 + $0x88] sm:$0xff] %v4604_v47  }
 0x35b   : > { %v2618_v59 = vpop.f32.mrf.mxu0  ;;  %v2778_v10 = vpop.f32.mrf.mxu1 }
 0x35c   : > { %v4529_v24 = vpack.c.bf16 %v4827_v63, %v2618_v59  ;;  %v4609_v55 = vpack.c.bf16 %v4875_v11, %v2778_v10 }
 0x35d   : > { %v4830_v19 = vpop.f32.mrf.mxu0  ;;  %v4878_v39 = vpop.f32.mrf.mxu1 }
 0x35e   : > { %4677 = vst [vmem:[%s6197_s9 + $0x10] sm:$0xff] %v4529_v24   ;;  %4693 = vst [vmem:[%s6197_s9 + $0x90] sm:$0xff] %v4609_v55  }
 0x35f   : > { %v2628_v29 = vpop.f32.mrf.mxu0  ;;  %v2788_v40 = vpop.f32.mrf.mxu1 }
 0x360   : > { %v4534_v62 = vpack.c.bf16 %v4830_v19, %v2628_v29  ;;  %v4614_v15 = vpack.c.bf16 %v4878_v39, %v2788_v40 }
 0x361   : > { %v4833_v33 = vpop.f32.mrf.mxu0  ;;  %v4881_v5 = vpop.f32.mrf.mxu1 }
 0x362   : > { %4678 = vst [vmem:[%s6197_s9 + $0x18] sm:$0xff] %v4534_v62   ;;  %4694 = vst [vmem:[%s6197_s9 + $0x98] sm:$0xff] %v4614_v15  }
 0x363   : > { %v2638_v43 = vpop.f32.mrf.mxu0  ;;  %v2798_v27 = vpop.f32.mrf.mxu1 }
 0x364   : > { %v4539_v47 = vpack.c.bf16 %v4833_v33, %v2638_v43  ;;  %v4619_v63 = vpack.c.bf16 %v4881_v5, %v2798_v27 }
 0x365   : > { %v4836_v11 = vpop.f32.mrf.mxu0  ;;  %v4884_v59 = vpop.f32.mrf.mxu1 }
 0x366   : > { %4679 = vst [vmem:[%s6197_s9 + $0x20] sm:$0xff] %v4539_v47   ;;  %4695 = vst [vmem:[%s6197_s9 + $0xa0] sm:$0xff] %v4619_v63  }
 0x367   : > { %v2648_v10 = vpop.f32.mrf.mxu0  ;;  %v2808_v24 = vpop.f32.mrf.mxu1 }
 0x368   : > { %v4544_v55 = vpack.c.bf16 %v4836_v11, %v2648_v10  ;;  %v4624_v19 = vpack.c.bf16 %v4884_v59, %v2808_v24 }
 0x369   : > { %v4839_v39 = vpop.f32.mrf.mxu0  ;;  %v4887_v29 = vpop.f32.mrf.mxu1 }
 0x36a   : > { %4680 = vst [vmem:[%s6197_s9 + $0x28] sm:$0xff] %v4544_v55   ;;  %4696 = vst [vmem:[%s6197_s9 + $0xa8] sm:$0xff] %v4624_v19  }
 0x36b   : > { %v2658_v40 = vpop.f32.mrf.mxu0  ;;  %v2818_v62 = vpop.f32.mrf.mxu1 }
 0x36c   : > { %v4549_v15 = vpack.c.bf16 %v4839_v39, %v2658_v40  ;;  %v4629_v33 = vpack.c.bf16 %v4887_v29, %v2818_v62 }
 0x36d   : > { %v4842_v5 = vpop.f32.mrf.mxu0  ;;  %v4890_v43 = vpop.f32.mrf.mxu1 }
 0x36e   : > { %4681 = vst [vmem:[%s6197_s9 + $0x30] sm:$0xff] %v4549_v15   ;;  %4697 = vst [vmem:[%s6197_s9 + $0xb0] sm:$0xff] %v4629_v33  }
 0x36f   : > { %v2668_v27 = vpop.f32.mrf.mxu0  ;;  %v2828_v47 = vpop.f32.mrf.mxu1 }
 0x370   : > { %v4554_v63 = vpack.c.bf16 %v4842_v5, %v2668_v27  ;;  %v4634_v11 = vpack.c.bf16 %v4890_v43, %v2828_v47 }
 0x371   : > { %v4845_v59 = vpop.f32.mrf.mxu0  ;;  %v4893_v10 = vpop.f32.mrf.mxu1 }
 0x372   : > { %4682 = vst [vmem:[%s6197_s9 + $0x38] sm:$0xff] %v4554_v63   ;;  %4698 = vst [vmem:[%s6197_s9 + $0xb8] sm:$0xff] %v4634_v11  }
 0x373   : > { %v2678_v24 = vpop.f32.mrf.mxu0  ;;  %v2838_v55 = vpop.f32.mrf.mxu1 }
 0x374   : > { %v4559_v19 = vpack.c.bf16 %v4845_v59, %v2678_v24  ;;  %v4639_v39 = vpack.c.bf16 %v4893_v10, %v2838_v55 }
 0x375   : > { %v4848_v29 = vpop.f32.mrf.mxu0  ;;  %v4896_v40 = vpop.f32.mrf.mxu1 }
 0x376   : > { %4683 = vst [vmem:[%s6197_s9 + $0x40] sm:$0xff] %v4559_v19   ;;  %4699 = vst [vmem:[%s6197_s9 + $0xc0] sm:$0xff] %v4639_v39  }
 0x377   : > { %v2688_v62 = vpop.f32.mrf.mxu0  ;;  %v2848_v15 = vpop.f32.mrf.mxu1 }
 0x378   : > { %v4564_v33 = vpack.c.bf16 %v4848_v29, %v2688_v62  ;;  %v4644_v5 = vpack.c.bf16 %v4896_v40, %v2848_v15 }
 0x379   : > { %v4851_v43 = vpop.f32.mrf.mxu0  ;;  %v4899_v27 = vpop.f32.mrf.mxu1 }
 0x37a   : > { %4684 = vst [vmem:[%s6197_s9 + $0x48] sm:$0xff] %v4564_v33   ;;  %4700 = vst [vmem:[%s6197_s9 + $0xc8] sm:$0xff] %v4644_v5  }
 0x37b   : > { %v2698_v47 = vpop.f32.mrf.mxu0  ;;  %v2858_v63 = vpop.f32.mrf.mxu1 }
 0x37c   : > { %v4569_v11 = vpack.c.bf16 %v4851_v43, %v2698_v47  ;;  %v4649_v59 = vpack.c.bf16 %v4899_v27, %v2858_v63 }
 0x37d   : > { %v4854_v10 = vpop.f32.mrf.mxu0  ;;  %v4902_v24 = vpop.f32.mrf.mxu1 }
 0x37e   : > { %4685 = vst [vmem:[%s6197_s9 + $0x50] sm:$0xff] %v4569_v11   ;;  %4701 = vst [vmem:[%s6197_s9 + $0xd0] sm:$0xff] %v4649_v59  }
 0x37f   : > { %v2708_v55 = vpop.f32.mrf.mxu0  ;;  %v2868_v19 = vpop.f32.mrf.mxu1 }
 0x380   : > { %v4574_v39 = vpack.c.bf16 %v4854_v10, %v2708_v55  ;;  %v4654_v29 = vpack.c.bf16 %v4902_v24, %v2868_v19 }
 0x381   : > { %v4857_v40 = vpop.f32.mrf.mxu0  ;;  %v4905_v62 = vpop.f32.mrf.mxu1 }
 0x382   : > { %4686 = vst [vmem:[%s6197_s9 + $0x58] sm:$0xff] %v4574_v39   ;;  %4702 = vst [vmem:[%s6197_s9 + $0xd8] sm:$0xff] %v4654_v29  }
 0x383   : > { %v2718_v15 = vpop.f32.mrf.mxu0  ;;  %v2878_v33 = vpop.f32.mrf.mxu1 }
 0x384   : > { %v4579_v5 = vpack.c.bf16 %v4857_v40, %v2718_v15  ;;  %v4659_v43 = vpack.c.bf16 %v4905_v62, %v2878_v33 }
 0x385   : > { %v4860_v27 = vpop.f32.mrf.mxu0  ;;  %v4908_v47 = vpop.f32.mrf.mxu1 }
 0x386   : > { %4687 = vst [vmem:[%s6197_s9 + $0x60] sm:$0xff] %v4579_v5   ;;  %4703 = vst [vmem:[%s6197_s9 + $0xe0] sm:$0xff] %v4659_v43  }
 0x387   : > { %v2728_v63 = vpop.f32.mrf.mxu0  ;;  %v2888_v11 = vpop.f32.mrf.mxu1 }
 0x388   : > { %v4584_v59 = vpack.c.bf16 %v4860_v27, %v2728_v63  ;;  %v4664_v10 = vpack.c.bf16 %v4908_v47, %v2888_v11 }
 0x389   : > { %v4863_v24 = vpop.f32.mrf.mxu0  ;;  %v4911_v55 = vpop.f32.mrf.mxu1 }
 0x38a   : > { %4688 = vst [vmem:[%s6197_s9 + $0x68] sm:$0xff] %v4584_v59   ;;  %4704 = vst [vmem:[%s6197_s9 + $0xe8] sm:$0xff] %v4664_v10  }
 0x38b   : > { %v2738_v19 = vpop.f32.mrf.mxu0  ;;  %v2898_v39 = vpop.f32.mrf.mxu1 }
 0x38c   : > { %v4589_v29 = vpack.c.bf16 %v4863_v24, %v2738_v19  ;;  %v4669_v40 = vpack.c.bf16 %v4911_v55, %v2898_v39 }
 0x38d   : > { %v4866_v62 = vpop.f32.mrf.mxu0  ;;  %v4914_v15 = vpop.f32.mrf.mxu1 }
 0x38e   : > { %4689 = vst [vmem:[%s6197_s9 + $0x70] sm:$0xff] %v4589_v29   ;;  %4705 = vst [vmem:[%s6197_s9 + $0xf0] sm:$0xff] %v4669_v40  }
 0x38f   : > { %v2748_v33 = vpop.f32.mrf.mxu0  ;;  %v2908_v5 = vpop.f32.mrf.mxu1 }
 0x390   : > { %v4594_v43 = vpack.c.bf16 %v4866_v62, %v2748_v33  ;;  %v4674_v46 = vpack.c.bf16 %v4914_v15, %v2908_v5 }
 0x392   : > { %4690 = vst [vmem:[%s6197_s9 + $0x78] sm:$0xff] %v4594_v43   ;;  %4706 = vst [vmem:[%s6197_s9 + $0xf8] sm:$0xff] %v4674_v46  }
 0x393 PF: > { %p4444_p1 = scmp.ne.s32.totalorder %s5679_s18, 4 }
 0x395   : > { %3246 = sbr.rel (%p4444_p1) target bundleno = 1371 (0x55b), region = 68 }
 0x39a   : > { %v3247_v27 = vlaneseq  ;;  %v7205_v24 = vld [vmem:[#allocation16_spill] sm:$0xff]  ;;  %v7209_v39 = vld [vmem:[#allocation18_spill] sm:$0xff]  ;;  %v7211_v40 = vld [vmem:[#allocation19_spill] sm:$0xff] }
 0x39b   : > { %v7213_v15 = vld [vmem:[#allocation20_spill] sm:$0xff]  ;;  %v7215_v5 = vld [vmem:[#allocation21_spill] sm:$0xff] }
 0x39c   : > { %v6232_v47 = vand.u32 127, %v3247_v27  ;;  %v7217_v27 = vld [vmem:[#allocation22_spill] sm:$0xff] }
 0x39e   : > { %vm3249_vm0 = vcmp.lt.s32.totalorder %v6232_v47, 7 }
 0x39f   : > { %v6238_v63 = vsel %vm3249_vm0, %v5930_v50, -1e+30  ;;  %v6243_v11 = vsel %vm3249_vm0, %v5936_v2, -1e+30  ;;  %v6250_v46 = vsel %vm3249_vm0, %v5933_v57, -1e+30 }
 0x3a0   : > { %7178 = vst [vmem:[#allocation32_spill] sm:$0xff] %v6238_v63  ;;  %7179 = vst [vmem:[#allocation33_spill] sm:$0xff] %v6243_v11  ;;  %3314 = vmax.xlane.f32.xlu0 %v6238_v63  ;;  %3318 = vmax.xlane.f32.xlu1 %v6243_v11  ;;  %v6255_v59 = vsel %vm3249_vm0, %v5939_v9, -1e+30  ;;  %v6262_v50 = vsel %vm3249_vm0, %v5942_v18, -1e+30 }
 0x3a1   : > { %7180 = vst [vmem:[#allocation34_spill] sm:$0xff] %v6250_v46  ;;  %7181 = vst [vmem:[#allocation35_spill] sm:$0xff] %v6255_v59  ;;  %v6267_v2 = vsel %vm3249_vm0, %v5945_v25, -1e+30  ;;  %v6274_v57 = vsel %vm3249_vm0, %v5948_v34, -1e+30 }
 0x3a2   : > { %7182 = vst [vmem:[#allocation36_spill] sm:$0xff] %v6262_v50  ;;  %7183 = vst [vmem:[#allocation37_spill] sm:$0xff] %v6267_v2  ;;  %v6279_v9 = vsel %vm3249_vm0, %v5951_v41, -1e+30  ;;  %v6286_v18 = vsel %vm3249_vm0, %v5954_v52, -1e+30 }
 0x3a3   : > { %7184 = vst [vmem:[#allocation38_spill] sm:$0xff] %v6274_v57  ;;  %7185 = vst [vmem:[#allocation39_spill] sm:$0xff] %v6279_v9  ;;  %v6291_v25 = vsel %vm3249_vm0, %v5957_v60, -1e+30  ;;  %v6298_v34 = vsel %vm3249_vm0, %v5960_v6, -1e+30 }
 0x3a4   : > { %3316 = vmax.xlane.f32.xlu0 %v6250_v46  ;;  %3320 = vmax.xlane.f32.xlu1 %v6255_v59  ;;  %7186 = vst [vmem:[#allocation40_spill] sm:$0xff] %v6286_v18  ;;  %7187 = vst [vmem:[#allocation41_spill] sm:$0xff] %v6291_v25  ;;  %v6303_v41 = vsel %vm3249_vm0, %v5963_v14, -1e+30  ;;  %v6310_v52 = vsel %vm3249_vm0, %v5966_v23, -1e+30 }
 0x3a5   : > { %7188 = vst [vmem:[#allocation42_spill] sm:$0xff] %v6298_v34  ;;  %7189 = vst [vmem:[#allocation43_spill] sm:$0xff] %v6303_v41  ;;  %v6315_v60 = vsel %vm3249_vm0, %v5969_v30, -1e+30  ;;  %v6322_v6 = vsel %vm3249_vm0, %v5972_v37, -1e+30 }
 0x3a6   : > { %7190 = vst [vmem:[#allocation44_spill] sm:$0xff] %v6310_v52  ;;  %7191 = vst [vmem:[#allocation45_spill] sm:$0xff] %v6315_v60  ;;  %v6327_v14 = vsel %vm3249_vm0, %v5975_v45, -1e+30  ;;  %v6334_v23 = vsel %vm3249_vm0, %v5978_v53, -1e+30 }
 0x3a7   : > { %7192 = vst [vmem:[#allocation46_spill] sm:$0xff] %v6322_v6  ;;  %7193 = vst [vmem:[#allocation47_spill] sm:$0xff] %v6327_v14  ;;  %v6339_v30 = vsel %vm3249_vm0, %v5981_v61, -1e+30  ;;  %v6346_v37 = vsel %vm3249_vm0, %v5984_v4, -1e+30 }
 0x3a8   : > { %3322 = vmax.xlane.f32.xlu0 %v6262_v50  ;;  %3324 = vmax.xlane.f32.xlu1 %v6267_v2  ;;  %7194 = vst [vmem:[#allocation48_spill] sm:$0xff] %v6334_v23  ;;  %7195 = vst [vmem:[#allocation49_spill] sm:$0xff] %v6339_v30  ;;  %v6351_v45 = vsel %vm3249_vm0, %v5987_v12, -1e+30  ;;  %v6358_v53 = vsel %vm3249_vm0, %v5990_v20, -1e+30 }
 0x3a9   : > { %7196 = vst [vmem:[#allocation50_spill] sm:$0xff] %v6346_v37  ;;  %7197 = vst [vmem:[#allocation51_spill] sm:$0xff] %v6351_v45  ;;  %v6363_v61 = vsel %vm3249_vm0, %v5993_v28, -1e+30  ;;  %v6370_v4 = vsel %vm3249_vm0, %v5996_v36, -1e+30 }
 0x3aa   : > { %7198 = vst [vmem:[#allocation52_spill] sm:$0xff] %v6358_v53  ;;  %7199 = vst [vmem:[#allocation53_spill] sm:$0xff] %v6363_v61  ;;  %v7201_v12 = vld [vmem:[#allocation14_spill] sm:$0xff]  ;;  %v7203_v20 = vld [vmem:[#allocation15_spill] sm:$0xff]  ;;  %v6387_v55 = vsel %vm3249_vm0, %v7205_v24, -1e+30 }
 0x3ab   : > { %7200 = vst [vmem:[#allocation54_spill] sm:$0xff] %v6370_v4  ;;  %v6375_v10 = vsel %vm3249_vm0, %v7201_v12, -1e+30  ;;  %v6382_v28 = vsel %vm3249_vm0, %v7203_v20, -1e+30  ;;  %7206 = vst [vmem:[#allocation57_spill] sm:$0xff] %v6387_v55 }
 0x3ac   : > { %3326 = vmax.xlane.f32.xlu0 %v6274_v57  ;;  %3328 = vmax.xlane.f32.xlu1 %v6279_v9  ;;  %7202 = vst [vmem:[#allocation55_spill] sm:$0xff] %v6375_v10  ;;  %7204 = vst [vmem:[#allocation56_spill] sm:$0xff] %v6382_v28  ;;  %v7207_v36 = vld [vmem:[#allocation17_spill] sm:$0xff]  ;;  %v6399_v29 = vsel %vm3249_vm0, %v7209_v39, -1e+30 }
 0x3ad   : > { %v6394_v19 = vsel %vm3249_vm0, %v7207_v36, -1e+30  ;;  %7210 = vst [vmem:[#allocation59_spill] sm:$0xff] %v6399_v29  ;;  %v6406_v62 = vsel %vm3249_vm0, %v7211_v40, -1e+30  ;;  %v7241_v40 = vld [vmem:[#allocation24_spill] sm:$0xff] }
 0x3ae   : > { %7208 = vst [vmem:[#allocation58_spill] sm:$0xff] %v6394_v19  ;;  %7212 = vst [vmem:[#allocation60_spill] sm:$0xff] %v6406_v62  ;;  %v6411_v33 = vsel %vm3249_vm0, %v7213_v15, -1e+30  ;;  %v6418_v43 = vsel %vm3249_vm0, %v7215_v5, -1e+30 }
 0x3af   : > { %7214 = vst [vmem:[#allocation61_spill] sm:$0xff] %v6411_v33  ;;  %7216 = vst [vmem:[#allocation62_spill] sm:$0xff] %v6418_v43  ;;  %v6423_v12 = vsel %vm3249_vm0, %v7217_v27, -1e+30  ;;  %v6430_v20 = vsel %vm3249_vm0, %v6026_v8, -1e+30 }
 0x3b0   : > { %3330 = vmax.xlane.f32.xlu0 %v6286_v18  ;;  %3332 = vmax.xlane.f32.xlu1 %v6291_v25  ;;  %7218 = vst [vmem:[#allocation63_spill] sm:$0xff] %v6423_v12  ;;  %7219 = vst [vmem:[#allocation64_spill] sm:$0xff] %v6430_v20  ;;  %v6435_v24 = vsel %vm3249_vm0, %v6029_v21, -1e+30  ;;  %v6442_v36 = vsel %vm3249_vm0, %v6032_v32, -1e+30 }
 0x3b1   : > { %7220 = vst [vmem:[#allocation65_spill] sm:$0xff] %v6435_v24  ;;  %7221 = vst [vmem:[#allocation66_spill] sm:$0xff] %v6442_v36  ;;  %v6447_v39 = vsel %vm3249_vm0, %v6035_v44, -1e+30  ;;  %v6454_v8 = vsel %vm3249_vm0, %v6038_v58, -1e+30 }
 0x3b2   : > { %7222 = vst [vmem:[#allocation67_spill] sm:$0xff] %v6447_v39  ;;  %7223 = vst [vmem:[#allocation68_spill] sm:$0xff] %v6454_v8  ;;  %v6459_v21 = vsel %vm3249_vm0, %v6041_v7, -1e+30  ;;  %v6466_v32 = vsel %vm3249_vm0, %v6044_v22, -1e+30 }
 0x3b3   : > { %7224 = vst [vmem:[#allocation69_spill] sm:$0xff] %v6459_v21  ;;  %7225 = vst [vmem:[#allocation70_spill] sm:$0xff] %v6466_v32  ;;  %v6471_v44 = vsel %vm3249_vm0, %v6047_v35, -1e+30  ;;  %v6478_v58 = vsel %vm3249_vm0, %v6050_v51, -1e+30 }
 0x3b4   : > { %3334 = vmax.xlane.f32.xlu0 %v6298_v34  ;;  %3336 = vmax.xlane.f32.xlu1 %v6303_v41  ;;  %7226 = vst [vmem:[#allocation71_spill] sm:$0xff] %v6471_v44  ;;  %7227 = vst [vmem:[#allocation72_spill] sm:$0xff] %v6478_v58  ;;  %v6483_v7 = vsel %vm3249_vm0, %v6053_v3, -1e+30  ;;  %v6490_v22 = vsel %vm3249_vm0, %v6056_v17, -1e+30 }
 0x3b5   : > { %7228 = vst [vmem:[#allocation73_spill] sm:$0xff] %v6483_v7  ;;  %7229 = vst [vmem:[#allocation74_spill] sm:$0xff] %v6490_v22  ;;  %v6495_v35 = vsel %vm3249_vm0, %v6059_v38, -1e+30  ;;  %v6502_v51 = vsel %vm3249_vm0, %v6062_v56, -1e+30 }
 0x3b6   : > { %7230 = vst [vmem:[#allocation75_spill] sm:$0xff] %v6495_v35  ;;  %7231 = vst [vmem:[#allocation76_spill] sm:$0xff] %v6502_v51  ;;  %v6507_v3 = vsel %vm3249_vm0, %v6065_v13, -1e+30  ;;  %v6514_v17 = vsel %vm3249_vm0, %v6068_v31, -1e+30 }
 0x3b7   : > { %7232 = vst [vmem:[#allocation77_spill] sm:$0xff] %v6507_v3  ;;  %7233 = vst [vmem:[#allocation78_spill] sm:$0xff] %v6514_v17  ;;  %v6519_v38 = vsel %vm3249_vm0, %v6071_v54, -1e+30  ;;  %v6526_v56 = vsel %vm3249_vm0, %v6074_v16, -1e+30 }
 0x3b8   : > { %3338 = vmax.xlane.f32.xlu0 %v6310_v52  ;;  %3340 = vmax.xlane.f32.xlu1 %v6315_v60  ;;  %7234 = vst [vmem:[#allocation79_spill] sm:$0xff] %v6519_v38  ;;  %7235 = vst [vmem:[#allocation80_spill] sm:$0xff] %v6526_v56  ;;  %v6531_v13 = vsel %vm3249_vm0, %v6077_v42, -1e+30  ;;  %v6538_v31 = vsel %vm3249_vm0, %v6080_v1, -1e+30 }
 0x3b9   : > { %7236 = vst [vmem:[#allocation81_spill] sm:$0xff] %v6531_v13  ;;  %7237 = vst [vmem:[#allocation82_spill] sm:$0xff] %v6538_v31  ;;  %v6543_v54 = vsel %vm3249_vm0, %v6083_v26, -1e+30  ;;  %v7239_v16 = vld [vmem:[#allocation23_spill] sm:$0xff]  ;;  %v7243_v1 = vld [vmem:[#allocation25_spill] sm:$0xff] }
 0x3ba   : > { %7238 = vst [vmem:[#allocation83_spill] sm:$0xff] %v6543_v54  ;;  %v6550_v42 = vsel %vm3249_vm0, %v7239_v16, -1e+30  ;;  %v6555_v15 = vsel %vm3249_vm0, %v7241_v40, -1e+30  ;;  %v7245_v5 = vld [vmem:[#allocation26_spill] sm:$0xff] }
 0x3bb   : > { %7240 = vst [vmem:[#allocation84_spill] sm:$0xff] %v6550_v42  ;;  %7242 = vst [vmem:[#allocation85_spill] sm:$0xff] %v6555_v15  ;;  %v6562_v26 = vsel %vm3249_vm0, %v7243_v1, -1e+30  ;;  %v6567_v27 = vsel %vm3249_vm0, %v7245_v5, -1e+30 }
 0x3bc   : > { %3342 = vmax.xlane.f32.xlu0 %v6322_v6  ;;  %3344 = vmax.xlane.f32.xlu1 %v6327_v14  ;;  %7244 = vst [vmem:[#allocation86_spill] sm:$0xff] %v6562_v26  ;;  %7246 = vst [vmem:[#allocation87_spill] sm:$0xff] %v6567_v27  ;;  %v7247_v16 = vld [vmem:[#allocation27_spill] sm:$0xff]  ;;  %v7251_v1 = vld [vmem:[#allocation29_spill] sm:$0xff] }
 0x3bd   : > { %v6574_v40 = vsel %vm3249_vm0, %v7247_v16, -1e+30  ;;  %v6586_v5 = vsel %vm3249_vm0, %v7251_v1, -1e+30  ;;  %v6603_v16 = vsel %vm3249_vm0, %v6109_v49, -1e+30 }
 0x3be   : > { %7248 = vst [vmem:[#allocation88_spill] sm:$0xff] %v6574_v40  ;;  %7252 = vst [vmem:[#allocation90_spill] sm:$0xff] %v6586_v5  ;;  %v7258_v1 = vld [vmem:[#allocation31_spill] sm:$0xff] }
 0x3bf   : > { %7256 = vst [vmem:[#allocation93_spill] sm:$0xff] %v6603_v16 }
 0x3c0   : > { %3346 = vmax.xlane.f32.xlu0 %v6334_v23  ;;  %3348 = vmax.xlane.f32.xlu1 %v6339_v30 }
 0x3c4   : > { %3350 = vmax.xlane.f32.xlu0 %v6346_v37  ;;  %3352 = vmax.xlane.f32.xlu1 %v6351_v45 }
 0x3c8   : > { %3354 = vmax.xlane.f32.xlu0 %v6358_v53  ;;  %3356 = vmax.xlane.f32.xlu1 %v6363_v61 }
 0x3cc   : > { %3358 = vmax.xlane.f32.xlu0 %v6370_v4  ;;  %3360 = vmax.xlane.f32.xlu1 %v6375_v10 }
 0x3d0   : > { %3362 = vmax.xlane.f32.xlu0 %v6382_v28  ;;  %3364 = vmax.xlane.f32.xlu1 %v6387_v55 }
 0x3d4   : > { %3366 = vmax.xlane.f32.xlu0 %v6394_v19  ;;  %3368 = vmax.xlane.f32.xlu1 %v6399_v29 }
 0x3d8   : > { %3370 = vmax.xlane.f32.xlu0 %v6406_v62  ;;  %3372 = vmax.xlane.f32.xlu1 %v6411_v33 }
 0x3dc   : > { %3374 = vmax.xlane.f32.xlu0 %v6418_v43  ;;  %3376 = vmax.xlane.f32.xlu1 %v6423_v12 }
 0x3e0   : > { %3378 = vmax.xlane.f32.xlu0 %v6430_v20  ;;  %3380 = vmax.xlane.f32.xlu1 %v6435_v24 }
 0x3e4   : > { %3382 = vmax.xlane.f32.xlu0 %v6442_v36  ;;  %3384 = vmax.xlane.f32.xlu1 %v6447_v39 }
 0x3e8   : > { %3386 = vmax.xlane.f32.xlu0 %v6454_v8  ;;  %3388 = vmax.xlane.f32.xlu1 %v6459_v21 }
 0x3ec   : > { %3390 = vmax.xlane.f32.xlu0 %v6466_v32  ;;  %3392 = vmax.xlane.f32.xlu1 %v6471_v44 }
 0x3f0   : > { %3394 = vmax.xlane.f32.xlu0 %v6478_v58  ;;  %3396 = vmax.xlane.f32.xlu1 %v6483_v7 }
 0x3f4   : > { %3398 = vmax.xlane.f32.xlu0 %v6490_v22  ;;  %3400 = vmax.xlane.f32.xlu1 %v6495_v35 }
 0x3f8   : > { %3402 = vmax.xlane.f32.xlu0 %v6502_v51  ;;  %3404 = vmax.xlane.f32.xlu1 %v6507_v3 }
 0x3fc   : > { %3406 = vmax.xlane.f32.xlu0 %v6514_v17  ;;  %3408 = vmax.xlane.f32.xlu1 %v6519_v38 }
 0x400   : > { %3410 = vmax.xlane.f32.xlu0 %v6526_v56  ;;  %3412 = vmax.xlane.f32.xlu1 %v6531_v13 }
 0x404   : > { %3414 = vmax.xlane.f32.xlu0 %v6538_v31  ;;  %3416 = vmax.xlane.f32.xlu1 %v6543_v54 }
 0x408   : > { %3418 = vmax.xlane.f32.xlu0 %v6550_v42  ;;  %3420 = vmax.xlane.f32.xlu1 %v6555_v15  ;;  %v7249_v15 = vld [vmem:[#allocation28_spill] sm:$0xff] }
 0x409   : > { %v6579_v42 = vsel %vm3249_vm0, %v7249_v15, -1e+30  ;;  %v6598_v15 = vsel %vm3249_vm0, %v6107_v48, -1e+30 }
 0x40a   : > { %7250 = vst [vmem:[#allocation89_spill] sm:$0xff] %v6579_v42  ;;  %7255 = vst [vmem:[#allocation92_spill] sm:$0xff] %v6598_v15 }
 0x40c   : > { %3422 = vmax.xlane.f32.xlu0 %v6562_v26  ;;  %3424 = vmax.xlane.f32.xlu1 %v6567_v27  ;;  %v7253_v27 = vld [vmem:[#allocation30_spill] sm:$0xff] }
 0x40d   : > { %v6591_v26 = vsel %vm3249_vm0, %v7253_v27, -1e+30  ;;  %v6610_v27 = vsel %vm3249_vm0, %v6111_v0, -1e+30 }
 0x40e   : > { %7254 = vst [vmem:[#allocation91_spill] sm:$0xff] %v6591_v26  ;;  %7257 = vst [vmem:[#allocation94_spill] sm:$0xff] %v6610_v27 }
 0x410   : > { %3426 = vmax.xlane.f32.xlu0 %v6574_v40  ;;  %3428 = vmax.xlane.f32.xlu1 %v6579_v42 }
 0x414   : > { %3430 = vmax.xlane.f32.xlu0 %v6586_v5  ;;  %3432 = vmax.xlane.f32.xlu1 %v6591_v26  ;;  %v6615_v26 = vsel %vm3249_vm0, %v7258_v1, -1e+30 }
 0x415   : > { %7259 = vst [vmem:[#allocation95_spill] sm:$0xff] %v6615_v26 }
 0x418   : > { %3434 = vmax.xlane.f32.xlu0 %v6598_v15  ;;  %3436 = vmax.xlane.f32.xlu1 %v6603_v16 }
 0x41c   : > { %3438 = vmax.xlane.f32.xlu0 %v6610_v27  ;;  %3440 = vmax.xlane.f32.xlu1 %v6615_v26 }
 0x429   : > { %v6619_v48 = vpop.xlane.xlu0 %3314  ;;  %v6621_v49 = vpop.xlane.xlu1 %3318 }
 0x42a   : > { %7260 = vst [vmem:[#allocation96_spill] sm:$0xff] %v6619_v48  ;;  %v3442_v16 = vsub.f32 %v6238_v63, %v6619_v48  ;;  %v3444_v0 = vsub.f32 %v6243_v11, %v6621_v49 }
 0x42c   : > { %v3506_v15 = vmul.f32 1.442695, %v3442_v16  ;;  %v3510_v5 = vmul.f32 1.442695, %v3444_v0 }
 0x42d   : > { %v6627_v42 = vpop.xlane.xlu0 %3316  ;;  %v6629_v47 = vpop.xlane.xlu1 %3320 }
 0x42e   : > { %5265 = vpow2.f32 %v3506_v15  ;;  %v3443_v1 = vsub.f32 %v6250_v46, %v6627_v42  ;;  %v3445_v26 = vsub.f32 %v6255_v59, %v6629_v47 }
 0x42f   : > { %5267 = vpow2.f32 %v3510_v5 }
 0x430   : > { %v3508_v27 = vmul.f32 1.442695, %v3443_v1  ;;  %v3512_v40 = vmul.f32 1.442695, %v3445_v26 }
 0x431   : > { %v6635_v63 = vpop.xlane.xlu0 %3322  ;;  %v6637_v48 = vpop.xlane.xlu1 %3324 }
 0x432   : > { %5269 = vpow2.f32 %v3508_v27  ;;  %v3446_v16 = vsub.f32 %v6262_v50, %v6635_v63  ;;  %v3447_v15 = vsub.f32 %v6267_v2, %v6637_v48 }
 0x433   : > { %5271 = vpow2.f32 %v3512_v40 }
 0x434   : > { %v3514_v0 = vmul.f32 1.442695, %v3446_v16  ;;  %v3516_v11 = vmul.f32 1.442695, %v3447_v15 }
 0x435   : > { %v6643_v46 = vpop.xlane.xlu0 %3326  ;;  %v6645_v59 = vpop.xlane.xlu1 %3328 }
 0x436   : > { %5273 = vpow2.f32 %v3514_v0  ;;  %v3448_v26 = vsub.f32 %v6274_v57, %v6643_v46  ;;  %v3449_v5 = vsub.f32 %v6279_v9, %v6645_v59 }
 0x437   : > { %5275 = vpow2.f32 %v3516_v11 }
 0x438   : > { %v3518_v27 = vmul.f32 1.442695, %v3448_v26  ;;  %v3520_v1 = vmul.f32 1.442695, %v3449_v5 }
 0x439   : > { %v6651_v50 = vpop.xlane.xlu0 %3330  ;;  %v6653_v2 = vpop.xlane.xlu1 %3332 }
 0x43a   : > { %5277 = vpow2.f32 %v3518_v27  ;;  %v3450_v40 = vsub.f32 %v6286_v18, %v6651_v50  ;;  %v3451_v16 = vsub.f32 %v6291_v25, %v6653_v2 }
 0x43b   : > { %v5266_v15 = vpop.eup %5265  ;;  %5279 = vpow2.f32 %v3520_v1 }
 0x43c   : > { %v3522_v0 = vmul.f32 1.442695, %v3450_v40  ;;  %3634 = vadd.xlane.f32.xlu0 %v5266_v15  ;;  %v3524_v57 = vmul.f32 1.442695, %v3451_v16  ;;  %v5268_v9 = vpop.eup %5267 }
 0x43d   : > { %v6659_v11 = vpop.xlane.xlu0 %3334  ;;  %v6661_v26 = vpop.xlane.xlu1 %3336 }
 0x43e   : > { %7261 = vst [vmem:[#allocation97_spill] sm:$0xff] %v6659_v11  ;;  %5281 = vpow2.f32 %v3522_v0  ;;  %v3452_v5 = vsub.f32 %v6298_v34, %v6659_v11  ;;  %v3453_v27 = vsub.f32 %v6303_v41, %v6661_v26 }
 0x43f   : > { %v5270_v18 = vpop.eup %5269  ;;  %5283 = vpow2.f32 %v3524_v57 }
 0x440   : > { %v3526_v25 = vmul.f32 1.442695, %v3452_v5  ;;  %3638 = vadd.xlane.f32.xlu0 %v5268_v9  ;;  %3636 = vadd.xlane.f32.xlu1 %v5270_v18  ;;  %v3528_v1 = vmul.f32 1.442695, %v3453_v27  ;;  %v5272_v40 = vpop.eup %5271 }
 0x441   : > { %v6667_v16 = vpop.xlane.xlu0 %3338  ;;  %v6669_v15 = vpop.xlane.xlu1 %3340 }
 0x442   : > { %5285 = vpow2.f32 %v3526_v25  ;;  %v3454_v0 = vsub.f32 %v6310_v52, %v6667_v16  ;;  %v3455_v34 = vsub.f32 %v6315_v60, %v6669_v15 }
 0x443   : > { %v5274_v11 = vpop.eup %5273  ;;  %5287 = vpow2.f32 %v3528_v1 }
 0x444   : > { %v3530_v41 = vmul.f32 1.442695, %v3454_v0  ;;  %3640 = vadd.xlane.f32.xlu1 %v5272_v40  ;;  %3642 = vadd.xlane.f32.xlu0 %v5274_v11  ;;  %v3532_v57 = vmul.f32 1.442695, %v3455_v34  ;;  %v5276_v9 = vpop.eup %5275 }
 0x445   : > { %v6675_v18 = vpop.xlane.xlu0 %3342  ;;  %v6677_v5 = vpop.xlane.xlu1 %3344 }
 0x446   : > { %5289 = vpow2.f32 %v3530_v41  ;;  %v3456_v25 = vsub.f32 %v6322_v6, %v6675_v18  ;;  %v3457_v27 = vsub.f32 %v6327_v14, %v6677_v5 }
 0x447   : > { %v5278_v52 = vpop.eup %5277  ;;  %5291 = vpow2.f32 %v3532_v57 }
 0x448   : > { %v3534_v60 = vmul.f32 1.442695, %v3456_v25  ;;  %3644 = vadd.xlane.f32.xlu1 %v5276_v9  ;;  %3646 = vadd.xlane.f32.xlu0 %v5278_v52  ;;  %v3536_v1 = vmul.f32 1.442695, %v3457_v27  ;;  %v5280_v11 = vpop.eup %5279 }
 0x449   : > { %v6683_v34 = vpop.xlane.xlu0 %3346  ;;  %v6685_v40 = vpop.xlane.xlu1 %3348 }
 0x44a   : > { %5293 = vpow2.f32 %v3534_v60  ;;  %v3458_v41 = vsub.f32 %v6334_v23, %v6683_v34  ;;  %v3459_v0 = vsub.f32 %v6339_v30, %v6685_v40 }
 0x44b   : > { %v5282_v6 = vpop.eup %5281  ;;  %5295 = vpow2.f32 %v3536_v1 }
 0x44c   : > { %v3538_v14 = vmul.f32 1.442695, %v3458_v41  ;;  %3648 = vadd.xlane.f32.xlu1 %v5280_v11  ;;  %3650 = vadd.xlane.f32.xlu0 %v5282_v6  ;;  %v3540_v57 = vmul.f32 1.442695, %v3459_v0  ;;  %v5284_v52 = vpop.eup %5283 }
 0x44d   : > { %v6691_v9 = vpop.xlane.xlu0 %3350  ;;  %v6693_v25 = vpop.xlane.xlu1 %3352 }
 0x44e   : > { %5297 = vpow2.f32 %v3538_v14  ;;  %v3460_v60 = vsub.f32 %v6346_v37, %v6691_v9  ;;  %v3461_v27 = vsub.f32 %v6351_v45, %v6693_v25 }
 0x44f   : > { %v5286_v23 = vpop.eup %5285  ;;  %5299 = vpow2.f32 %v3540_v57 }
 0x450   : > { %v3542_v30 = vmul.f32 1.442695, %v3460_v60  ;;  %3652 = vadd.xlane.f32.xlu1 %v5284_v52  ;;  %3654 = vadd.xlane.f32.xlu0 %v5286_v23  ;;  %v3544_v1 = vmul.f32 1.442695, %v3461_v27  ;;  %v5288_v6 = vpop.eup %5287 }
 0x451   : > { %v6699_v11 = vpop.xlane.xlu0 %3354  ;;  %v6701_v41 = vpop.xlane.xlu1 %3356 }
 0x452   : > { %5301 = vpow2.f32 %v3542_v30  ;;  %v3462_v14 = vsub.f32 %v6358_v53, %v6699_v11  ;;  %v3463_v0 = vsub.f32 %v6363_v61, %v6701_v41 }
 0x453   : > { %v5290_v37 = vpop.eup %5289  ;;  %5303 = vpow2.f32 %v3544_v1 }
 0x454   : > { %v3546_v45 = vmul.f32 1.442695, %v3462_v14  ;;  %3656 = vadd.xlane.f32.xlu1 %v5288_v6  ;;  %3658 = vadd.xlane.f32.xlu0 %v5290_v37  ;;  %v3548_v57 = vmul.f32 1.442695, %v3463_v0  ;;  %v5292_v23 = vpop.eup %5291 }
 0x455   : > { %v6707_v52 = vpop.xlane.xlu0 %3358  ;;  %v6709_v60 = vpop.xlane.xlu1 %3360 }
 0x456   : > { %5305 = vpow2.f32 %v3546_v45  ;;  %v3464_v30 = vsub.f32 %v6370_v4, %v6707_v52  ;;  %v3465_v27 = vsub.f32 %v6375_v10, %v6709_v60 }
 0x457   : > { %v5294_v53 = vpop.eup %5293  ;;  %5307 = vpow2.f32 %v3548_v57 }
 0x458   : > { %v3550_v61 = vmul.f32 1.442695, %v3464_v30  ;;  %3660 = vadd.xlane.f32.xlu1 %v5292_v23  ;;  %3662 = vadd.xlane.f32.xlu0 %v5294_v53  ;;  %v3552_v1 = vmul.f32 1.442695, %v3465_v27  ;;  %v5296_v37 = vpop.eup %5295 }
 0x459   : > { %v6715_v6 = vpop.xlane.xlu0 %3362  ;;  %v6717_v14 = vpop.xlane.xlu1 %3364 }
 0x45a   : > { %5309 = vpow2.f32 %v3550_v61  ;;  %v3466_v45 = vsub.f32 %v6382_v28, %v6715_v6  ;;  %v3467_v0 = vsub.f32 %v6387_v55, %v6717_v14 }
 0x45b   : > { %v5298_v4 = vpop.eup %5297  ;;  %5311 = vpow2.f32 %v3552_v1 }
 0x45c   : > { %v3554_v10 = vmul.f32 1.442695, %v3466_v45  ;;  %3664 = vadd.xlane.f32.xlu1 %v5296_v37  ;;  %3666 = vadd.xlane.f32.xlu0 %v5298_v4  ;;  %v3556_v57 = vmul.f32 1.442695, %v3467_v0  ;;  %v5300_v53 = vpop.eup %5299 }
 0x45d   : > { %v6723_v23 = vpop.xlane.xlu0 %3366  ;;  %v6725_v30 = vpop.xlane.xlu1 %3368 }
 0x45e   : > { %5313 = vpow2.f32 %v3554_v10  ;;  %v3468_v61 = vsub.f32 %v6394_v19, %v6723_v23  ;;  %v3469_v27 = vsub.f32 %v6399_v29, %v6725_v30 }
 0x45f   : > { %v5302_v28 = vpop.eup %5301  ;;  %5315 = vpow2.f32 %v3556_v57 }
 0x460   : > { %v3558_v55 = vmul.f32 1.442695, %v3468_v61  ;;  %3668 = vadd.xlane.f32.xlu1 %v5300_v53  ;;  %3670 = vadd.xlane.f32.xlu0 %v5302_v28  ;;  %v3560_v1 = vmul.f32 1.442695, %v3469_v27  ;;  %v5304_v4 = vpop.eup %5303 }
 0x461   : > { %v6731_v37 = vpop.xlane.xlu0 %3370  ;;  %v6733_v45 = vpop.xlane.xlu1 %3372 }
 0x462   : > { %5317 = vpow2.f32 %v3558_v55  ;;  %v3470_v10 = vsub.f32 %v6406_v62, %v6731_v37  ;;  %v3471_v0 = vsub.f32 %v6411_v33, %v6733_v45 }
 0x463   : > { %v5306_v19 = vpop.eup %5305  ;;  %5319 = vpow2.f32 %v3560_v1 }
 0x464   : > { %v3562_v29 = vmul.f32 1.442695, %v3470_v10  ;;  %3672 = vadd.xlane.f32.xlu1 %v5304_v4  ;;  %3674 = vadd.xlane.f32.xlu0 %v5306_v19  ;;  %v3564_v57 = vmul.f32 1.442695, %v3471_v0  ;;  %v5308_v28 = vpop.eup %5307 }
 0x465   : > { %v6739_v53 = vpop.xlane.xlu0 %3374  ;;  %v6741_v61 = vpop.xlane.xlu1 %3376 }
 0x466   : > { %5321 = vpow2.f32 %v3562_v29  ;;  %v3472_v55 = vsub.f32 %v6418_v43, %v6739_v53  ;;  %v3473_v27 = vsub.f32 %v6423_v12, %v6741_v61 }
 0x467   : > { %v5310_v62 = vpop.eup %5309  ;;  %5323 = vpow2.f32 %v3564_v57 }
 0x468   : > { %v3566_v33 = vmul.f32 1.442695, %v3472_v55  ;;  %3676 = vadd.xlane.f32.xlu1 %v5308_v28  ;;  %3678 = vadd.xlane.f32.xlu0 %v5310_v62  ;;  %v3568_v1 = vmul.f32 1.442695, %v3473_v27  ;;  %v5312_v19 = vpop.eup %5311 }
 0x469   : > { %v6747_v4 = vpop.xlane.xlu0 %3378  ;;  %v6749_v10 = vpop.xlane.xlu1 %3380 }
 0x46a   : > { %5325 = vpow2.f32 %v3566_v33  ;;  %v3474_v29 = vsub.f32 %v6430_v20, %v6747_v4  ;;  %v3475_v0 = vsub.f32 %v6435_v24, %v6749_v10 }
 0x46b   : > { %v5314_v43 = vpop.eup %5313  ;;  %5327 = vpow2.f32 %v3568_v1 }
 0x46c   : > { %v3570_v12 = vmul.f32 1.442695, %v3474_v29  ;;  %3680 = vadd.xlane.f32.xlu1 %v5312_v19  ;;  %3682 = vadd.xlane.f32.xlu0 %v5314_v43  ;;  %v3572_v57 = vmul.f32 1.442695, %v3475_v0  ;;  %v5316_v62 = vpop.eup %5315 }
 0x46d   : > { %v6755_v28 = vpop.xlane.xlu0 %3382  ;;  %v6757_v55 = vpop.xlane.xlu1 %3384 }
 0x46e   : > { %5329 = vpow2.f32 %v3570_v12  ;;  %v3476_v33 = vsub.f32 %v6442_v36, %v6755_v28  ;;  %v3477_v27 = vsub.f32 %v6447_v39, %v6757_v55 }
 0x46f   : > { %v5318_v20 = vpop.eup %5317  ;;  %5331 = vpow2.f32 %v3572_v57 }
 0x470   : > { %v3574_v24 = vmul.f32 1.442695, %v3476_v33  ;;  %3684 = vadd.xlane.f32.xlu1 %v5316_v62  ;;  %3686 = vadd.xlane.f32.xlu0 %v5318_v20  ;;  %v3576_v1 = vmul.f32 1.442695, %v3477_v27  ;;  %v5320_v43 = vpop.eup %5319 }
 0x471   : > { %v6763_v19 = vpop.xlane.xlu0 %3386  ;;  %v6765_v29 = vpop.xlane.xlu1 %3388 }
 0x472   : > { %5333 = vpow2.f32 %v3574_v24  ;;  %v3478_v12 = vsub.f32 %v6454_v8, %v6763_v19  ;;  %v3479_v0 = vsub.f32 %v6459_v21, %v6765_v29 }
 0x473   : > { %v5322_v36 = vpop.eup %5321  ;;  %5335 = vpow2.f32 %v3576_v1 }
 0x474   : > { %v3578_v39 = vmul.f32 1.442695, %v3478_v12  ;;  %3688 = vadd.xlane.f32.xlu1 %v5320_v43  ;;  %3690 = vadd.xlane.f32.xlu0 %v5322_v36  ;;  %v3580_v57 = vmul.f32 1.442695, %v3479_v0  ;;  %v5324_v20 = vpop.eup %5323 }
 0x475   : > { %v6771_v62 = vpop.xlane.xlu0 %3390  ;;  %v6773_v33 = vpop.xlane.xlu1 %3392 }
 0x476   : > { %5337 = vpow2.f32 %v3578_v39  ;;  %v3480_v24 = vsub.f32 %v6466_v32, %v6771_v62  ;;  %v3481_v27 = vsub.f32 %v6471_v44, %v6773_v33 }
 0x477   : > { %v5326_v8 = vpop.eup %5325  ;;  %5339 = vpow2.f32 %v3580_v57 }
 0x478   : > { %v3582_v21 = vmul.f32 1.442695, %v3480_v24  ;;  %3692 = vadd.xlane.f32.xlu1 %v5324_v20  ;;  %3694 = vadd.xlane.f32.xlu0 %v5326_v8  ;;  %v3584_v1 = vmul.f32 1.442695, %v3481_v27  ;;  %v5328_v36 = vpop.eup %5327 }
 0x479   : > { %v6779_v43 = vpop.xlane.xlu0 %3394  ;;  %v6781_v12 = vpop.xlane.xlu1 %3396 }
 0x47a   : > { %5341 = vpow2.f32 %v3582_v21  ;;  %v3482_v39 = vsub.f32 %v6478_v58, %v6779_v43  ;;  %v3483_v0 = vsub.f32 %v6483_v7, %v6781_v12 }
 0x47b   : > { %v5330_v32 = vpop.eup %5329  ;;  %5343 = vpow2.f32 %v3584_v1 }
 0x47c   : > { %v3586_v44 = vmul.f32 1.442695, %v3482_v39  ;;  %3696 = vadd.xlane.f32.xlu1 %v5328_v36  ;;  %3698 = vadd.xlane.f32.xlu0 %v5330_v32  ;;  %v3588_v57 = vmul.f32 1.442695, %v3483_v0  ;;  %v5332_v8 = vpop.eup %5331 }
 0x47d   : > { %v6787_v20 = vpop.xlane.xlu0 %3398  ;;  %v6789_v24 = vpop.xlane.xlu1 %3400 }
 0x47e   : > { %5345 = vpow2.f32 %v3586_v44  ;;  %v3484_v21 = vsub.f32 %v6490_v22, %v6787_v20  ;;  %v3485_v27 = vsub.f32 %v6495_v35, %v6789_v24 }
 0x47f   : > { %v5334_v58 = vpop.eup %5333  ;;  %5347 = vpow2.f32 %v3588_v57 }
 0x480   : > { %v3590_v7 = vmul.f32 1.442695, %v3484_v21  ;;  %3700 = vadd.xlane.f32.xlu1 %v5332_v8  ;;  %3702 = vadd.xlane.f32.xlu0 %v5334_v58  ;;  %v3592_v1 = vmul.f32 1.442695, %v3485_v27  ;;  %v5336_v32 = vpop.eup %5335 }
 0x481   : > { %v6795_v36 = vpop.xlane.xlu0 %3402  ;;  %v6797_v39 = vpop.xlane.xlu1 %3404 }
 0x482   : > { %5349 = vpow2.f32 %v3590_v7  ;;  %v3486_v44 = vsub.f32 %v6502_v51, %v6795_v36  ;;  %v3487_v0 = vsub.f32 %v6507_v3, %v6797_v39 }
 0x483   : > { %v5338_v22 = vpop.eup %5337  ;;  %5351 = vpow2.f32 %v3592_v1 }
 0x484   : > { %v3594_v35 = vmul.f32 1.442695, %v3486_v44  ;;  %3704 = vadd.xlane.f32.xlu1 %v5336_v32  ;;  %3706 = vadd.xlane.f32.xlu0 %v5338_v22  ;;  %v3596_v57 = vmul.f32 1.442695, %v3487_v0  ;;  %v5340_v58 = vpop.eup %5339 }
 0x485   : > { %v6803_v8 = vpop.xlane.xlu0 %3406  ;;  %v6805_v21 = vpop.xlane.xlu1 %3408 }
 0x486   : > { %7262 = vst [vmem:[#allocation98_spill] sm:$0xff] %v6805_v21  ;;  %5353 = vpow2.f32 %v3594_v35  ;;  %v3488_v7 = vsub.f32 %v6514_v17, %v6803_v8  ;;  %v3489_v27 = vsub.f32 %v6519_v38, %v6805_v21 }
 0x487   : > { %v5342_v51 = vpop.eup %5341  ;;  %5355 = vpow2.f32 %v3596_v57 }
 0x488   : > { %v3598_v3 = vmul.f32 1.442695, %v3488_v7  ;;  %3708 = vadd.xlane.f32.xlu1 %v5340_v58  ;;  %3710 = vadd.xlane.f32.xlu0 %v5342_v51  ;;  %v3600_v1 = vmul.f32 1.442695, %v3489_v27  ;;  %v5344_v22 = vpop.eup %5343 }
 0x489   : > { %v6811_v32 = vpop.xlane.xlu0 %3410  ;;  %v6813_v44 = vpop.xlane.xlu1 %3412 }
 0x48a   : > { %7263 = vst [vmem:[#allocation99_spill] sm:$0xff] %v6811_v32  ;;  %7264 = vst [vmem:[#allocation100_spill] sm:$0xff] %v6813_v44  ;;  %5357 = vpow2.f32 %v3598_v3  ;;  %v3490_v35 = vsub.f32 %v6526_v56, %v6811_v32  ;;  %v3491_v0 = vsub.f32 %v6531_v13, %v6813_v44 }
 0x48b   : > { %v5346_v17 = vpop.eup %5345  ;;  %5359 = vpow2.f32 %v3600_v1 }
 0x48c   : > { %v3602_v38 = vmul.f32 1.442695, %v3490_v35  ;;  %3712 = vadd.xlane.f32.xlu1 %v5344_v22  ;;  %3714 = vadd.xlane.f32.xlu0 %v5346_v17  ;;  %v3604_v57 = vmul.f32 1.442695, %v3491_v0  ;;  %v5348_v51 = vpop.eup %5347 }
 0x48d   : > { %v6819_v58 = vpop.xlane.xlu0 %3414  ;;  %v6821_v7 = vpop.xlane.xlu1 %3416 }
 0x48e   : > { %7265 = vst [vmem:[#allocation101_spill] sm:$0xff] %v6819_v58  ;;  %7266 = vst [vmem:[#allocation102_spill] sm:$0xff] %v6821_v7  ;;  %5361 = vpow2.f32 %v3602_v38  ;;  %v3492_v3 = vsub.f32 %v6538_v31, %v6819_v58  ;;  %v3493_v27 = vsub.f32 %v6543_v54, %v6821_v7  ;;  %v7269_v38 = vld [vmem:[#allocation84_spill] sm:$0xff]  ;;  %v7270_v31 = vld [vmem:[#allocation85_spill] sm:$0xff] }
 0x48f   : > { %v5350_v56 = vpop.eup %5349  ;;  %5363 = vpow2.f32 %v3604_v57 }
 0x490   : > { %v3606_v13 = vmul.f32 1.442695, %v3492_v3  ;;  %3716 = vadd.xlane.f32.xlu1 %v5348_v51  ;;  %3718 = vadd.xlane.f32.xlu0 %v5350_v56  ;;  %v3608_v1 = vmul.f32 1.442695, %v3493_v27  ;;  %v5352_v17 = vpop.eup %5351 }
 0x491   : > { %v6827_v22 = vpop.xlane.xlu0 %3418  ;;  %v6829_v35 = vpop.xlane.xlu1 %3420 }
 0x492   : > { %7267 = vst [vmem:[#allocation103_spill] sm:$0xff] %v6827_v22  ;;  %7268 = vst [vmem:[#allocation104_spill] sm:$0xff] %v6829_v35  ;;  %5365 = vpow2.f32 %v3606_v13  ;;  %v3494_v0 = vsub.f32 %v7269_v38, %v6827_v22  ;;  %v3495_v58 = vsub.f32 %v7270_v31, %v6829_v35  ;;  %v7273_v13 = vld [vmem:[#allocation86_spill] sm:$0xff]  ;;  %v7274_v38 = vld [vmem:[#allocation87_spill] sm:$0xff] }
 0x493   : > { %v5354_v44 = vpop.eup %5353  ;;  %5367 = vpow2.f32 %v3608_v1 }
 0x494   : > { %v3610_v54 = vmul.f32 1.442695, %v3494_v0  ;;  %3720 = vadd.xlane.f32.xlu1 %v5352_v17  ;;  %3722 = vadd.xlane.f32.xlu0 %v5354_v44  ;;  %v3612_v57 = vmul.f32 1.442695, %v3495_v58  ;;  %v5356_v56 = vpop.eup %5355 }
 0x495   : > { %v6835_v51 = vpop.xlane.xlu0 %3422  ;;  %v6837_v3 = vpop.xlane.xlu1 %3424 }
 0x496   : > { %7271 = vst [vmem:[#allocation105_spill] sm:$0xff] %v6835_v51  ;;  %7272 = vst [vmem:[#allocation106_spill] sm:$0xff] %v6837_v3  ;;  %5369 = vpow2.f32 %v3610_v54  ;;  %v3496_v27 = vsub.f32 %v7273_v13, %v6835_v51  ;;  %v3497_v22 = vsub.f32 %v7274_v38, %v6837_v3  ;;  %v7277_v54 = vld [vmem:[#allocation88_spill] sm:$0xff]  ;;  %v7278_v13 = vld [vmem:[#allocation89_spill] sm:$0xff] }
 0x497   : > { %v5358_v7 = vpop.eup %5357  ;;  %5371 = vpow2.f32 %v3612_v57 }
 0x498   : > { %v3614_v31 = vmul.f32 1.442695, %v3496_v27  ;;  %3724 = vadd.xlane.f32.xlu1 %v5356_v56  ;;  %3726 = vadd.xlane.f32.xlu0 %v5358_v7  ;;  %v3616_v1 = vmul.f32 1.442695, %v3497_v22  ;;  %v5360_v44 = vpop.eup %5359 }
 0x499   : > { %v6843_v58 = vpop.xlane.xlu0 %3426  ;;  %v6845_v17 = vpop.xlane.xlu1 %3428 }
 0x49a   : > { %7275 = vst [vmem:[#allocation107_spill] sm:$0xff] %v6843_v58  ;;  %7276 = vst [vmem:[#allocation108_spill] sm:$0xff] %v6845_v17  ;;  %5373 = vpow2.f32 %v3614_v31  ;;  %v3498_v0 = vsub.f32 %v7277_v54, %v6843_v58  ;;  %v3499_v51 = vsub.f32 %v7278_v13, %v6845_v17  ;;  %v7281_v31 = vld [vmem:[#allocation90_spill] sm:$0xff]  ;;  %v7282_v54 = vld [vmem:[#allocation91_spill] sm:$0xff] }
 0x49b   : > { %v5362_v35 = vpop.eup %5361  ;;  %5375 = vpow2.f32 %v3616_v1 }
 0x49c   : > { %v3618_v38 = vmul.f32 1.442695, %v3498_v0  ;;  %3728 = vadd.xlane.f32.xlu1 %v5360_v44  ;;  %3730 = vadd.xlane.f32.xlu0 %v5362_v35  ;;  %v3620_v57 = vmul.f32 1.442695, %v3499_v51  ;;  %v5364_v7 = vpop.eup %5363 }
 0x49d   : > { %v6851_v22 = vpop.xlane.xlu0 %3430  ;;  %v6853_v56 = vpop.xlane.xlu1 %3432 }
 0x49e   : > { %7279 = vst [vmem:[#allocation109_spill] sm:$0xff] %v6851_v22  ;;  %7280 = vst [vmem:[#allocation110_spill] sm:$0xff] %v6853_v56  ;;  %5377 = vpow2.f32 %v3618_v38  ;;  %v3500_v27 = vsub.f32 %v7281_v31, %v6851_v22  ;;  %v3501_v58 = vsub.f32 %v7282_v54, %v6853_v56  ;;  %v7285_v38 = vld [vmem:[#allocation92_spill] sm:$0xff]  ;;  %v7286_v31 = vld [vmem:[#allocation93_spill] sm:$0xff] }
 0x49f   : > { %v5366_v3 = vpop.eup %5365  ;;  %5379 = vpow2.f32 %v3620_v57 }
 0x4a0   : > { %v3622_v13 = vmul.f32 1.442695, %v3500_v27  ;;  %3732 = vadd.xlane.f32.xlu1 %v5364_v7  ;;  %3734 = vadd.xlane.f32.xlu0 %v5366_v3  ;;  %v3624_v1 = vmul.f32 1.442695, %v3501_v58  ;;  %v5368_v35 = vpop.eup %5367 }
 0x4a1   : > { %v6859_v51 = vpop.xlane.xlu0 %3434  ;;  %v6861_v44 = vpop.xlane.xlu1 %3436 }
 0x4a2   : > { %7283 = vst [vmem:[#allocation111_spill] sm:$0xff] %v6859_v51  ;;  %7284 = vst [vmem:[#allocation112_spill] sm:$0xff] %v6861_v44  ;;  %5381 = vpow2.f32 %v3622_v13  ;;  %v3502_v0 = vsub.f32 %v7285_v38, %v6859_v51  ;;  %v3503_v22 = vsub.f32 %v7286_v31, %v6861_v44  ;;  %v7289_v13 = vld [vmem:[#allocation94_spill] sm:$0xff]  ;;  %v7290_v38 = vld [vmem:[#allocation95_spill] sm:$0xff] }
 0x4a3   : > { %v5370_v17 = vpop.eup %5369  ;;  %5383 = vpow2.f32 %v3624_v1 }
 0x4a4   : > { %v3626_v54 = vmul.f32 1.442695, %v3502_v0  ;;  %3736 = vadd.xlane.f32.xlu1 %v5368_v35  ;;  %3738 = vadd.xlane.f32.xlu0 %v5370_v17  ;;  %v3628_v57 = vmul.f32 1.442695, %v3503_v22  ;;  %v5372_v3 = vpop.eup %5371 }
 0x4a5   : > { %v6867_v58 = vpop.xlane.xlu0 %3438  ;;  %v6869_v7 = vpop.xlane.xlu1 %3440 }
 0x4a6   : > { %7287 = vst [vmem:[#allocation113_spill] sm:$0xff] %v6867_v58  ;;  %7288 = vst [vmem:[#allocation114_spill] sm:$0xff] %v6869_v7  ;;  %5385 = vpow2.f32 %v3626_v54  ;;  %v3504_v27 = vsub.f32 %v7289_v13, %v6867_v58  ;;  %v3505_v51 = vsub.f32 %v7290_v38, %v6869_v7 }
 0x4a7   : > { %v5374_v56 = vpop.eup %5373  ;;  %5387 = vpow2.f32 %v3628_v57 }
 0x4a8   : > { %v3630_v31 = vmul.f32 1.442695, %v3504_v27  ;;  %3740 = vadd.xlane.f32.xlu1 %v5372_v3  ;;  %3742 = vadd.xlane.f32.xlu0 %v5374_v56  ;;  %v3632_v1 = vmul.f32 1.442695, %v3505_v51  ;;  %v5376_v17 = vpop.eup %5375 }
 0x4aa   : > { %5389 = vpow2.f32 %v3630_v31 }
 0x4ab   : > { %v5378_v22 = vpop.eup %5377  ;;  %5391 = vpow2.f32 %v3632_v1 }
 0x4ac   : > { %3744 = vadd.xlane.f32.xlu1 %v5376_v17  ;;  %3746 = vadd.xlane.f32.xlu0 %v5378_v22  ;;  %v5380_v35 = vpop.eup %5379 }
 0x4af   : > { %v5382_v54 = vpop.eup %5381 }
 0x4b0   : > { %3748 = vadd.xlane.f32.xlu1 %v5380_v35  ;;  %3750 = vadd.xlane.f32.xlu0 %v5382_v54  ;;  %v5384_v0 = vpop.eup %5383 }
 0x4b3   : > { %v5386_v13 = vpop.eup %5385 }
 0x4b4   : > { %3752 = vadd.xlane.f32.xlu1 %v5384_v0  ;;  %3754 = vadd.xlane.f32.xlu0 %v5386_v13  ;;  %v5388_v38 = vpop.eup %5387  ;;  %v7291_v0 = vld [vmem:[#allocation96_spill] sm:$0xff] }
 0x4b7   : > { %v5390_v57 = vpop.eup %5389 }
 0x4b8   : > { %3756 = vadd.xlane.f32.xlu1 %v5388_v38  ;;  %3758 = vadd.xlane.f32.xlu0 %v5390_v57  ;;  %v5392_v56 = vpop.eup %5391 }
 0x4bc   : > { %3760 = vadd.xlane.f32.xlu1 %v5392_v56 }
 0x4c5   : > { %v3635_v51 = vpop.xlane.xlu0 %3634 }
 0x4c6   : > { %5393 = vlog2.f32 %v3635_v51 }
 0x4c9   : > { %v3637_v31 = vpop.xlane.xlu1 %3636  ;;  %v3639_v3 = vpop.xlane.xlu0 %3638 }
 0x4ca   : > { %5395 = vlog2.f32 %v3637_v31  ;;  %v7292_v31 = vld [vmem:[#allocation32_spill] sm:$0xff] }
 0x4cb   : > { %5397 = vlog2.f32 %v3639_v3 }
 0x4cd   : > { %v3641_v27 = vpop.xlane.xlu1 %3640  ;;  %v3643_v1 = vpop.xlane.xlu0 %3642 }
 0x4ce   : > { %5399 = vlog2.f32 %v3641_v27 }
 0x4cf   : > { %5401 = vlog2.f32 %v3643_v1 }
 0x4d1   : > { %v3645_v17 = vpop.xlane.xlu1 %3644  ;;  %v3647_v22 = vpop.xlane.xlu0 %3646 }
 0x4d2   : > { %5403 = vlog2.f32 %v3645_v17 }
 0x4d3   : > { %v5394_v13 = vpop.eup %5393  ;;  %5405 = vlog2.f32 %v3647_v22 }
 0x4d4   : > { %v3763_v35 = vmul.f32 0.6931472, %v5394_v13 }
 0x4d5   : > { %v3649_v38 = vpop.xlane.xlu1 %3648  ;;  %v3651_v54 = vpop.xlane.xlu0 %3650 }
 0x4d6   : > { %v3890_v57 = vadd.f32 %v3763_v35, %v7291_v0  ;;  %5407 = vlog2.f32 %v3649_v38  ;;  %v7293_v35 = vld [vmem:[#allocation34_spill] sm:$0xff] }
 0x4d7   : > { %v5396_v56 = vpop.eup %5395  ;;  %5409 = vlog2.f32 %v3651_v54  ;;  %v7294_v54 = vld [vmem:[#allocation33_spill] sm:$0xff] }
 0x4d8   : > { %v5398_v51 = vpop.eup %5397  ;;  %v3954_v3 = vsub.f32 %v7292_v31, %v3890_v57  ;;  %v3765_v7 = vmul.f32 0.6931472, %v5396_v56 }
 0x4d9   : > { %v3767_v58 = vmul.f32 0.6931472, %v5398_v51  ;;  %v3653_v27 = vpop.xlane.xlu1 %3652  ;;  %v3655_v1 = vpop.xlane.xlu0 %3654 }
 0x4da   : > { %4018 = vst [vmem:[#allocation9] sm:$0xff] %v3954_v3  ;;  %v3891_v17 = vadd.f32 %v3765_v7, %v6627_v42  ;;  %5411 = vlog2.f32 %v3653_v27  ;;  %v7296_v27 = vld [vmem:[#allocation36_spill] sm:$0xff] }
 0x4db   : > { %v5400_v22 = vpop.eup %5399  ;;  %v3892_v13 = vadd.f32 %v3767_v58, %v6621_v49  ;;  %5413 = vlog2.f32 %v3655_v1  ;;  %v7295_v58 = vld [vmem:[#allocation35_spill] sm:$0xff] }
 0x4dc   : > { %v5402_v44 = vpop.eup %5401  ;;  %v3955_v38 = vsub.f32 %v7293_v35, %v3891_v17  ;;  %v3769_v0 = vmul.f32 0.6931472, %v5400_v22 }
 0x4dd   : > { %v3956_v32 = vsub.f32 %v7294_v54, %v3892_v13  ;;  %v3771_v21 = vmul.f32 0.6931472, %v5402_v44  ;;  %v3657_v57 = vpop.xlane.xlu1 %3656  ;;  %v3659_v56 = vpop.xlane.xlu0 %3658 }
 0x4de   : > { %4019 = vst [vmem:[#allocation9 + $0x8] sm:$0xff] %v3955_v38  ;;  %v3893_v51 = vadd.f32 %v3769_v0, %v6629_v47  ;;  %5415 = vlog2.f32 %v3657_v57  ;;  %v7298_v0 = vld [vmem:[#allocation38_spill] sm:$0xff] }
 0x4df   : > { %v5404_v31 = vpop.eup %5403  ;;  %4020 = vst [vmem:[#allocation9 + $0x10] sm:$0xff] %v3956_v32  ;;  %v3894_v42 = vadd.f32 %v3771_v21, %v6635_v63  ;;  %5417 = vlog2.f32 %v3659_v56  ;;  %v7297_v21 = vld [vmem:[#allocation37_spill] sm:$0xff] }
 0x4e0   : > { %v5406_v49 = vpop.eup %5405  ;;  %v3957_v7 = vsub.f32 %v7295_v58, %v3893_v51  ;;  %v3773_v3 = vmul.f32 0.6931472, %v5404_v31 }
 0x4e1   : > { %v3958_v1 = vsub.f32 %v7296_v27, %v3894_v42  ;;  %v3775_v17 = vmul.f32 0.6931472, %v5406_v49  ;;  %v3661_v22 = vpop.xlane.xlu1 %3660  ;;  %v3663_v44 = vpop.xlane.xlu0 %3662  ;;  %v7299_v49 = vld [vmem:[#allocation39_spill] sm:$0xff] }
 0x4e2   : > { %4021 = vst [vmem:[#allocation9 + $0x18] sm:$0xff] %v3957_v7  ;;  %v3895_v13 = vadd.f32 %v3773_v3, %v6637_v48  ;;  %5419 = vlog2.f32 %v3661_v22  ;;  %v7300_v3 = vld [vmem:[#allocation40_spill] sm:$0xff] }
 0x4e3   : > { %v5408_v47 = vpop.eup %5407  ;;  %4022 = vst [vmem:[#allocation9 + $0x20] sm:$0xff] %v3958_v1  ;;  %v3896_v32 = vadd.f32 %v3775_v17, %v6643_v46  ;;  %5421 = vlog2.f32 %v3663_v44 }
 0x4e4   : > { %v5410_v63 = vpop.eup %5409  ;;  %v3959_v35 = vsub.f32 %v7297_v21, %v3895_v13  ;;  %v3777_v38 = vmul.f32 0.6931472, %v5408_v47  ;;  %v7301_v13 = vld [vmem:[#allocation97_spill] sm:$0xff] }
 0x4e5   : > { %v3960_v54 = vsub.f32 %v7298_v0, %v3896_v32  ;;  %v3779_v57 = vmul.f32 0.6931472, %v5410_v63  ;;  %v3665_v56 = vpop.xlane.xlu1 %3664  ;;  %v3667_v51 = vpop.xlane.xlu0 %3666  ;;  %v7302_v32 = vld [vmem:[#allocation41_spill] sm:$0xff] }
 0x4e6   : > { %4023 = vst [vmem:[#allocation9 + $0x28] sm:$0xff] %v3959_v35  ;;  %v3897_v31 = vadd.f32 %v3777_v38, %v6645_v59  ;;  %5423 = vlog2.f32 %v3665_v56  ;;  %v7303_v35 = vld [vmem:[#allocation42_spill] sm:$0xff] }
 0x4e7   : > { %v5412_v48 = vpop.eup %5411  ;;  %4024 = vst [vmem:[#allocation9 + $0x30] sm:$0xff] %v3960_v54  ;;  %v3898_v42 = vadd.f32 %v3779_v57, %v6651_v50  ;;  %5425 = vlog2.f32 %v3667_v51 }
 0x4e8   : > { %v5414_v46 = vpop.eup %5413  ;;  %v3961_v58 = vsub.f32 %v7299_v49, %v3897_v31  ;;  %v3781_v7 = vmul.f32 0.6931472, %v5412_v48  ;;  %v7304_v48 = vld [vmem:[#allocation43_spill] sm:$0xff]  ;;  %v7305_v49 = vld [vmem:[#allocation44_spill] sm:$0xff] }
 0x4e9   : > { %v3962_v27 = vsub.f32 %v7300_v3, %v3898_v42  ;;  %v3783_v1 = vmul.f32 0.6931472, %v5414_v46  ;;  %v3669_v17 = vpop.xlane.xlu1 %3668  ;;  %v3671_v22 = vpop.xlane.xlu0 %3670 }
 0x4ea   : > { %4025 = vst [vmem:[#allocation9 + $0x38] sm:$0xff] %v3961_v58  ;;  %v3899_v44 = vadd.f32 %v3781_v7, %v6653_v2  ;;  %5427 = vlog2.f32 %v3669_v17 }
 0x4eb   : > { %v5416_v59 = vpop.eup %5415  ;;  %4026 = vst [vmem:[#allocation9 + $0x40] sm:$0xff] %v3962_v27  ;;  %v3900_v47 = vadd.f32 %v3783_v1, %v7301_v13  ;;  %5429 = vlog2.f32 %v3671_v22  ;;  %v7306_v22 = vld [vmem:[#allocation45_spill] sm:$0xff]  ;;  %v7307_v13 = vld [vmem:[#allocation46_spill] sm:$0xff] }
 0x4ec   : > { %v5418_v50 = vpop.eup %5417  ;;  %v3963_v63 = vsub.f32 %v7302_v32, %v3899_v44  ;;  %v3785_v21 = vmul.f32 0.6931472, %v5416_v59 }
 0x4ed   : > { %v3964_v38 = vsub.f32 %v7303_v35, %v3900_v47  ;;  %v3787_v0 = vmul.f32 0.6931472, %v5418_v50  ;;  %v3673_v54 = vpop.xlane.xlu1 %3672  ;;  %v3675_v57 = vpop.xlane.xlu0 %3674 }
 0x4ee   : > { %4027 = vst [vmem:[#allocation9 + $0x48] sm:$0xff] %v3963_v63  ;;  %v3901_v56 = vadd.f32 %v3785_v21, %v6661_v26  ;;  %5431 = vlog2.f32 %v3673_v54 }
 0x4ef   : > { %v5420_v2 = vpop.eup %5419  ;;  %4028 = vst [vmem:[#allocation9 + $0x50] sm:$0xff] %v3964_v38  ;;  %v3902_v51 = vadd.f32 %v3787_v0, %v6667_v16  ;;  %5433 = vlog2.f32 %v3675_v57  ;;  %v7308_v38 = vld [vmem:[#allocation47_spill] sm:$0xff]  ;;  %v7309_v57 = vld [vmem:[#allocation48_spill] sm:$0xff] }
 0x4f0   : > { %v5422_v31 = vpop.eup %5421  ;;  %v3965_v42 = vsub.f32 %v7304_v48, %v3901_v56  ;;  %v3789_v46 = vmul.f32 0.6931472, %v5420_v2 }
 0x4f1   : > { %v3966_v58 = vsub.f32 %v7305_v49, %v3902_v51  ;;  %v3791_v7 = vmul.f32 0.6931472, %v5422_v31  ;;  %v3677_v3 = vpop.xlane.xlu1 %3676  ;;  %v3679_v27 = vpop.xlane.xlu0 %3678 }
 0x4f2   : > { %4029 = vst [vmem:[#allocation9 + $0x58] sm:$0xff] %v3965_v42  ;;  %v3903_v1 = vadd.f32 %v3789_v46, %v6669_v15  ;;  %5435 = vlog2.f32 %v3677_v3  ;;  %v7310_v46 = vld [vmem:[#allocation49_spill] sm:$0xff] }
 0x4f3   : > { %v5424_v26 = vpop.eup %5423  ;;  %4030 = vst [vmem:[#allocation9 + $0x60] sm:$0xff] %v3966_v58  ;;  %v3904_v17 = vadd.f32 %v3791_v7, %v6675_v18  ;;  %5437 = vlog2.f32 %v3679_v27  ;;  %v7311_v7 = vld [vmem:[#allocation50_spill] sm:$0xff] }
 0x4f4   : > { %v5426_v16 = vpop.eup %5425  ;;  %v3967_v44 = vsub.f32 %v7306_v22, %v3903_v1  ;;  %v3793_v59 = vmul.f32 0.6931472, %v5424_v26  ;;  %v7312_v22 = vld [vmem:[#allocation51_spill] sm:$0xff] }
 0x4f5   : > { %v3968_v47 = vsub.f32 %v7307_v13, %v3904_v17  ;;  %v3795_v50 = vmul.f32 0.6931472, %v5426_v16  ;;  %v3681_v32 = vpop.xlane.xlu1 %3680  ;;  %v3683_v63 = vpop.xlane.xlu0 %3682  ;;  %v7313_v13 = vld [vmem:[#allocation52_spill] sm:$0xff] }
 0x4f6   : > { %4031 = vst [vmem:[#allocation9 + $0x68] sm:$0xff] %v3967_v44  ;;  %v3905_v21 = vadd.f32 %v3793_v59, %v6677_v5  ;;  %5439 = vlog2.f32 %v3681_v32 }
 0x4f7   : > { %v5428_v15 = vpop.eup %5427  ;;  %4032 = vst [vmem:[#allocation9 + $0x70] sm:$0xff] %v3968_v47  ;;  %v3906_v35 = vadd.f32 %v3795_v50, %v6683_v34  ;;  %5441 = vlog2.f32 %v3683_v63 }
 0x4f8   : > { %v5430_v18 = vpop.eup %5429  ;;  %v3969_v0 = vsub.f32 %v7308_v38, %v3905_v21  ;;  %v3797_v54 = vmul.f32 0.6931472, %v5428_v15 }
 0x4f9   : > { %v3970_v56 = vsub.f32 %v7309_v57, %v3906_v35  ;;  %v3799_v2 = vmul.f32 0.6931472, %v5430_v18  ;;  %v3685_v51 = vpop.xlane.xlu1 %3684  ;;  %v3687_v31 = vpop.xlane.xlu0 %3686  ;;  %v7314_v35 = vld [vmem:[#allocation53_spill] sm:$0xff] }
 0x4fa   : > { %4033 = vst [vmem:[#allocation9 + $0x78] sm:$0xff] %v3969_v0  ;;  %v3907_v48 = vadd.f32 %v3797_v54, %v6685_v40  ;;  %5443 = vlog2.f32 %v3685_v51  ;;  %v7315_v0 = vld [vmem:[#allocation54_spill] sm:$0xff] }
 0x4fb   : > { %v5432_v5 = vpop.eup %5431  ;;  %4034 = vst [vmem:[#allocation9 + $0x80] sm:$0xff] %v3970_v56  ;;  %v3908_v42 = vadd.f32 %v3799_v2, %v6691_v9  ;;  %5445 = vlog2.f32 %v3687_v31 }
 0x4fc   : > { %v5434_v34 = vpop.eup %5433  ;;  %v3971_v49 = vsub.f32 %v7310_v46, %v3907_v48  ;;  %v3801_v58 = vmul.f32 0.6931472, %v5432_v5  ;;  %v7316_v48 = vld [vmem:[#allocation55_spill] sm:$0xff] }
 0x4fd   : > { %v3972_v3 = vsub.f32 %v7311_v7, %v3908_v42  ;;  %v3803_v27 = vmul.f32 0.6931472, %v5434_v34  ;;  %v3689_v1 = vpop.xlane.xlu1 %3688  ;;  %v3691_v26 = vpop.xlane.xlu0 %3690  ;;  %v7317_v34 = vld [vmem:[#allocation56_spill] sm:$0xff] }
 0x4fe   : > { %4035 = vst [vmem:[#allocation9 + $0x88] sm:$0xff] %v3971_v49  ;;  %v3909_v17 = vadd.f32 %v3801_v58, %v6693_v25  ;;  %5447 = vlog2.f32 %v3689_v1  ;;  %v7318_v1 = vld [vmem:[#allocation57_spill] sm:$0xff] }
 0x4ff   : > { %v5436_v40 = vpop.eup %5435  ;;  %4036 = vst [vmem:[#allocation9 + $0x90] sm:$0xff] %v3972_v3  ;;  %v3910_v16 = vadd.f32 %v3803_v27, %v6699_v11  ;;  %5449 = vlog2.f32 %v3691_v26 }
 0x500   : > { %v5438_v9 = vpop.eup %5437  ;;  %v3973_v44 = vsub.f32 %v7312_v22, %v3909_v17  ;;  %v3805_v59 = vmul.f32 0.6931472, %v5436_v40  ;;  %v7319_v40 = vld [vmem:[#allocation58_spill] sm:$0xff] }
 0x501   : > { %v3974_v47 = vsub.f32 %v7313_v13, %v3910_v16  ;;  %v3807_v50 = vmul.f32 0.6931472, %v5438_v9  ;;  %v3693_v32 = vpop.xlane.xlu1 %3692  ;;  %v3695_v63 = vpop.xlane.xlu0 %3694 }
 0x502   : > { %4037 = vst [vmem:[#allocation9 + $0x98] sm:$0xff] %v3973_v44  ;;  %v3911_v21 = vadd.f32 %v3805_v59, %v6701_v41  ;;  %5451 = vlog2.f32 %v3693_v32 }
 0x503   : > { %v5440_v25 = vpop.eup %5439  ;;  %4038 = vst [vmem:[#allocation9 + $0xa0] sm:$0xff] %v3974_v47  ;;  %v3912_v15 = vadd.f32 %v3807_v50, %v6707_v52  ;;  %5453 = vlog2.f32 %v3695_v63  ;;  %v7320_v47 = vld [vmem:[#allocation59_spill] sm:$0xff]  ;;  %v7321_v63 = vld [vmem:[#allocation60_spill] sm:$0xff] }
 0x504   : > { %v5442_v11 = vpop.eup %5441  ;;  %v3975_v18 = vsub.f32 %v7314_v35, %v3911_v21  ;;  %v3809_v38 = vmul.f32 0.6931472, %v5440_v25 }
 0x505   : > { %v3976_v54 = vsub.f32 %v7315_v0, %v3912_v15  ;;  %v3811_v57 = vmul.f32 0.6931472, %v5442_v11  ;;  %v3697_v56 = vpop.xlane.xlu1 %3696  ;;  %v3699_v2 = vpop.xlane.xlu0 %3698 }
 0x506   : > { %4039 = vst [vmem:[#allocation9 + $0xa8] sm:$0xff] %v3975_v18  ;;  %v3913_v51 = vadd.f32 %v3809_v38, %v6709_v60  ;;  %5455 = vlog2.f32 %v3697_v56  ;;  %v7322_v38 = vld [vmem:[#allocation61_spill] sm:$0xff] }
 0x507   : > { %v5444_v41 = vpop.eup %5443  ;;  %4040 = vst [vmem:[#allocation9 + $0xb0] sm:$0xff] %v3976_v54  ;;  %v3914_v31 = vadd.f32 %v3811_v57, %v6715_v6  ;;  %5457 = vlog2.f32 %v3699_v2  ;;  %v7323_v57 = vld [vmem:[#allocation62_spill] sm:$0xff] }
 0x508   : > { %v5446_v52 = vpop.eup %5445  ;;  %v3977_v5 = vsub.f32 %v7316_v48, %v3913_v51  ;;  %v3813_v42 = vmul.f32 0.6931472, %v5444_v41  ;;  %v7324_v48 = vld [vmem:[#allocation63_spill] sm:$0xff] }
 0x509   : > { %v3978_v46 = vsub.f32 %v7317_v34, %v3914_v31  ;;  %v3815_v49 = vmul.f32 0.6931472, %v5446_v52  ;;  %v3701_v58 = vpop.xlane.xlu1 %3700  ;;  %v3703_v7 = vpop.xlane.xlu0 %3702  ;;  %v7325_v34 = vld [vmem:[#allocation64_spill] sm:$0xff] }
 0x50a   : > { %4041 = vst [vmem:[#allocation9 + $0xb8] sm:$0xff] %v3977_v5  ;;  %v3915_v3 = vadd.f32 %v3813_v42, %v6717_v14  ;;  %5459 = vlog2.f32 %v3701_v58 }
 0x50b   : > { %v5448_v60 = vpop.eup %5447  ;;  %4042 = vst [vmem:[#allocation9 + $0xc0] sm:$0xff] %v3978_v46  ;;  %v3916_v27 = vadd.f32 %v3815_v49, %v6723_v23  ;;  %5461 = vlog2.f32 %v3703_v7 }
 0x50c   : > { %v5450_v6 = vpop.eup %5449  ;;  %v3979_v26 = vsub.f32 %v7318_v1, %v3915_v3  ;;  %v3817_v17 = vmul.f32 0.6931472, %v5448_v60 }
 0x50d   : > { %v3980_v16 = vsub.f32 %v7319_v40, %v3916_v27  ;;  %v3819_v9 = vmul.f32 0.6931472, %v5450_v6  ;;  %v3705_v22 = vpop.xlane.xlu1 %3704  ;;  %v3707_v44 = vpop.xlane.xlu0 %3706  ;;  %v7326_v27 = vld [vmem:[#allocation65_spill] sm:$0xff] }
 0x50e   : > { %4043 = vst [vmem:[#allocation9 + $0xc8] sm:$0xff] %v3979_v26  ;;  %v3917_v59 = vadd.f32 %v3817_v17, %v6725_v30  ;;  %5463 = vlog2.f32 %v3705_v22  ;;  %v7327_v26 = vld [vmem:[#allocation66_spill] sm:$0xff] }
 0x50f   : > { %v5452_v14 = vpop.eup %5451  ;;  %4044 = vst [vmem:[#allocation9 + $0xd0] sm:$0xff] %v3980_v16  ;;  %v3918_v13 = vadd.f32 %v3819_v9, %v6731_v37  ;;  %5465 = vlog2.f32 %v3707_v44 }
 0x510   : > { %v5454_v23 = vpop.eup %5453  ;;  %v3981_v50 = vsub.f32 %v7320_v47, %v3917_v59  ;;  %v3821_v32 = vmul.f32 0.6931472, %v5452_v14  ;;  %v7328_v59 = vld [vmem:[#allocation67_spill] sm:$0xff] }
 0x511   : > { %v3982_v21 = vsub.f32 %v7321_v63, %v3918_v13  ;;  %v3823_v25 = vmul.f32 0.6931472, %v5454_v23  ;;  %v3709_v15 = vpop.xlane.xlu1 %3708  ;;  %v3711_v11 = vpop.xlane.xlu0 %3710  ;;  %v7329_v23 = vld [vmem:[#allocation68_spill] sm:$0xff] }
 0x512   : > { %4045 = vst [vmem:[#allocation9 + $0xd8] sm:$0xff] %v3981_v50  ;;  %v3919_v35 = vadd.f32 %v3821_v32, %v6733_v45  ;;  %5467 = vlog2.f32 %v3709_v15  ;;  %v7330_v15 = vld [vmem:[#allocation69_spill] sm:$0xff] }
 0x513   : > { %v5456_v30 = vpop.eup %5455  ;;  %4046 = vst [vmem:[#allocation9 + $0xe0] sm:$0xff] %v3982_v21  ;;  %v3920_v18 = vadd.f32 %v3823_v25, %v6739_v53  ;;  %5469 = vlog2.f32 %v3711_v11 }
 0x514   : > { %v5458_v37 = vpop.eup %5457  ;;  %v3983_v0 = vsub.f32 %v7322_v38, %v3919_v35  ;;  %v3825_v54 = vmul.f32 0.6931472, %v5456_v30  ;;  %v7331_v30 = vld [vmem:[#allocation70_spill] sm:$0xff] }
 0x515   : > { %v3984_v56 = vsub.f32 %v7323_v57, %v3920_v18  ;;  %v3827_v2 = vmul.f32 0.6931472, %v5458_v37  ;;  %v3713_v51 = vpop.xlane.xlu1 %3712  ;;  %v3715_v41 = vpop.xlane.xlu0 %3714 }
 0x516   : > { %4047 = vst [vmem:[#allocation9 + $0xe8] sm:$0xff] %v3983_v0  ;;  %v3921_v31 = vadd.f32 %v3825_v54, %v6741_v61  ;;  %5471 = vlog2.f32 %v3713_v51 }
 0x517   : > { %v5460_v45 = vpop.eup %5459  ;;  %4048 = vst [vmem:[#allocation9 + $0xf0] sm:$0xff] %v3984_v56  ;;  %v3922_v52 = vadd.f32 %v3827_v2, %v6747_v4  ;;  %5473 = vlog2.f32 %v3715_v41  ;;  %v7332_v56 = vld [vmem:[#allocation71_spill] sm:$0xff]  ;;  %v7333_v41 = vld [vmem:[#allocation72_spill] sm:$0xff] }
 0x518   : > { %v5462_v53 = vpop.eup %5461  ;;  %v3985_v5 = vsub.f32 %v7324_v48, %v3921_v31  ;;  %v3829_v42 = vmul.f32 0.6931472, %v5460_v45 }
 0x519   : > { %v3986_v46 = vsub.f32 %v7325_v34, %v3922_v52  ;;  %v3831_v49 = vmul.f32 0.6931472, %v5462_v53  ;;  %v3717_v58 = vpop.xlane.xlu1 %3716  ;;  %v3719_v7 = vpop.xlane.xlu0 %3718 }
 0x51a   : > { %4049 = vst [vmem:[#allocation9 + $0xf8] sm:$0xff] %v3985_v5  ;;  %v3923_v3 = vadd.f32 %v3829_v42, %v6749_v10  ;;  %5475 = vlog2.f32 %v3717_v58  ;;  %v7334_v42 = vld [vmem:[#allocation73_spill] sm:$0xff] }
 0x51b   : > { %v5464_v61 = vpop.eup %5463  ;;  %4050 = vst [vmem:[#allocation9 + $0x100] sm:$0xff] %v3986_v46  ;;  %v3924_v60 = vadd.f32 %v3831_v49, %v6755_v28  ;;  %5477 = vlog2.f32 %v3719_v7  ;;  %v7335_v49 = vld [vmem:[#allocation74_spill] sm:$0xff] }
 0x51c   : > { %v5466_v4 = vpop.eup %5465  ;;  %v3987_v6 = vsub.f32 %v7326_v27, %v3923_v3  ;;  %v3833_v1 = vmul.f32 0.6931472, %v5464_v61  ;;  %v7336_v27 = vld [vmem:[#allocation75_spill] sm:$0xff] }
 0x51d   : > { %v3988_v17 = vsub.f32 %v7327_v26, %v3924_v60  ;;  %v3835_v40 = vmul.f32 0.6931472, %v5466_v4  ;;  %v3721_v16 = vpop.xlane.xlu1 %3720  ;;  %v3723_v9 = vpop.xlane.xlu0 %3722  ;;  %v7337_v26 = vld [vmem:[#allocation76_spill] sm:$0xff] }
 0x51e   : > { %4051 = vst [vmem:[#allocation9 + $0x108] sm:$0xff] %v3987_v6  ;;  %v3925_v22 = vadd.f32 %v3833_v1, %v6757_v55  ;;  %5479 = vlog2.f32 %v3721_v16 }
 0x51f   : > { %v5468_v10 = vpop.eup %5467  ;;  %4052 = vst [vmem:[#allocation9 + $0x110] sm:$0xff] %v3988_v17  ;;  %v3926_v44 = vadd.f32 %v3835_v40, %v6763_v19  ;;  %5481 = vlog2.f32 %v3723_v9 }
 0x520   : > { %v5470_v28 = vpop.eup %5469  ;;  %v3989_v14 = vsub.f32 %v7328_v59, %v3925_v22  ;;  %v3837_v13 = vmul.f32 0.6931472, %v5468_v10 }
 0x521   : > { %v3990_v47 = vsub.f32 %v7329_v23, %v3926_v44  ;;  %v3839_v50 = vmul.f32 0.6931472, %v5470_v28  ;;  %v3725_v32 = vpop.xlane.xlu1 %3724  ;;  %v3727_v63 = vpop.xlane.xlu0 %3726  ;;  %v7338_v44 = vld [vmem:[#allocation77_spill] sm:$0xff] }
 0x522   : > { %4053 = vst [vmem:[#allocation9 + $0x118] sm:$0xff] %v3989_v14  ;;  %v3927_v21 = vadd.f32 %v3837_v13, %v6765_v29  ;;  %5483 = vlog2.f32 %v3725_v32  ;;  %v7339_v14 = vld [vmem:[#allocation78_spill] sm:$0xff] }
 0x523   : > { %v5472_v55 = vpop.eup %5471  ;;  %4054 = vst [vmem:[#allocation9 + $0x120] sm:$0xff] %v3990_v47  ;;  %v3928_v25 = vadd.f32 %v3839_v50, %v6771_v62  ;;  %5485 = vlog2.f32 %v3727_v63  ;;  %v7340_v32 = vld [vmem:[#allocation98_spill] sm:$0xff] }
 0x524   : > { %v5474_v19 = vpop.eup %5473  ;;  %v3991_v11 = vsub.f32 %v7330_v15, %v3927_v21  ;;  %v3841_v35 = vmul.f32 0.6931472, %v5472_v55  ;;  %v7341_v21 = vld [vmem:[#allocation99_spill] sm:$0xff] }
 0x525   : > { %v3992_v18 = vsub.f32 %v7331_v30, %v3928_v25  ;;  %v3843_v37 = vmul.f32 0.6931472, %v5474_v19  ;;  %v3729_v38 = vpop.xlane.xlu1 %3728  ;;  %v3731_v0 = vpop.xlane.xlu0 %3730  ;;  %v7342_v25 = vld [vmem:[#allocation79_spill] sm:$0xff] }
 0x526   : > { %4055 = vst [vmem:[#allocation9 + $0x128] sm:$0xff] %v3991_v11  ;;  %v3929_v54 = vadd.f32 %v3841_v35, %v6773_v33  ;;  %5487 = vlog2.f32 %v3729_v38  ;;  %v7343_v11 = vld [vmem:[#allocation80_spill] sm:$0xff] }
 0x527   : > { %v5476_v29 = vpop.eup %5475  ;;  %4056 = vst [vmem:[#allocation9 + $0x130] sm:$0xff] %v3992_v18  ;;  %v3930_v57 = vadd.f32 %v3843_v37, %v6779_v43  ;;  %5489 = vlog2.f32 %v3731_v0  ;;  %v7344_v38 = vld [vmem:[#allocation100_spill] sm:$0xff] }
 0x528   : > { %v5478_v62 = vpop.eup %5477  ;;  %v3993_v2 = vsub.f32 %v7332_v56, %v3929_v54  ;;  %v3845_v51 = vmul.f32 0.6931472, %v5476_v29  ;;  %v7345_v29 = vld [vmem:[#allocation101_spill] sm:$0xff] }
 0x529   : > { %v3994_v31 = vsub.f32 %v7333_v41, %v3930_v57  ;;  %v3847_v45 = vmul.f32 0.6931472, %v5478_v62  ;;  %v3733_v52 = vpop.xlane.xlu1 %3732  ;;  %v3735_v53 = vpop.xlane.xlu0 %3734  ;;  %v7346_v56 = vld [vmem:[#allocation81_spill] sm:$0xff]  ;;  %v7347_v41 = vld [vmem:[#allocation82_spill] sm:$0xff] }
 0x52a   : > { %4057 = vst [vmem:[#allocation9 + $0x138] sm:$0xff] %v3993_v2  ;;  %v3931_v48 = vadd.f32 %v3845_v51, %v6781_v12  ;;  %5491 = vlog2.f32 %v3733_v52 }
 0x52b   : > { %v5480_v33 = vpop.eup %5479  ;;  %4058 = vst [vmem:[#allocation9 + $0x140] sm:$0xff] %v3994_v31  ;;  %v3932_v5 = vadd.f32 %v3847_v45, %v6787_v20  ;;  %5493 = vlog2.f32 %v3735_v53 }
 0x52c   : > { %v5482_v43 = vpop.eup %5481  ;;  %v3995_v34 = vsub.f32 %v7334_v42, %v3931_v48  ;;  %v3849_v46 = vmul.f32 0.6931472, %v5480_v33  ;;  %v7348_v48 = vld [vmem:[#allocation102_spill] sm:$0xff] }
 0x52d   : > { %v3996_v58 = vsub.f32 %v7335_v49, %v3932_v5  ;;  %v3851_v7 = vmul.f32 0.6931472, %v5482_v43  ;;  %v3737_v3 = vpop.xlane.xlu1 %3736  ;;  %v3739_v61 = vpop.xlane.xlu0 %3738  ;;  %v7349_v43 = vld [vmem:[#allocation103_spill] sm:$0xff] }
 0x52e   : > { %4059 = vst [vmem:[#allocation9 + $0x148] sm:$0xff] %v3995_v34  ;;  %v3933_v60 = vadd.f32 %v3849_v46, %v6789_v24  ;;  %5495 = vlog2.f32 %v3737_v3  ;;  %v7350_v46 = vld [vmem:[#allocation83_spill] sm:$0xff] }
 0x52f   : > { %v5484_v12 = vpop.eup %5483  ;;  %4060 = vst [vmem:[#allocation9 + $0x150] sm:$0xff] %v3996_v58  ;;  %v3934_v4 = vadd.f32 %v3851_v7, %v6795_v36  ;;  %5497 = vlog2.f32 %v3739_v61  ;;  %v7351_v7 = vld [vmem:[#allocation84_spill] sm:$0xff] }
 0x530   : > { %v5486_v20 = vpop.eup %5485  ;;  %v3997_v6 = vsub.f32 %v7336_v27, %v3933_v60  ;;  %v3853_v1 = vmul.f32 0.6931472, %v5484_v12 }
 0x531   : > { %v3998_v17 = vsub.f32 %v7337_v26, %v3934_v4  ;;  %v3855_v40 = vmul.f32 0.6931472, %v5486_v20  ;;  %v3741_v16 = vpop.xlane.xlu1 %3740  ;;  %v3743_v9 = vpop.xlane.xlu0 %3742  ;;  %v7352_v4 = vld [vmem:[#allocation104_spill] sm:$0xff] }
 0x532   : > { %4061 = vst [vmem:[#allocation9 + $0x158] sm:$0xff] %v3997_v6  ;;  %v3935_v22 = vadd.f32 %v3853_v1, %v6797_v39  ;;  %5499 = vlog2.f32 %v3741_v16  ;;  %v7353_v6 = vld [vmem:[#allocation105_spill] sm:$0xff] }
 0x533   : > { %v5488_v24 = vpop.eup %5487  ;;  %4062 = vst [vmem:[#allocation9 + $0x160] sm:$0xff] %v3998_v17  ;;  %v3936_v10 = vadd.f32 %v3855_v40, %v6803_v8  ;;  %5501 = vlog2.f32 %v3743_v9  ;;  %v7354_v17 = vld [vmem:[#allocation85_spill] sm:$0xff]  ;;  %v7355_v9 = vld [vmem:[#allocation86_spill] sm:$0xff] }
 0x534   : > { %v5490_v36 = vpop.eup %5489  ;;  %v3999_v28 = vsub.f32 %v7338_v44, %v3935_v22  ;;  %v3857_v59 = vmul.f32 0.6931472, %v5488_v24 }
 0x535   : > { %v4000_v13 = vsub.f32 %v7339_v14, %v3936_v10  ;;  %v3859_v23 = vmul.f32 0.6931472, %v5490_v36  ;;  %v3745_v47 = vpop.xlane.xlu1 %3744  ;;  %v3747_v50 = vpop.xlane.xlu0 %3746  ;;  %v7356_v36 = vld [vmem:[#allocation106_spill] sm:$0xff] }
 0x536   : > { %4063 = vst [vmem:[#allocation9 + $0x168] sm:$0xff] %v3999_v28  ;;  %v3937_v63 = vadd.f32 %v3857_v59, %v7340_v32  ;;  %5503 = vlog2.f32 %v3745_v47  ;;  %v7357_v59 = vld [vmem:[#allocation107_spill] sm:$0xff]  ;;  %v7359_v32 = vld [vmem:[#allocation88_spill] sm:$0xff] }
 0x537   : > { %v5492_v39 = vpop.eup %5491  ;;  %4064 = vst [vmem:[#allocation9 + $0x170] sm:$0xff] %v4000_v13  ;;  %v3938_v55 = vadd.f32 %v3859_v23, %v7341_v21  ;;  %5505 = vlog2.f32 %v3747_v50  ;;  %v7358_v23 = vld [vmem:[#allocation87_spill] sm:$0xff]  ;;  %v7360_v21 = vld [vmem:[#allocation108_spill] sm:$0xff] }
 0x538   : > { %v5494_v8 = vpop.eup %5493  ;;  %v4001_v19 = vsub.f32 %v7342_v25, %v3937_v63  ;;  %v3861_v15 = vmul.f32 0.6931472, %v5492_v39  ;;  %v7361_v25 = vld [vmem:[#allocation109_spill] sm:$0xff] }
 0x539   : > { %v4002_v35 = vsub.f32 %v7343_v11, %v3938_v55  ;;  %v3863_v30 = vmul.f32 0.6931472, %v5494_v8  ;;  %v3749_v18 = vpop.xlane.xlu1 %3748  ;;  %v3751_v37 = vpop.xlane.xlu0 %3750  ;;  %v7362_v11 = vld [vmem:[#allocation89_spill] sm:$0xff] }
 0x53a   : > { %4065 = vst [vmem:[#allocation9 + $0x178] sm:$0xff] %v4001_v19  ;;  %v3939_v0 = vadd.f32 %v3861_v15, %v7344_v38  ;;  %5507 = vlog2.f32 %v3749_v18  ;;  %v7363_v18 = vld [vmem:[#allocation90_spill] sm:$0xff] }
 0x53b   : > { %v5496_v54 = vpop.eup %5495  ;;  %4066 = vst [vmem:[#allocation9 + $0x180] sm:$0xff] %v4002_v35  ;;  %v3940_v57 = vadd.f32 %v3863_v30, %v7345_v29  ;;  %5509 = vlog2.f32 %v3751_v37 }
 0x53c   : > { %v5498_v62 = vpop.eup %5497  ;;  %v4003_v2 = vsub.f32 %v7346_v56, %v3939_v0  ;;  %v3865_v51 = vmul.f32 0.6931472, %v5496_v54  ;;  %v7364_v0 = vld [vmem:[#allocation110_spill] sm:$0xff] }
 0x53d   : > { %v4004_v31 = vsub.f32 %v7347_v41, %v3940_v57  ;;  %v3867_v45 = vmul.f32 0.6931472, %v5498_v62  ;;  %v3753_v52 = vpop.xlane.xlu1 %3752  ;;  %v3755_v53 = vpop.xlane.xlu0 %3754  ;;  %v7365_v57 = vld [vmem:[#allocation111_spill] sm:$0xff] }
 0x53e   : > { %4067 = vst [vmem:[#allocation9 + $0x188] sm:$0xff] %v4003_v2  ;;  %v3941_v33 = vadd.f32 %v3865_v51, %v7348_v48  ;;  %5511 = vlog2.f32 %v3753_v52  ;;  %v7366_v2 = vld [vmem:[#allocation91_spill] sm:$0xff] }
 0x53f   : > { %v5500_v5 = vpop.eup %5499  ;;  %4068 = vst [vmem:[#allocation9 + $0x190] sm:$0xff] %v4004_v31  ;;  %v3942_v42 = vadd.f32 %v3867_v45, %v7349_v43  ;;  %5513 = vlog2.f32 %v3755_v53  ;;  %v7367_v31 = vld [vmem:[#allocation92_spill] sm:$0xff] }
 0x540   : > { %v5502_v34 = vpop.eup %5501  ;;  %v4005_v49 = vsub.f32 %v7350_v46, %v3941_v33  ;;  %v3869_v58 = vmul.f32 0.6931472, %v5500_v5  ;;  %v7368_v53 = vld [vmem:[#allocation112_spill] sm:$0xff]  ;;  %v7369_v5 = vld [vmem:[#allocation113_spill] sm:$0xff] }
 0x541   : > { %v4006_v3 = vsub.f32 %v7351_v7, %v3942_v42  ;;  %v3871_v61 = vmul.f32 0.6931472, %v5502_v34  ;;  %v3757_v60 = vpop.xlane.xlu1 %3756  ;;  %v3759_v12 = vpop.xlane.xlu0 %3758  ;;  %v7370_v42 = vld [vmem:[#allocation93_spill] sm:$0xff]  ;;  %v7372_v7 = vld [vmem:[#allocation114_spill] sm:$0xff] }
 0x542   : > { %4069 = vst [vmem:[#allocation9 + $0x198] sm:$0xff] %v4005_v49  ;;  %v3943_v20 = vadd.f32 %v3869_v58, %v7352_v4  ;;  %5515 = vlog2.f32 %v3757_v60  ;;  %v7371_v49 = vld [vmem:[#allocation94_spill] sm:$0xff] }
 0x543   : > { %v5504_v27 = vpop.eup %5503  ;;  %4070 = vst [vmem:[#allocation9 + $0x1a0] sm:$0xff] %v4006_v3  ;;  %v3944_v1 = vadd.f32 %v3871_v61, %v7353_v6  ;;  %5517 = vlog2.f32 %v3759_v12  ;;  %v7373_v61 = vld [vmem:[#allocation95_spill] sm:$0xff] }
 0x544   : > { %v5506_v26 = vpop.eup %5505  ;;  %v4007_v40 = vsub.f32 %v7354_v17, %v3943_v20  ;;  %v3873_v16 = vmul.f32 0.6931472, %v5504_v27 }
 0x545   : > { %v4008_v22 = vsub.f32 %v7355_v9, %v3944_v1  ;;  %v3875_v24 = vmul.f32 0.6931472, %v5506_v26  ;;  %v3761_v10 = vpop.xlane.xlu1 %3760 }
 0x546   : > { %4071 = vst [vmem:[#allocation9 + $0x1a8] sm:$0xff] %v4007_v40  ;;  %v3945_v44 = vadd.f32 %v3873_v16, %v7356_v36  ;;  %5519 = vlog2.f32 %v3761_v10 }
 0x547   : > { %v5508_v28 = vpop.eup %5507  ;;  %4072 = vst [vmem:[#allocation9 + $0x1b0] sm:$0xff] %v4008_v22  ;;  %v3946_v14 = vadd.f32 %v3875_v24, %v7357_v59 }
 0x548   : > { %v5510_v13 = vpop.eup %5509  ;;  %v4009_v47 = vsub.f32 %v7358_v23, %v3945_v44  ;;  %v3877_v50 = vmul.f32 0.6931472, %v5508_v28 }
 0x549   : > { %v4010_v63 = vsub.f32 %v7359_v32, %v3946_v14  ;;  %v3879_v39 = vmul.f32 0.6931472, %v5510_v13 }
 0x54a   : > { %4073 = vst [vmem:[#allocation9 + $0x1b8] sm:$0xff] %v4009_v47  ;;  %v3947_v55 = vadd.f32 %v3877_v50, %v7360_v21 }
 0x54b   : > { %v5512_v8 = vpop.eup %5511  ;;  %4074 = vst [vmem:[#allocation9 + $0x1c0] sm:$0xff] %v4010_v63  ;;  %v3948_v19 = vadd.f32 %v3879_v39, %v7361_v25 }
 0x54c   : > { %v5514_v15 = vpop.eup %5513  ;;  %v4011_v35 = vsub.f32 %v7362_v11, %v3947_v55  ;;  %v3881_v30 = vmul.f32 0.6931472, %v5512_v8 }
 0x54d   : > { %v4012_v37 = vsub.f32 %v7363_v18, %v3948_v19  ;;  %v3883_v38 = vmul.f32 0.6931472, %v5514_v15 }
 0x54e   : > { %4075 = vst [vmem:[#allocation9 + $0x1c8] sm:$0xff] %v4011_v35  ;;  %v3949_v54 = vadd.f32 %v3881_v30, %v7364_v0 }
 0x54f   : > { %v5516_v29 = vpop.eup %5515  ;;  %4076 = vst [vmem:[#allocation9 + $0x1d0] sm:$0xff] %v4012_v37  ;;  %v3950_v62 = vadd.f32 %v3883_v38, %v7365_v57 }
 0x550   : > { %v5518_v56 = vpop.eup %5517  ;;  %v4013_v51 = vsub.f32 %v7366_v2, %v3949_v54  ;;  %v3885_v41 = vmul.f32 0.6931472, %v5516_v29 }
 0x551   : > { %v4014_v45 = vsub.f32 %v7367_v31, %v3950_v62  ;;  %v3887_v52 = vmul.f32 0.6931472, %v5518_v56 }
 0x552   : > { %4077 = vst [vmem:[#allocation9 + $0x1d8] sm:$0xff] %v4013_v51  ;;  %v3951_v48 = vadd.f32 %v3885_v41, %v7368_v53 }
 0x553   : > { %v5520_v33 = vpop.eup %5519  ;;  %4078 = vst [vmem:[#allocation9 + $0x1e0] sm:$0xff] %v4014_v45  ;;  %v3952_v43 = vadd.f32 %v3887_v52, %v7369_v5 }
 0x554   : > { %v4015_v34 = vsub.f32 %v7370_v42, %v3951_v48  ;;  %v3889_v46 = vmul.f32 0.6931472, %v5520_v33 }
 0x555   : > { %v4016_v58 = vsub.f32 %v7371_v49, %v3952_v43 }
 0x556   : > { %4079 = vst [vmem:[#allocation9 + $0x1e8] sm:$0xff] %v4015_v34  ;;  %v3953_v3 = vadd.f32 %v3889_v46, %v7372_v7 }
 0x557   : > { %4080 = vst [vmem:[#allocation9 + $0x1f0] sm:$0xff] %v4016_v58 }
 0x558   : > { %v4017_v60 = vsub.f32 %v7373_v61, %v3953_v3 }
 0x55a   : > { %4081 = vst [vmem:[#allocation9 + $0x1f8] sm:$0xff] %v4017_v60 }
 0x55b PF: > { %p4977_p3 = scmp.eq.s32.totalorder %s5756_s21, 4  ;;  %s5699_s18 = smov [#allocation9]  }
 0x55c   : > { %s4091_s10 = sshll.u32 %s5699_s18, 4  ;;  %s4092_s10 = int_to_ptr.vmem [resolvable:$true] %s4091_s10 }
 0x55d   : > { %s5601_s11 = scalar_lea.vmem %s4092_s10, 8192  ;;  %p5608_p6 = scmp.lt.s32.totalorder %s4092_s10, %s4092_s10 }
 0x55e   : > { %p5602_p2 = scmp.ne.s32.totalorder %s4092_s10, %s5601_s11  ;;  %p5609_p10 = scmp.lt.s32.totalorder %s5601_s11, %s5601_s11 }
 0x560   : > { %p5603_p4 = pnand %p5602_p2, %p4977_p3  ;;  %p5610_p8 = por %p5609_p10, %p5608_p6 }
 0x562   : > { %p5604_p13 = pneg %p5603_p4 }
 0x564   : > { %p5611_p12 = pnand %p5610_p8, %p5604_p13 }
 0x566   : > { %5614 = shalt.err (!%p5611_p12)
}
 0x567   : > { %s5700_s22 = smov 128   ;;  %s5701_s12 = smov 8  }
 0x568   : > { %4958 = dma.vmem_to_hbm [thread:$0]  (%p4977_p3), %s4092_s10, 8192, %s7037_s4, [#allocation5], %s5700_s22, %s5700_s22, %s5701_s12  }
 0x569   : > { %5662 = dma.done.wait (%p4977_p3), [#allocation5], 8192  }
 0x56a   : > { %5664 = vsyncadd (%p4977_p3), [#allocation5], 4294959104 }
 0x56b PF: > { %s17_s20 = sadd.s32 1, %s5687_s20   ;;  %s7374_s15 = smov %s5671_s16 }
 0x56c   : > { %p14_p9 = scmp.ge.s32.totalorder %s17_s20, 7   ;;  %s7375_s16 = smov %s5675_s17 }
 0x56d   : > { %s7376_s17 = smov %s5819_s8  ;;  %s7377_s18 = smov %s5683_s19 }
 0x56e   : > { %s7378_s19 = smov %s7380_s24  ;;  %16 = sbr.rel (!%p14_p9) target bundleno = 5 (0x5), region = 107 }
 0x573   :  { %4107 = vsyncpa [#allocation4], 1 }
 0x574   :  { %4109 = vsyncpa [#allocation4 + $0x1], 1 }
 0x575   :  { %4110 = vsyncpa [#allocation7], 1 }
 0x576   :  { %4111 = vsyncpa [#allocation5], 1 }
 0x577   :  { %4113 = vsyncpa [#allocation5 + $0x1], 1 }

</bundles_post_ra>
